<compile_context>
chip_gen: v7x
topology: tpu7x:2x2x1
jax: 0.10.0
libtpu: 0.0.40
codegen_flags: <defaults>
</compile_context>

<pallas_src>
import functools
import math

import jax
import jax.numpy as jnp
from jax.experimental import pallas as pl
from jax.experimental.pallas import tpu as pltpu


# ----------------------------------------------------------------------------
# Pallas kernel: one grid step = one batch element, everything resident in VMEM.
# ----------------------------------------------------------------------------
def _decoder_kernel(x_ref, w1_ref, s1_ref, b1_ref, w2_ref, s2_ref, b2_ref,
                    w3_ref, b3_ref, awt_ref, o_ref,
                    patch1, rows_sc, pad2f, patch2, dense, *, H, W, Cp):
    f32, bf16 = jnp.float32, jnp.bfloat16
    Hp, Wp = H + 2, W + 2
    H2, W2 = 2 * H, 2 * W
    H2p, W2p = H2 + 2, W2 + 2
    L1 = (H - 1) * Wp + W            # flattened conv1 output length (incl. junk)
    L2 = (H2 - 1) * W2p + W2         # flattened conv2/conv3 output length

    # Hoist all constant reads out of the unrolled loops (perf item 11).
    w1m = w1_ref[...]
    w2m = w2_ref[...]
    w3t = w3_ref[...]
    awt = awt_ref[...]
    s1, b1 = s1_ref[...], b1_ref[...]
    s2, b2 = s2_ref[...], b2_ref[...]
    b3 = b3_ref[...]

    # ---- conv1: im2col (9 contiguous lane slices) + one MXU matmul -----------
    # x_ref holds the zero-padded input flattened to (Cp, Hp*Wp) in bf16;
    # stencil tap (dy, dx) is a single contiguous lane slice at dy*Wp + dx.
    # Each tap store is a full Cp-row bf16 block (pack-aligned, pad rows are
    # real zeros matching zero weight columns) -> no partial-pack RMW.
    for dy in range(3):
        for dx in range(3):
            t = dy * 3 + dx
            patch1[pl.ds(t * Cp, Cp), :] = x_ref[0, :, pl.ds(dy * Wp + dx, L1)]
    y1 = jnp.dot(w1m, patch1[...], preferred_element_type=f32)        # (Cp, L1)
    y1 = jnp.maximum(y1 * s1 + b1, 0.0)     # padded out-channels stay exactly 0

    # ---- bilinear x2 upsample (align_corners=False), separable ---------------
    # Width: gather the H valid row-slices into one (H*Cp, W) scratch and do a
    # single matmul against A_w^T (perf item 3).  awt has zero first/last
    # output columns, so each result row is already a horizontally padded row.
    for h in range(H):
        rows_sc[pl.ds(h * Cp, Cp), :] = y1[:, h * Wp:h * Wp + W]
    mid_all = jnp.dot(rows_sc[...], awt, preferred_element_type=f32)  # (H*Cp, W2p)

    # Height: each upsampled row is a static 2-tap f32 blend of adjacent source
    # rows, stored as bf16 straight into the flattened, padded conv2 buffer.
    zrow = jnp.zeros((Cp, W2p), bf16)
    pad2f[:, pl.ds(0, W2p)] = zrow                                    # top pad row
    pad2f[:, pl.ds((H2p - 1) * W2p, W2p)] = zrow                      # bottom pad row
    for u in range(H2):
        src = min(max((u + 0.5) / 2.0 - 0.5, 0.0), float(H - 1))
        lo = int(math.floor(src))
        hi = min(lo + 1, H - 1)
        frac = src - float(lo)
        row_lo = mid_all[lo * Cp:(lo + 1) * Cp, :]
        if frac == 0.0:
            row = row_lo
        else:
            row_hi = mid_all[hi * Cp:(hi + 1) * Cp, :]
            row = (1.0 - frac) * row_lo + frac * row_hi
        pad2f[:, pl.ds((u + 1) * W2p, W2p)] = row.astype(bf16)

    # ---- conv2: im2col + one MXU matmul ---------------------------------------
    for dy in range(3):
        for dx in range(3):
            t = dy * 3 + dx
            patch2[pl.ds(t * Cp, Cp), :] = pad2f[:, pl.ds(dy * W2p + dx, L2)]
    y2 = jnp.dot(w2m, patch2[...], preferred_element_type=f32)        # (Cmid, L2)
    y2 = jnp.maximum(y2 * s2 + b2, 0.0)

    # ---- strip junk columns BEFORE conv3, then one dense output store --------
    # (perf item 4: strip on Cmid=32 rows and write o_ref with a single
    # unmasked, lane-dense (Ncls, H2*W2) store.)
    for u in range(H2):
        dense[:, pl.ds(u * W2, W2)] = y2[:, u * W2p:u * W2p + W2].astype(bf16)
    y3 = jnp.dot(w3t, dense[...], preferred_element_type=f32) + b3    # (Ncls, H2*W2)
    o_ref[0, :, :] = y3.astype(o_ref.dtype)


# ----------------------------------------------------------------------------
# Bilinear-upsample-by-2 axis matrix (PyTorch align_corners=False).
# ----------------------------------------------------------------------------
def _bilinear_axis_matrix(n):
    out = 2 * n
    dst = jnp.arange(out, dtype=jnp.float32)
    src = jnp.clip((dst + 0.5) / 2.0 - 0.5, 0.0, float(n - 1))
    lo = jnp.floor(src).astype(jnp.int32)
    hi = jnp.minimum(lo + 1, n - 1)
    frac = src - lo.astype(jnp.float32)
    rows = jnp.arange(out)
    m = jnp.zeros((out, n), jnp.float32)
    m = m.at[rows, lo].add(1.0 - frac)
    m = m.at[rows, hi].add(frac)
    return m


# ----------------------------------------------------------------------------
# Wrapper around pallas_call.
# ----------------------------------------------------------------------------
def small_upsample_decoder(x_nchw, params):
    w1, s1, b1, w2, s2, b2, w3, b3 = params
    x = x_nchw.astype(jnp.float32)
    N, Cin, H, W = x.shape
    H2, W2 = 2 * H, 2 * W
    Hp, Wp = H + 2, W + 2
    H2p, W2p = H2 + 2, W2 + 2
    Cmid, Ncls = w2.shape[3], w3.shape[1]
    bf16 = jnp.bfloat16

    # Channel pad: even (bf16 sublane pack of 2) and f32-sublane friendly, so
    # every Cp-row scratch store is pack-aligned (no read-modify-write).
    Cp = -(-Cin // 8) * 8

    L1 = (H - 1) * Wp + W
    L2 = (H2 - 1) * W2p + W2

    # Zero-pad channels (to Cp) and spatial (by 1) once in XLA; the flattening
    # reshape is free (row-major).  bf16 halves the per-step HBM read (item 2).
    xpad = jnp.pad(x, ((0, 0), (0, Cp - Cin), (1, 1), (1, 1)))
    xpad = xpad.reshape(N, Cp, Hp * Wp).astype(bf16)

    # im2col-packed conv weights, zero-padded to Cp input channels (and Cp
    # output channels for conv1): patch row index = (dy*3+dx)*Cp + ci.
    w1m = jnp.pad(w1.reshape(9, Cin, Cin),
                  ((0, 0), (0, Cp - Cin), (0, Cp - Cin))
                  ).reshape(9 * Cp, Cp).T.astype(bf16)               # (Cp, 9*Cp)
    w2m = jnp.pad(w2.reshape(9, Cin, Cmid),
                  ((0, 0), (0, Cp - Cin), (0, 0))
                  ).reshape(9 * Cp, Cmid).T.astype(bf16)             # (Cmid, 9*Cp)
    w3t = w3.T.astype(bf16)                                          # (Ncls, Cmid)
    s1c = jnp.pad(s1, (0, Cp - Cin)).reshape(Cp, 1)
    b1c = jnp.pad(b1, (0, Cp - Cin)).reshape(Cp, 1)
    s2c, b2c = s2.reshape(Cmid, 1), b2.reshape(Cmid, 1)
    b3c = b3.reshape(Ncls, 1)

    # Width-upsample matrix A_w^T with zero first/last output columns so matmul
    # results are already horizontally padded rows.  O(W^2) memory.
    aw = _bilinear_axis_matrix(W)                                    # (W2, W)
    awt = jnp.zeros((W, W2p), jnp.float32).at[:, 1:W2 + 1].set(aw.T)

    def const_spec(a):
        nd = a.ndim
        return pl.BlockSpec(a.shape, lambda n, _nd=nd: (0,) * _nd)

    kernel = functools.partial(_decoder_kernel, H=H, W=W, Cp=Cp)

    # Constants total a few KiB -> default double-buffering is harmless; for
    # large H, W the next steps are pl.Buffered(1) on the constant specs, an
    # explicit vmem_limit_bytes, and spatial tiling of the output rows.
    out_flat = pl.pallas_call(
        kernel,
        out_shape=jax.ShapeDtypeStruct((N, Ncls, H2 * W2), jnp.float32),
        grid_spec=pltpu.PrefetchScalarGridSpec(
            num_scalar_prefetch=0,
            grid=(N,),
            in_specs=[
                pl.BlockSpec((1, Cp, Hp * Wp), lambda n: (n, 0, 0)),
                const_spec(w1m), const_spec(s1c), const_spec(b1c),
                const_spec(w2m), const_spec(s2c), const_spec(b2c),
                const_spec(w3t), const_spec(b3c), const_spec(awt),
            ],
            out_specs=pl.BlockSpec((1, Ncls, H2 * W2), lambda n: (n, 0, 0)),
            scratch_shapes=[
                pltpu.VMEM((9 * Cp, L1), bf16),           # conv1 im2col patches
                pltpu.VMEM((H * Cp, W), jnp.float32),     # width-upsample LHS
                pltpu.VMEM((Cp, H2p * W2p), bf16),        # padded upsampled map
                pltpu.VMEM((9 * Cp, L2), bf16),           # conv2 im2col patches
                pltpu.VMEM((Cmid, H2 * W2), bf16),        # junk-stripped conv2 out
            ]),
        compiler_params=pltpu.CompilerParams(
            dimension_semantics=("parallel",)),
    )(xpad, w1m, s1c, b1c, w2m, s2c, b2c, w3t, b3c, awt)

    # Row-major (N, Ncls, H2*W2) has the same memory layout as NCHW -> free.
    return out_flat.reshape(N, Ncls, H2, W2)


# ----------------------------------------------------------------------------
# Deterministic parameter init (synthetic; SyncBN folded to inference
# scale/shift).
# ----------------------------------------------------------------------------
def init_params(key, cin=21, cmid=32, ncls=41):
    ks = jax.random.split(key, 12)
    eps = 1e-5

    def folded_bn(kg, kb, km, kv, c):
        gamma = 1.0 + 0.1 * jax.random.normal(kg, (c,), jnp.float32)
        beta = 0.1 * jax.random.normal(kb, (c,), jnp.float32)
        mean = 0.1 * jax.random.normal(km, (c,), jnp.float32)
        var = 1.0 + 0.1 * jnp.abs(jax.random.normal(kv, (c,), jnp.float32))
        scale = gamma / jnp.sqrt(var + eps)
        shift = beta - mean * scale
        return scale, shift

    def xavier_std(fan_in, fan_out):
        return (2.0 / (fan_in + fan_out)) ** 0.5

    w1 = jax.random.normal(ks[0], (3, 3, cin, cin), jnp.float32) * xavier_std(9 * cin, 9 * cin)
    s1, b1 = folded_bn(ks[1], ks[2], ks[3], ks[4], cin)
    w2 = jax.random.normal(ks[5], (3, 3, cin, cmid), jnp.float32) * xavier_std(9 * cin, 9 * cmid)
    s2, b2 = folded_bn(ks[6], ks[7], ks[8], ks[9], cmid)
    w3 = 0.001 * jax.random.normal(ks[10], (cmid, ncls), jnp.float32)   # normal_(0, 0.001)
    b3 = jnp.zeros((ncls,), jnp.float32)                                # constant_(0)
    return (w1, s1, b1, w2, s2, b2, w3, b3)


# ----------------------------------------------------------------------------
# Pure-JAX reference (same math, used only as a sanity check).
# ----------------------------------------------------------------------------
def ref_forward(x_nchw, params):
    w1, s1, b1, w2, s2, b2, w3, b3 = params
    x = x_nchw.astype(jnp.float32)

    def conv3x3(inp, w):
        return jax.lax.conv_general_dilated(
            inp, w, (1, 1), 'SAME', dimension_numbers=('NCHW', 'HWIO', 'NCHW'))

    t1 = jnp.maximum(conv3x3(x, w1) * s1[None, :, None, None]
                     + b1[None, :, None, None], 0.0)
    _, _, H, W = t1.shape
    ah = _bilinear_axis_matrix(H)
    aw = _bilinear_axis_matrix(W)
    up = jnp.einsum('uh,vw,nchw->ncuv', ah, aw, t1)
    t2 = jnp.maximum(conv3x3(up, w2) * s2[None, :, None, None]
                     + b2[None, :, None, None], 0.0)
    out = jnp.einsum('nchw,ck->nkhw', t2, w3) + b3[None, :, None, None]
    return out


if __name__ == "__main__":
    key = jax.random.PRNGKey(0)
    kx, kp = jax.random.split(key)

    N, Cin, H, W = 2, 21, 8, 8
    x = jax.random.normal(kx, (N, Cin, H, W), jnp.float32)
    params = init_params(kp, cin=Cin, cmid=32, ncls=41)

    out = jax.block_until_ready(small_upsample_decoder(x, params))

    assert out.shape == (N, 41, 2 * H, 2 * W), out.shape
    assert bool(jnp.all(jnp.isfinite(out)))

    ref = jax.block_until_ready(ref_forward(x, params))
    max_err = float(jnp.max(jnp.abs(out - ref)))
    assert bool(jnp.allclose(out, ref, atol=5e-3, rtol=1e-2)), max_err

    print("KERNEL_OK")
</pallas_src>

<mosaic_0001>
module attributes {stable_mosaic.version = 11 : i64} {
  func.func @_decoder_kernel(%arg0: i32, %arg1: memref<1x24x100xbf16, #tpu.memory_space<vmem>>, %arg2: memref<24x216xbf16, #tpu.memory_space<vmem>>, %arg3: memref<24x1xf32, #tpu.memory_space<vmem>>, %arg4: memref<24x1xf32, #tpu.memory_space<vmem>>, %arg5: memref<32x216xbf16, #tpu.memory_space<vmem>>, %arg6: memref<32x1xf32, #tpu.memory_space<vmem>>, %arg7: memref<32x1xf32, #tpu.memory_space<vmem>>, %arg8: memref<41x32xbf16, #tpu.memory_space<vmem>>, %arg9: memref<41x1xf32, #tpu.memory_space<vmem>>, %arg10: memref<8x18xf32, #tpu.memory_space<vmem>>, %arg11: memref<1x41x256xf32, #tpu.memory_space<vmem>>, %arg12: memref<216x78xbf16, #tpu.memory_space<vmem>>, %arg13: memref<192x8xf32, #tpu.memory_space<vmem>>, %arg14: memref<24x324xbf16, #tpu.memory_space<vmem>>, %arg15: memref<216x286xbf16, #tpu.memory_space<vmem>>, %arg16: memref<32x256xbf16, #tpu.memory_space<vmem>>) attributes {dimension_semantics = [#tpu.dimension_semantics<parallel>], iteration_bounds = array<i64: 2>, scalar_prefetch = 0 : i64, scratch_operands = 5 : i64, tpu.core_type = #tpu.core_type<tc>, window_params = [{transform_indices = @transform_0, window_bounds = array<i64: 1, 24, 100>}, {pipeline_mode = #tpu.pipeline_mode<synchronous>, transform_indices = @transform_1, window_bounds = array<i64: 24, 216>}, {pipeline_mode = #tpu.pipeline_mode<synchronous>, transform_indices = @transform_2, window_bounds = array<i64: 24, 1>}, {pipeline_mode = #tpu.pipeline_mode<synchronous>, transform_indices = @transform_3, window_bounds = array<i64: 24, 1>}, {pipeline_mode = #tpu.pipeline_mode<synchronous>, transform_indices = @transform_4, window_bounds = array<i64: 32, 216>}, {pipeline_mode = #tpu.pipeline_mode<synchronous>, transform_indices = @transform_5, window_bounds = array<i64: 32, 1>}, {pipeline_mode = #tpu.pipeline_mode<synchronous>, transform_indices = @transform_6, window_bounds = array<i64: 32, 1>}, {pipeline_mode = #tpu.pipeline_mode<synchronous>, transform_indices = @transform_7, window_bounds = array<i64: 41, 32>}, {pipeline_mode = #tpu.pipeline_mode<synchronous>, transform_indices = @transform_8, window_bounds = array<i64: 41, 1>}, {pipeline_mode = #tpu.pipeline_mode<synchronous>, transform_indices = @transform_9, window_bounds = array<i64: 8, 18>}, {transform_indices = @transform_10, window_bounds = array<i64: 1, 41, 256>}]} {
    %c0 = arith.constant 0 : index
    %c0_0 = arith.constant 0 : index
    %0 = vector.load %arg2[%c0, %c0_0] : memref<24x216xbf16, #tpu.memory_space<vmem>>, vector<24x216xbf16>
    %c0_1 = arith.constant 0 : index
    %c0_2 = arith.constant 0 : index
    %1 = vector.load %arg5[%c0_1, %c0_2] : memref<32x216xbf16, #tpu.memory_space<vmem>>, vector<32x216xbf16>
    %c0_3 = arith.constant 0 : index
    %c0_4 = arith.constant 0 : index
    %2 = vector.load %arg8[%c0_3, %c0_4] : memref<41x32xbf16, #tpu.memory_space<vmem>>, vector<41x32xbf16>
    %c0_5 = arith.constant 0 : index
    %c0_6 = arith.constant 0 : index
    %3 = vector.load %arg10[%c0_5, %c0_6] : memref<8x18xf32, #tpu.memory_space<vmem>>, vector<8x18xf32>
    %c0_7 = arith.constant 0 : index
    %c0_8 = arith.constant 0 : index
    %4 = vector.load %arg3[%c0_7, %c0_8] : memref<24x1xf32, #tpu.memory_space<vmem>>, vector<24x1xf32>
    %c0_9 = arith.constant 0 : index
    %c0_10 = arith.constant 0 : index
    %5 = vector.load %arg4[%c0_9, %c0_10] : memref<24x1xf32, #tpu.memory_space<vmem>>, vector<24x1xf32>
    %c0_11 = arith.constant 0 : index
    %c0_12 = arith.constant 0 : index
    %6 = vector.load %arg6[%c0_11, %c0_12] : memref<32x1xf32, #tpu.memory_space<vmem>>, vector<32x1xf32>
    %c0_13 = arith.constant 0 : index
    %c0_14 = arith.constant 0 : index
    %7 = vector.load %arg7[%c0_13, %c0_14] : memref<32x1xf32, #tpu.memory_space<vmem>>, vector<32x1xf32>
    %c0_15 = arith.constant 0 : index
    %c0_16 = arith.constant 0 : index
    %8 = vector.load %arg9[%c0_15, %c0_16] : memref<41x1xf32, #tpu.memory_space<vmem>>, vector<41x1xf32>
    %c0_17 = arith.constant 0 : index
    %c0_18 = arith.constant 0 : index
    %c0_19 = arith.constant 0 : index
    %9 = vector.load %arg1[%c0_17, %c0_18, %c0_19] : memref<1x24x100xbf16, #tpu.memory_space<vmem>>, vector<1x24x78xbf16>
    %10 = vector.shape_cast %9 : vector<1x24x78xbf16> to vector<24x78xbf16>
    %c0_20 = arith.constant 0 : index
    %c0_21 = arith.constant 0 : index
    %11 = vector.load %arg12[%c0_20, %c0_21] : memref<216x78xbf16, #tpu.memory_space<vmem>>, vector<24x78xbf16>
    tpu.vector_store %arg12[%c0_20, %c0_21], %10 {strides = array<i32>} : memref<216x78xbf16, #tpu.memory_space<vmem>>, vector<24x78xbf16>,
    %c0_22 = arith.constant 0 : index
    %c0_23 = arith.constant 0 : index
    %c1 = arith.constant 1 : index
    %12 = vector.load %arg1[%c0_22, %c0_23, %c1] : memref<1x24x100xbf16, #tpu.memory_space<vmem>>, vector<1x24x78xbf16>
    %13 = vector.shape_cast %12 : vector<1x24x78xbf16> to vector<24x78xbf16>
    %c24 = arith.constant 24 : index
    %c0_24 = arith.constant 0 : index
    %14 = vector.load %arg12[%c24, %c0_24] : memref<216x78xbf16, #tpu.memory_space<vmem>>, vector<24x78xbf16>
    tpu.vector_store %arg12[%c24, %c0_24], %13 {strides = array<i32>} : memref<216x78xbf16, #tpu.memory_space<vmem>>, vector<24x78xbf16>,
    %c0_25 = arith.constant 0 : index
    %c0_26 = arith.constant 0 : index
    %c2 = arith.constant 2 : index
    %15 = vector.load %arg1[%c0_25, %c0_26, %c2] : memref<1x24x100xbf16, #tpu.memory_space<vmem>>, vector<1x24x78xbf16>
    %16 = vector.shape_cast %15 : vector<1x24x78xbf16> to vector<24x78xbf16>
    %c48 = arith.constant 48 : index
    %c0_27 = arith.constant 0 : index
    %17 = vector.load %arg12[%c48, %c0_27] : memref<216x78xbf16, #tpu.memory_space<vmem>>, vector<24x78xbf16>
    tpu.vector_store %arg12[%c48, %c0_27], %16 {strides = array<i32>} : memref<216x78xbf16, #tpu.memory_space<vmem>>, vector<24x78xbf16>,
    %c0_28 = arith.constant 0 : index
    %c0_29 = arith.constant 0 : index
    %c10 = arith.constant 10 : index
    %18 = vector.load %arg1[%c0_28, %c0_29, %c10] : memref<1x24x100xbf16, #tpu.memory_space<vmem>>, vector<1x24x78xbf16>
    %19 = vector.shape_cast %18 : vector<1x24x78xbf16> to vector<24x78xbf16>
    %c72 = arith.constant 72 : index
    %c0_30 = arith.constant 0 : index
    %20 = vector.load %arg12[%c72, %c0_30] : memref<216x78xbf16, #tpu.memory_space<vmem>>, vector<24x78xbf16>
    tpu.vector_store %arg12[%c72, %c0_30], %19 {strides = array<i32>} : memref<216x78xbf16, #tpu.memory_space<vmem>>, vector<24x78xbf16>,
    %c0_31 = arith.constant 0 : index
    %c0_32 = arith.constant 0 : index
    %c11 = arith.constant 11 : index
    %21 = vector.load %arg1[%c0_31, %c0_32, %c11] : memref<1x24x100xbf16, #tpu.memory_space<vmem>>, vector<1x24x78xbf16>
    %22 = vector.shape_cast %21 : vector<1x24x78xbf16> to vector<24x78xbf16>
    %c96 = arith.constant 96 : index
    %c0_33 = arith.constant 0 : index
    %23 = vector.load %arg12[%c96, %c0_33] : memref<216x78xbf16, #tpu.memory_space<vmem>>, vector<24x78xbf16>
    tpu.vector_store %arg12[%c96, %c0_33], %22 {strides = array<i32>} : memref<216x78xbf16, #tpu.memory_space<vmem>>, vector<24x78xbf16>,
    %c0_34 = arith.constant 0 : index
    %c0_35 = arith.constant 0 : index
    %c12 = arith.constant 12 : index
    %24 = vector.load %arg1[%c0_34, %c0_35, %c12] : memref<1x24x100xbf16, #tpu.memory_space<vmem>>, vector<1x24x78xbf16>
    %25 = vector.shape_cast %24 : vector<1x24x78xbf16> to vector<24x78xbf16>
    %c120 = arith.constant 120 : index
    %c0_36 = arith.constant 0 : index
    %26 = vector.load %arg12[%c120, %c0_36] : memref<216x78xbf16, #tpu.memory_space<vmem>>, vector<24x78xbf16>
    tpu.vector_store %arg12[%c120, %c0_36], %25 {strides = array<i32>} : memref<216x78xbf16, #tpu.memory_space<vmem>>, vector<24x78xbf16>,
    %c0_37 = arith.constant 0 : index
    %c0_38 = arith.constant 0 : index
    %c20 = arith.constant 20 : index
    %27 = vector.load %arg1[%c0_37, %c0_38, %c20] : memref<1x24x100xbf16, #tpu.memory_space<vmem>>, vector<1x24x78xbf16>
    %28 = vector.shape_cast %27 : vector<1x24x78xbf16> to vector<24x78xbf16>
    %c144 = arith.constant 144 : index
    %c0_39 = arith.constant 0 : index
    %29 = vector.load %arg12[%c144, %c0_39] : memref<216x78xbf16, #tpu.memory_space<vmem>>, vector<24x78xbf16>
    tpu.vector_store %arg12[%c144, %c0_39], %28 {strides = array<i32>} : memref<216x78xbf16, #tpu.memory_space<vmem>>, vector<24x78xbf16>,
    %c0_40 = arith.constant 0 : index
    %c0_41 = arith.constant 0 : index
    %c21 = arith.constant 21 : index
    %30 = vector.load %arg1[%c0_40, %c0_41, %c21] : memref<1x24x100xbf16, #tpu.memory_space<vmem>>, vector<1x24x78xbf16>
    %31 = vector.shape_cast %30 : vector<1x24x78xbf16> to vector<24x78xbf16>
    %c168 = arith.constant 168 : index
    %c0_42 = arith.constant 0 : index
    %32 = vector.load %arg12[%c168, %c0_42] : memref<216x78xbf16, #tpu.memory_space<vmem>>, vector<24x78xbf16>
    tpu.vector_store %arg12[%c168, %c0_42], %31 {strides = array<i32>} : memref<216x78xbf16, #tpu.memory_space<vmem>>, vector<24x78xbf16>,
    %c0_43 = arith.constant 0 : index
    %c0_44 = arith.constant 0 : index
    %c22 = arith.constant 22 : index
    %33 = vector.load %arg1[%c0_43, %c0_44, %c22] : memref<1x24x100xbf16, #tpu.memory_space<vmem>>, vector<1x24x78xbf16>
    %34 = vector.shape_cast %33 : vector<1x24x78xbf16> to vector<24x78xbf16>
    %c192 = arith.constant 192 : index
    %c0_45 = arith.constant 0 : index
    %35 = vector.load %arg12[%c192, %c0_45] : memref<216x78xbf16, #tpu.memory_space<vmem>>, vector<24x78xbf16>
    tpu.vector_store %arg12[%c192, %c0_45], %34 {strides = array<i32>} : memref<216x78xbf16, #tpu.memory_space<vmem>>, vector<24x78xbf16>,
    %c0_46 = arith.constant 0 : index
    %c0_47 = arith.constant 0 : index
    %36 = vector.load %arg12[%c0_46, %c0_47] : memref<216x78xbf16, #tpu.memory_space<vmem>>, vector<216x78xbf16>
    %cst = arith.constant dense<0.000000e+00> : vector<24x78xf32>
    %37 = tpu.matmul %0, %36, %cst {dimension_numbers = #tpu.dot_dimension_numbers<[1], [0], [0], [1], [0, 0, 1, 1], [], []>} : vector<24x216xbf16>, vector<216x78xbf16>, vector<24x78xf32> -> vector<24x78xf32>
    %38 = vector.broadcast %4 : vector<24x1xf32> to vector<24x78xf32>
    %39 = arith.mulf %37, %38 : vector<24x78xf32>
    %40 = vector.broadcast %5 : vector<24x1xf32> to vector<24x78xf32>
    %41 = arith.addf %39, %40 : vector<24x78xf32>
    %cst_48 = arith.constant 0.000000e+00 : f32
    %42 = vector.broadcast %cst_48 : f32 to vector<24x78xf32>
    %43 = arith.maximumf %41, %42 : vector<24x78xf32>
    %44 = vector.extract_strided_slice %43 {offsets = [0, 0], sizes = [24, 8], strides = [1, 1]} : vector<24x78xf32> to vector<24x8xf32>
    %c0_49 = arith.constant 0 : index
    %c0_50 = arith.constant 0 : index
    %45 = vector.load %arg13[%c0_49, %c0_50] : memref<192x8xf32, #tpu.memory_space<vmem>>, vector<24x8xf32>
    tpu.vector_store %arg13[%c0_49, %c0_50], %44 {strides = array<i32>} : memref<192x8xf32, #tpu.memory_space<vmem>>, vector<24x8xf32>,
    %46 = vector.extract_strided_slice %43 {offsets = [0, 10], sizes = [24, 8], strides = [1, 1]} : vector<24x78xf32> to vector<24x8xf32>
    %c24_51 = arith.constant 24 : index
    %c0_52 = arith.constant 0 : index
    %47 = vector.load %arg13[%c24_51, %c0_52] : memref<192x8xf32, #tpu.memory_space<vmem>>, vector<24x8xf32>
    tpu.vector_store %arg13[%c24_51, %c0_52], %46 {strides = array<i32>} : memref<192x8xf32, #tpu.memory_space<vmem>>, vector<24x8xf32>,
    %48 = vector.extract_strided_slice %43 {offsets = [0, 20], sizes = [24, 8], strides = [1, 1]} : vector<24x78xf32> to vector<24x8xf32>
    %c48_53 = arith.constant 48 : index
    %c0_54 = arith.constant 0 : index
    %49 = vector.load %arg13[%c48_53, %c0_54] : memref<192x8xf32, #tpu.memory_space<vmem>>, vector<24x8xf32>
    tpu.vector_store %arg13[%c48_53, %c0_54], %48 {strides = array<i32>} : memref<192x8xf32, #tpu.memory_space<vmem>>, vector<24x8xf32>,
    %50 = vector.extract_strided_slice %43 {offsets = [0, 30], sizes = [24, 8], strides = [1, 1]} : vector<24x78xf32> to vector<24x8xf32>
    %c72_55 = arith.constant 72 : index
    %c0_56 = arith.constant 0 : index
    %51 = vector.load %arg13[%c72_55, %c0_56] : memref<192x8xf32, #tpu.memory_space<vmem>>, vector<24x8xf32>
    tpu.vector_store %arg13[%c72_55, %c0_56], %50 {strides = array<i32>} : memref<192x8xf32, #tpu.memory_space<vmem>>, vector<24x8xf32>,
    %52 = vector.extract_strided_slice %43 {offsets = [0, 40], sizes = [24, 8], strides = [1, 1]} : vector<24x78xf32> to vector<24x8xf32>
    %c96_57 = arith.constant 96 : index
    %c0_58 = arith.constant 0 : index
    %53 = vector.load %arg13[%c96_57, %c0_58] : memref<192x8xf32, #tpu.memory_space<vmem>>, vector<24x8xf32>
    tpu.vector_store %arg13[%c96_57, %c0_58], %52 {strides = array<i32>} : memref<192x8xf32, #tpu.memory_space<vmem>>, vector<24x8xf32>,
    %54 = vector.extract_strided_slice %43 {offsets = [0, 50], sizes = [24, 8], strides = [1, 1]} : vector<24x78xf32> to vector<24x8xf32>
    %c120_59 = arith.constant 120 : index
    %c0_60 = arith.constant 0 : index
    %55 = vector.load %arg13[%c120_59, %c0_60] : memref<192x8xf32, #tpu.memory_space<vmem>>, vector<24x8xf32>
    tpu.vector_store %arg13[%c120_59, %c0_60], %54 {strides = array<i32>} : memref<192x8xf32, #tpu.memory_space<vmem>>, vector<24x8xf32>,
    %56 = vector.extract_strided_slice %43 {offsets = [0, 60], sizes = [24, 8], strides = [1, 1]} : vector<24x78xf32> to vector<24x8xf32>
    %c144_61 = arith.constant 144 : index
    %c0_62 = arith.constant 0 : index
    %57 = vector.load %arg13[%c144_61, %c0_62] : memref<192x8xf32, #tpu.memory_space<vmem>>, vector<24x8xf32>
    tpu.vector_store %arg13[%c144_61, %c0_62], %56 {strides = array<i32>} : memref<192x8xf32, #tpu.memory_space<vmem>>, vector<24x8xf32>,
    %58 = vector.extract_strided_slice %43 {offsets = [0, 70], sizes = [24, 8], strides = [1, 1]} : vector<24x78xf32> to vector<24x8xf32>
    %c168_63 = arith.constant 168 : index
    %c0_64 = arith.constant 0 : index
    %59 = vector.load %arg13[%c168_63, %c0_64] : memref<192x8xf32, #tpu.memory_space<vmem>>, vector<24x8xf32>
    tpu.vector_store %arg13[%c168_63, %c0_64], %58 {strides = array<i32>} : memref<192x8xf32, #tpu.memory_space<vmem>>, vector<24x8xf32>,
    %c0_65 = arith.constant 0 : index
    %c0_66 = arith.constant 0 : index
    %60 = vector.load %arg13[%c0_65, %c0_66] : memref<192x8xf32, #tpu.memory_space<vmem>>, vector<192x8xf32>
    %cst_67 = arith.constant dense<0.000000e+00> : vector<192x18xf32>
    %61 = tpu.matmul %60, %3, %cst_67 {dimension_numbers = #tpu.dot_dimension_numbers<[1], [0], [0], [1], [0, 0, 1, 1], [], []>} : vector<192x8xf32>, vector<8x18xf32>, vector<192x18xf32> -> vector<192x18xf32>
    %cst_68 = arith.constant 0.000000e+00 : bf16
    %62 = vector.broadcast %cst_68 : bf16 to vector<24x18xbf16>
    %c0_69 = arith.constant 0 : index
    %c0_70 = arith.constant 0 : index
    %63 = vector.load %arg14[%c0_69, %c0_70] : memref<24x324xbf16, #tpu.memory_space<vmem>>, vector<24x18xbf16>
    tpu.vector_store %arg14[%c0_69, %c0_70], %62 {strides = array<i32>} : memref<24x324xbf16, #tpu.memory_space<vmem>>, vector<24x18xbf16>,
    %c0_71 = arith.constant 0 : index
    %c306 = arith.constant 306 : index
    %64 = vector.load %arg14[%c0_71, %c306] : memref<24x324xbf16, #tpu.memory_space<vmem>>, vector<24x18xbf16>
    tpu.vector_store %arg14[%c0_71, %c306], %62 {strides = array<i32>} : memref<24x324xbf16, #tpu.memory_space<vmem>>, vector<24x18xbf16>,
    %65 = vector.extract_strided_slice %61 {offsets = [0, 0], sizes = [24, 18], strides = [1, 1]} : vector<192x18xf32> to vector<24x18xf32>
    %66 = arith.truncf %65 : vector<24x18xf32> to vector<24x18xbf16>
    %c0_72 = arith.constant 0 : index
    %c18 = arith.constant 18 : index
    %67 = vector.load %arg14[%c0_72, %c18] : memref<24x324xbf16, #tpu.memory_space<vmem>>, vector<24x18xbf16>
    tpu.vector_store %arg14[%c0_72, %c18], %66 {strides = array<i32>} : memref<24x324xbf16, #tpu.memory_space<vmem>>, vector<24x18xbf16>,
    %68 = vector.extract_strided_slice %61 {offsets = [0, 0], sizes = [24, 18], strides = [1, 1]} : vector<192x18xf32> to vector<24x18xf32>
    %69 = vector.extract_strided_slice %61 {offsets = [24, 0], sizes = [24, 18], strides = [1, 1]} : vector<192x18xf32> to vector<24x18xf32>
    %cst_73 = arith.constant 7.500000e-01 : f32
    %70 = vector.broadcast %cst_73 : f32 to vector<24x18xf32>
    %71 = arith.mulf %70, %68 : vector<24x18xf32>
    %cst_74 = arith.constant 2.500000e-01 : f32
    %72 = vector.broadcast %cst_74 : f32 to vector<24x18xf32>
    %73 = arith.mulf %72, %69 : vector<24x18xf32>
    %74 = arith.addf %71, %73 : vector<24x18xf32>
    %75 = arith.truncf %74 : vector<24x18xf32> to vector<24x18xbf16>
    %c0_75 = arith.constant 0 : index
    %c36 = arith.constant 36 : index
    %76 = vector.load %arg14[%c0_75, %c36] : memref<24x324xbf16, #tpu.memory_space<vmem>>, vector<24x18xbf16>
    tpu.vector_store %arg14[%c0_75, %c36], %75 {strides = array<i32>} : memref<24x324xbf16, #tpu.memory_space<vmem>>, vector<24x18xbf16>,
    %77 = vector.extract_strided_slice %61 {offsets = [0, 0], sizes = [24, 18], strides = [1, 1]} : vector<192x18xf32> to vector<24x18xf32>
    %78 = vector.extract_strided_slice %61 {offsets = [24, 0], sizes = [24, 18], strides = [1, 1]} : vector<192x18xf32> to vector<24x18xf32>
    %cst_76 = arith.constant 2.500000e-01 : f32
    %79 = vector.broadcast %cst_76 : f32 to vector<24x18xf32>
    %80 = arith.mulf %79, %77 : vector<24x18xf32>
    %cst_77 = arith.constant 7.500000e-01 : f32
    %81 = vector.broadcast %cst_77 : f32 to vector<24x18xf32>
    %82 = arith.mulf %81, %78 : vector<24x18xf32>
    %83 = arith.addf %80, %82 : vector<24x18xf32>
    %84 = arith.truncf %83 : vector<24x18xf32> to vector<24x18xbf16>
    %c0_78 = arith.constant 0 : index
    %c54 = arith.constant 54 : index
    %85 = vector.load %arg14[%c0_78, %c54] : memref<24x324xbf16, #tpu.memory_space<vmem>>, vector<24x18xbf16>
    tpu.vector_store %arg14[%c0_78, %c54], %84 {strides = array<i32>} : memref<24x324xbf16, #tpu.memory_space<vmem>>, vector<24x18xbf16>,
    %86 = vector.extract_strided_slice %61 {offsets = [24, 0], sizes = [24, 18], strides = [1, 1]} : vector<192x18xf32> to vector<24x18xf32>
    %87 = vector.extract_strided_slice %61 {offsets = [48, 0], sizes = [24, 18], strides = [1, 1]} : vector<192x18xf32> to vector<24x18xf32>
    %cst_79 = arith.constant 7.500000e-01 : f32
    %88 = vector.broadcast %cst_79 : f32 to vector<24x18xf32>
    %89 = arith.mulf %88, %86 : vector<24x18xf32>
    %cst_80 = arith.constant 2.500000e-01 : f32
    %90 = vector.broadcast %cst_80 : f32 to vector<24x18xf32>
    %91 = arith.mulf %90, %87 : vector<24x18xf32>
    %92 = arith.addf %89, %91 : vector<24x18xf32>
    %93 = arith.truncf %92 : vector<24x18xf32> to vector<24x18xbf16>
    %c0_81 = arith.constant 0 : index
    %c72_82 = arith.constant 72 : index
    %94 = vector.load %arg14[%c0_81, %c72_82] : memref<24x324xbf16, #tpu.memory_space<vmem>>, vector<24x18xbf16>
    tpu.vector_store %arg14[%c0_81, %c72_82], %93 {strides = array<i32>} : memref<24x324xbf16, #tpu.memory_space<vmem>>, vector<24x18xbf16>,
    %95 = vector.extract_strided_slice %61 {offsets = [24, 0], sizes = [24, 18], strides = [1, 1]} : vector<192x18xf32> to vector<24x18xf32>
    %96 = vector.extract_strided_slice %61 {offsets = [48, 0], sizes = [24, 18], strides = [1, 1]} : vector<192x18xf32> to vector<24x18xf32>
    %cst_83 = arith.constant 2.500000e-01 : f32
    %97 = vector.broadcast %cst_83 : f32 to vector<24x18xf32>
    %98 = arith.mulf %97, %95 : vector<24x18xf32>
    %cst_84 = arith.constant 7.500000e-01 : f32
    %99 = vector.broadcast %cst_84 : f32 to vector<24x18xf32>
    %100 = arith.mulf %99, %96 : vector<24x18xf32>
    %101 = arith.addf %98, %100 : vector<24x18xf32>
    %102 = arith.truncf %101 : vector<24x18xf32> to vector<24x18xbf16>
    %c0_85 = arith.constant 0 : index
    %c90 = arith.constant 90 : index
    %103 = vector.load %arg14[%c0_85, %c90] : memref<24x324xbf16, #tpu.memory_space<vmem>>, vector<24x18xbf16>
    tpu.vector_store %arg14[%c0_85, %c90], %102 {strides = array<i32>} : memref<24x324xbf16, #tpu.memory_space<vmem>>, vector<24x18xbf16>,
    %104 = vector.extract_strided_slice %61 {offsets = [48, 0], sizes = [24, 18], strides = [1, 1]} : vector<192x18xf32> to vector<24x18xf32>
    %105 = vector.extract_strided_slice %61 {offsets = [72, 0], sizes = [24, 18], strides = [1, 1]} : vector<192x18xf32> to vector<24x18xf32>
    %cst_86 = arith.constant 7.500000e-01 : f32
    %106 = vector.broadcast %cst_86 : f32 to vector<24x18xf32>
    %107 = arith.mulf %106, %104 : vector<24x18xf32>
    %cst_87 = arith.constant 2.500000e-01 : f32
    %108 = vector.broadcast %cst_87 : f32 to vector<24x18xf32>
    %109 = arith.mulf %108, %105 : vector<24x18xf32>
    %110 = arith.addf %107, %109 : vector<24x18xf32>
    %111 = arith.truncf %110 : vector<24x18xf32> to vector<24x18xbf16>
    %c0_88 = arith.constant 0 : index
    %c108 = arith.constant 108 : index
    %112 = vector.load %arg14[%c0_88, %c108] : memref<24x324xbf16, #tpu.memory_space<vmem>>, vector<24x18xbf16>
    tpu.vector_store %arg14[%c0_88, %c108], %111 {strides = array<i32>} : memref<24x324xbf16, #tpu.memory_space<vmem>>, vector<24x18xbf16>,
    %113 = vector.extract_strided_slice %61 {offsets = [48, 0], sizes = [24, 18], strides = [1, 1]} : vector<192x18xf32> to vector<24x18xf32>
    %114 = vector.extract_strided_slice %61 {offsets = [72, 0], sizes = [24, 18], strides = [1, 1]} : vector<192x18xf32> to vector<24x18xf32>
    %cst_89 = arith.constant 2.500000e-01 : f32
    %115 = vector.broadcast %cst_89 : f32 to vector<24x18xf32>
    %116 = arith.mulf %115, %113 : vector<24x18xf32>
    %cst_90 = arith.constant 7.500000e-01 : f32
    %117 = vector.broadcast %cst_90 : f32 to vector<24x18xf32>
    %118 = arith.mulf %117, %114 : vector<24x18xf32>
    %119 = arith.addf %116, %118 : vector<24x18xf32>
    %120 = arith.truncf %119 : vector<24x18xf32> to vector<24x18xbf16>
    %c0_91 = arith.constant 0 : index
    %c126 = arith.constant 126 : index
    %121 = vector.load %arg14[%c0_91, %c126] : memref<24x324xbf16, #tpu.memory_space<vmem>>, vector<24x18xbf16>
    tpu.vector_store %arg14[%c0_91, %c126], %120 {strides = array<i32>} : memref<24x324xbf16, #tpu.memory_space<vmem>>, vector<24x18xbf16>,
    %122 = vector.extract_strided_slice %61 {offsets = [72, 0], sizes = [24, 18], strides = [1, 1]} : vector<192x18xf32> to vector<24x18xf32>
    %123 = vector.extract_strided_slice %61 {offsets = [96, 0], sizes = [24, 18], strides = [1, 1]} : vector<192x18xf32> to vector<24x18xf32>
    %cst_92 = arith.constant 7.500000e-01 : f32
    %124 = vector.broadcast %cst_92 : f32 to vector<24x18xf32>
    %125 = arith.mulf %124, %122 : vector<24x18xf32>
    %cst_93 = arith.constant 2.500000e-01 : f32
    %126 = vector.broadcast %cst_93 : f32 to vector<24x18xf32>
    %127 = arith.mulf %126, %123 : vector<24x18xf32>
    %128 = arith.addf %125, %127 : vector<24x18xf32>
    %129 = arith.truncf %128 : vector<24x18xf32> to vector<24x18xbf16>
    %c0_94 = arith.constant 0 : index
    %c144_95 = arith.constant 144 : index
    %130 = vector.load %arg14[%c0_94, %c144_95] : memref<24x324xbf16, #tpu.memory_space<vmem>>, vector<24x18xbf16>
    tpu.vector_store %arg14[%c0_94, %c144_95], %129 {strides = array<i32>} : memref<24x324xbf16, #tpu.memory_space<vmem>>, vector<24x18xbf16>,
    %131 = vector.extract_strided_slice %61 {offsets = [72, 0], sizes = [24, 18], strides = [1, 1]} : vector<192x18xf32> to vector<24x18xf32>
    %132 = vector.extract_strided_slice %61 {offsets = [96, 0], sizes = [24, 18], strides = [1, 1]} : vector<192x18xf32> to vector<24x18xf32>
    %cst_96 = arith.constant 2.500000e-01 : f32
    %133 = vector.broadcast %cst_96 : f32 to vector<24x18xf32>
    %134 = arith.mulf %133, %131 : vector<24x18xf32>
    %cst_97 = arith.constant 7.500000e-01 : f32
    %135 = vector.broadcast %cst_97 : f32 to vector<24x18xf32>
    %136 = arith.mulf %135, %132 : vector<24x18xf32>
    %137 = arith.addf %134, %136 : vector<24x18xf32>
    %138 = arith.truncf %137 : vector<24x18xf32> to vector<24x18xbf16>
    %c0_98 = arith.constant 0 : index
    %c162 = arith.constant 162 : index
    %139 = vector.load %arg14[%c0_98, %c162] : memref<24x324xbf16, #tpu.memory_space<vmem>>, vector<24x18xbf16>
    tpu.vector_store %arg14[%c0_98, %c162], %138 {strides = array<i32>} : memref<24x324xbf16, #tpu.memory_space<vmem>>, vector<24x18xbf16>,
    %140 = vector.extract_strided_slice %61 {offsets = [96, 0], sizes = [24, 18], strides = [1, 1]} : vector<192x18xf32> to vector<24x18xf32>
    %141 = vector.extract_strided_slice %61 {offsets = [120, 0], sizes = [24, 18], strides = [1, 1]} : vector<192x18xf32> to vector<24x18xf32>
    %cst_99 = arith.constant 7.500000e-01 : f32
    %142 = vector.broadcast %cst_99 : f32 to vector<24x18xf32>
    %143 = arith.mulf %142, %140 : vector<24x18xf32>
    %cst_100 = arith.constant 2.500000e-01 : f32
    %144 = vector.broadcast %cst_100 : f32 to vector<24x18xf32>
    %145 = arith.mulf %144, %141 : vector<24x18xf32>
    %146 = arith.addf %143, %145 : vector<24x18xf32>
    %147 = arith.truncf %146 : vector<24x18xf32> to vector<24x18xbf16>
    %c0_101 = arith.constant 0 : index
    %c180 = arith.constant 180 : index
    %148 = vector.load %arg14[%c0_101, %c180] : memref<24x324xbf16, #tpu.memory_space<vmem>>, vector<24x18xbf16>
    tpu.vector_store %arg14[%c0_101, %c180], %147 {strides = array<i32>} : memref<24x324xbf16, #tpu.memory_space<vmem>>, vector<24x18xbf16>,
    %149 = vector.extract_strided_slice %61 {offsets = [96, 0], sizes = [24, 18], strides = [1, 1]} : vector<192x18xf32> to vector<24x18xf32>
    %150 = vector.extract_strided_slice %61 {offsets = [120, 0], sizes = [24, 18], strides = [1, 1]} : vector<192x18xf32> to vector<24x18xf32>
    %cst_102 = arith.constant 2.500000e-01 : f32
    %151 = vector.broadcast %cst_102 : f32 to vector<24x18xf32>
    %152 = arith.mulf %151, %149 : vector<24x18xf32>
    %cst_103 = arith.constant 7.500000e-01 : f32
    %153 = vector.broadcast %cst_103 : f32 to vector<24x18xf32>
    %154 = arith.mulf %153, %150 : vector<24x18xf32>
    %155 = arith.addf %152, %154 : vector<24x18xf32>
    %156 = arith.truncf %155 : vector<24x18xf32> to vector<24x18xbf16>
    %c0_104 = arith.constant 0 : index
    %c198 = arith.constant 198 : index
    %157 = vector.load %arg14[%c0_104, %c198] : memref<24x324xbf16, #tpu.memory_space<vmem>>, vector<24x18xbf16>
    tpu.vector_store %arg14[%c0_104, %c198], %156 {strides = array<i32>} : memref<24x324xbf16, #tpu.memory_space<vmem>>, vector<24x18xbf16>,
    %158 = vector.extract_strided_slice %61 {offsets = [120, 0], sizes = [24, 18], strides = [1, 1]} : vector<192x18xf32> to vector<24x18xf32>
    %159 = vector.extract_strided_slice %61 {offsets = [144, 0], sizes = [24, 18], strides = [1, 1]} : vector<192x18xf32> to vector<24x18xf32>
    %cst_105 = arith.constant 7.500000e-01 : f32
    %160 = vector.broadcast %cst_105 : f32 to vector<24x18xf32>
    %161 = arith.mulf %160, %158 : vector<24x18xf32>
    %cst_106 = arith.constant 2.500000e-01 : f32
    %162 = vector.broadcast %cst_106 : f32 to vector<24x18xf32>
    %163 = arith.mulf %162, %159 : vector<24x18xf32>
    %164 = arith.addf %161, %163 : vector<24x18xf32>
    %165 = arith.truncf %164 : vector<24x18xf32> to vector<24x18xbf16>
    %c0_107 = arith.constant 0 : index
    %c216 = arith.constant 216 : index
    %166 = vector.load %arg14[%c0_107, %c216] : memref<24x324xbf16, #tpu.memory_space<vmem>>, vector<24x18xbf16>
    tpu.vector_store %arg14[%c0_107, %c216], %165 {strides = array<i32>} : memref<24x324xbf16, #tpu.memory_space<vmem>>, vector<24x18xbf16>,
    %167 = vector.extract_strided_slice %61 {offsets = [120, 0], sizes = [24, 18], strides = [1, 1]} : vector<192x18xf32> to vector<24x18xf32>
    %168 = vector.extract_strided_slice %61 {offsets = [144, 0], sizes = [24, 18], strides = [1, 1]} : vector<192x18xf32> to vector<24x18xf32>
    %cst_108 = arith.constant 2.500000e-01 : f32
    %169 = vector.broadcast %cst_108 : f32 to vector<24x18xf32>
    %170 = arith.mulf %169, %167 : vector<24x18xf32>
    %cst_109 = arith.constant 7.500000e-01 : f32
    %171 = vector.broadcast %cst_109 : f32 to vector<24x18xf32>
    %172 = arith.mulf %171, %168 : vector<24x18xf32>
    %173 = arith.addf %170, %172 : vector<24x18xf32>
    %174 = arith.truncf %173 : vector<24x18xf32> to vector<24x18xbf16>
    %c0_110 = arith.constant 0 : index
    %c234 = arith.constant 234 : index
    %175 = vector.load %arg14[%c0_110, %c234] : memref<24x324xbf16, #tpu.memory_space<vmem>>, vector<24x18xbf16>
    tpu.vector_store %arg14[%c0_110, %c234], %174 {strides = array<i32>} : memref<24x324xbf16, #tpu.memory_space<vmem>>, vector<24x18xbf16>,
    %176 = vector.extract_strided_slice %61 {offsets = [144, 0], sizes = [24, 18], strides = [1, 1]} : vector<192x18xf32> to vector<24x18xf32>
    %177 = vector.extract_strided_slice %61 {offsets = [168, 0], sizes = [24, 18], strides = [1, 1]} : vector<192x18xf32> to vector<24x18xf32>
    %cst_111 = arith.constant 7.500000e-01 : f32
    %178 = vector.broadcast %cst_111 : f32 to vector<24x18xf32>
    %179 = arith.mulf %178, %176 : vector<24x18xf32>
    %cst_112 = arith.constant 2.500000e-01 : f32
    %180 = vector.broadcast %cst_112 : f32 to vector<24x18xf32>
    %181 = arith.mulf %180, %177 : vector<24x18xf32>
    %182 = arith.addf %179, %181 : vector<24x18xf32>
    %183 = arith.truncf %182 : vector<24x18xf32> to vector<24x18xbf16>
    %c0_113 = arith.constant 0 : index
    %c252 = arith.constant 252 : index
    %184 = vector.load %arg14[%c0_113, %c252] : memref<24x324xbf16, #tpu.memory_space<vmem>>, vector<24x18xbf16>
    tpu.vector_store %arg14[%c0_113, %c252], %183 {strides = array<i32>} : memref<24x324xbf16, #tpu.memory_space<vmem>>, vector<24x18xbf16>,
    %185 = vector.extract_strided_slice %61 {offsets = [144, 0], sizes = [24, 18], strides = [1, 1]} : vector<192x18xf32> to vector<24x18xf32>
    %186 = vector.extract_strided_slice %61 {offsets = [168, 0], sizes = [24, 18], strides = [1, 1]} : vector<192x18xf32> to vector<24x18xf32>
    %cst_114 = arith.constant 2.500000e-01 : f32
    %187 = vector.broadcast %cst_114 : f32 to vector<24x18xf32>
    %188 = arith.mulf %187, %185 : vector<24x18xf32>
    %cst_115 = arith.constant 7.500000e-01 : f32
    %189 = vector.broadcast %cst_115 : f32 to vector<24x18xf32>
    %190 = arith.mulf %189, %186 : vector<24x18xf32>
    %191 = arith.addf %188, %190 : vector<24x18xf32>
    %192 = arith.truncf %191 : vector<24x18xf32> to vector<24x18xbf16>
    %c0_116 = arith.constant 0 : index
    %c270 = arith.constant 270 : index
    %193 = vector.load %arg14[%c0_116, %c270] : memref<24x324xbf16, #tpu.memory_space<vmem>>, vector<24x18xbf16>
    tpu.vector_store %arg14[%c0_116, %c270], %192 {strides = array<i32>} : memref<24x324xbf16, #tpu.memory_space<vmem>>, vector<24x18xbf16>,
    %194 = vector.extract_strided_slice %61 {offsets = [168, 0], sizes = [24, 18], strides = [1, 1]} : vector<192x18xf32> to vector<24x18xf32>
    %195 = arith.truncf %194 : vector<24x18xf32> to vector<24x18xbf16>
    %c0_117 = arith.constant 0 : index
    %c288 = arith.constant 288 : index
    %196 = vector.load %arg14[%c0_117, %c288] : memref<24x324xbf16, #tpu.memory_space<vmem>>, vector<24x18xbf16>
    tpu.vector_store %arg14[%c0_117, %c288], %195 {strides = array<i32>} : memref<24x324xbf16, #tpu.memory_space<vmem>>, vector<24x18xbf16>,
    %c0_118 = arith.constant 0 : index
    %c0_119 = arith.constant 0 : index
    %197 = vector.load %arg14[%c0_118, %c0_119] : memref<24x324xbf16, #tpu.memory_space<vmem>>, vector<24x286xbf16>
    %c0_120 = arith.constant 0 : index
    %c0_121 = arith.constant 0 : index
    %198 = vector.load %arg15[%c0_120, %c0_121] : memref<216x286xbf16, #tpu.memory_space<vmem>>, vector<24x286xbf16>
    tpu.vector_store %arg15[%c0_120, %c0_121], %197 {strides = array<i32>} : memref<216x286xbf16, #tpu.memory_space<vmem>>, vector<24x286xbf16>,
    %c0_122 = arith.constant 0 : index
    %c1_123 = arith.constant 1 : index
    %199 = vector.load %arg14[%c0_122, %c1_123] : memref<24x324xbf16, #tpu.memory_space<vmem>>, vector<24x286xbf16>
    %c24_124 = arith.constant 24 : index
    %c0_125 = arith.constant 0 : index
    %200 = vector.load %arg15[%c24_124, %c0_125] : memref<216x286xbf16, #tpu.memory_space<vmem>>, vector<24x286xbf16>
    tpu.vector_store %arg15[%c24_124, %c0_125], %199 {strides = array<i32>} : memref<216x286xbf16, #tpu.memory_space<vmem>>, vector<24x286xbf16>,
    %c0_126 = arith.constant 0 : index
    %c2_127 = arith.constant 2 : index
    %201 = vector.load %arg14[%c0_126, %c2_127] : memref<24x324xbf16, #tpu.memory_space<vmem>>, vector<24x286xbf16>
    %c48_128 = arith.constant 48 : index
    %c0_129 = arith.constant 0 : index
    %202 = vector.load %arg15[%c48_128, %c0_129] : memref<216x286xbf16, #tpu.memory_space<vmem>>, vector<24x286xbf16>
    tpu.vector_store %arg15[%c48_128, %c0_129], %201 {strides = array<i32>} : memref<216x286xbf16, #tpu.memory_space<vmem>>, vector<24x286xbf16>,
    %c0_130 = arith.constant 0 : index
    %c18_131 = arith.constant 18 : index
    %203 = vector.load %arg14[%c0_130, %c18_131] : memref<24x324xbf16, #tpu.memory_space<vmem>>, vector<24x286xbf16>
    %c72_132 = arith.constant 72 : index
    %c0_133 = arith.constant 0 : index
    %204 = vector.load %arg15[%c72_132, %c0_133] : memref<216x286xbf16, #tpu.memory_space<vmem>>, vector<24x286xbf16>
    tpu.vector_store %arg15[%c72_132, %c0_133], %203 {strides = array<i32>} : memref<216x286xbf16, #tpu.memory_space<vmem>>, vector<24x286xbf16>,
    %c0_134 = arith.constant 0 : index
    %c19 = arith.constant 19 : index
    %205 = vector.load %arg14[%c0_134, %c19] : memref<24x324xbf16, #tpu.memory_space<vmem>>, vector<24x286xbf16>
    %c96_135 = arith.constant 96 : index
    %c0_136 = arith.constant 0 : index
    %206 = vector.load %arg15[%c96_135, %c0_136] : memref<216x286xbf16, #tpu.memory_space<vmem>>, vector<24x286xbf16>
    tpu.vector_store %arg15[%c96_135, %c0_136], %205 {strides = array<i32>} : memref<216x286xbf16, #tpu.memory_space<vmem>>, vector<24x286xbf16>,
    %c0_137 = arith.constant 0 : index
    %c20_138 = arith.constant 20 : index
    %207 = vector.load %arg14[%c0_137, %c20_138] : memref<24x324xbf16, #tpu.memory_space<vmem>>, vector<24x286xbf16>
    %c120_139 = arith.constant 120 : index
    %c0_140 = arith.constant 0 : index
    %208 = vector.load %arg15[%c120_139, %c0_140] : memref<216x286xbf16, #tpu.memory_space<vmem>>, vector<24x286xbf16>
    tpu.vector_store %arg15[%c120_139, %c0_140], %207 {strides = array<i32>} : memref<216x286xbf16, #tpu.memory_space<vmem>>, vector<24x286xbf16>,
    %c0_141 = arith.constant 0 : index
    %c36_142 = arith.constant 36 : index
    %209 = vector.load %arg14[%c0_141, %c36_142] : memref<24x324xbf16, #tpu.memory_space<vmem>>, vector<24x286xbf16>
    %c144_143 = arith.constant 144 : index
    %c0_144 = arith.constant 0 : index
    %210 = vector.load %arg15[%c144_143, %c0_144] : memref<216x286xbf16, #tpu.memory_space<vmem>>, vector<24x286xbf16>
    tpu.vector_store %arg15[%c144_143, %c0_144], %209 {strides = array<i32>} : memref<216x286xbf16, #tpu.memory_space<vmem>>, vector<24x286xbf16>,
    %c0_145 = arith.constant 0 : index
    %c37 = arith.constant 37 : index
    %211 = vector.load %arg14[%c0_145, %c37] : memref<24x324xbf16, #tpu.memory_space<vmem>>, vector<24x286xbf16>
    %c168_146 = arith.constant 168 : index
    %c0_147 = arith.constant 0 : index
    %212 = vector.load %arg15[%c168_146, %c0_147] : memref<216x286xbf16, #tpu.memory_space<vmem>>, vector<24x286xbf16>
    tpu.vector_store %arg15[%c168_146, %c0_147], %211 {strides = array<i32>} : memref<216x286xbf16, #tpu.memory_space<vmem>>, vector<24x286xbf16>,
    %c0_148 = arith.constant 0 : index
    %c38 = arith.constant 38 : index
    %213 = vector.load %arg14[%c0_148, %c38] : memref<24x324xbf16, #tpu.memory_space<vmem>>, vector<24x286xbf16>
    %c192_149 = arith.constant 192 : index
    %c0_150 = arith.constant 0 : index
    %214 = vector.load %arg15[%c192_149, %c0_150] : memref<216x286xbf16, #tpu.memory_space<vmem>>, vector<24x286xbf16>
    tpu.vector_store %arg15[%c192_149, %c0_150], %213 {strides = array<i32>} : memref<216x286xbf16, #tpu.memory_space<vmem>>, vector<24x286xbf16>,
    %c0_151 = arith.constant 0 : index
    %c0_152 = arith.constant 0 : index
    %215 = vector.load %arg15[%c0_151, %c0_152] : memref<216x286xbf16, #tpu.memory_space<vmem>>, vector<216x286xbf16>
    %cst_153 = arith.constant dense<0.000000e+00> : vector<32x286xf32>
    %216 = tpu.matmul %1, %215, %cst_153 {dimension_numbers = #tpu.dot_dimension_numbers<[1], [0], [0], [1], [0, 0, 1, 1], [], []>} : vector<32x216xbf16>, vector<216x286xbf16>, vector<32x286xf32> -> vector<32x286xf32>
    %217 = vector.broadcast %6 : vector<32x1xf32> to vector<32x286xf32>
    %218 = arith.mulf %216, %217 : vector<32x286xf32>
    %219 = vector.broadcast %7 : vector<32x1xf32> to vector<32x286xf32>
    %220 = arith.addf %218, %219 : vector<32x286xf32>
    %cst_154 = arith.constant 0.000000e+00 : f32
    %221 = vector.broadcast %cst_154 : f32 to vector<32x286xf32>
    %222 = arith.maximumf %220, %221 : vector<32x286xf32>
    %223 = vector.extract_strided_slice %222 {offsets = [0, 0], sizes = [32, 16], strides = [1, 1]} : vector<32x286xf32> to vector<32x16xf32>
    %224 = arith.truncf %223 : vector<32x16xf32> to vector<32x16xbf16>
    %c0_155 = arith.constant 0 : index
    %c0_156 = arith.constant 0 : index
    %225 = vector.load %arg16[%c0_155, %c0_156] : memref<32x256xbf16, #tpu.memory_space<vmem>>, vector<32x16xbf16>
    tpu.vector_store %arg16[%c0_155, %c0_156], %224 {strides = array<i32>} : memref<32x256xbf16, #tpu.memory_space<vmem>>, vector<32x16xbf16>,
    %226 = vector.extract_strided_slice %222 {offsets = [0, 18], sizes = [32, 16], strides = [1, 1]} : vector<32x286xf32> to vector<32x16xf32>
    %227 = arith.truncf %226 : vector<32x16xf32> to vector<32x16xbf16>
    %c0_157 = arith.constant 0 : index
    %c16 = arith.constant 16 : index
    %228 = vector.load %arg16[%c0_157, %c16] : memref<32x256xbf16, #tpu.memory_space<vmem>>, vector<32x16xbf16>
    tpu.vector_store %arg16[%c0_157, %c16], %227 {strides = array<i32>} : memref<32x256xbf16, #tpu.memory_space<vmem>>, vector<32x16xbf16>,
    %229 = vector.extract_strided_slice %222 {offsets = [0, 36], sizes = [32, 16], strides = [1, 1]} : vector<32x286xf32> to vector<32x16xf32>
    %230 = arith.truncf %229 : vector<32x16xf32> to vector<32x16xbf16>
    %c0_158 = arith.constant 0 : index
    %c32 = arith.constant 32 : index
    %231 = vector.load %arg16[%c0_158, %c32] : memref<32x256xbf16, #tpu.memory_space<vmem>>, vector<32x16xbf16>
    tpu.vector_store %arg16[%c0_158, %c32], %230 {strides = array<i32>} : memref<32x256xbf16, #tpu.memory_space<vmem>>, vector<32x16xbf16>,
    %232 = vector.extract_strided_slice %222 {offsets = [0, 54], sizes = [32, 16], strides = [1, 1]} : vector<32x286xf32> to vector<32x16xf32>
    %233 = arith.truncf %232 : vector<32x16xf32> to vector<32x16xbf16>
    %c0_159 = arith.constant 0 : index
    %c48_160 = arith.constant 48 : index
    %234 = vector.load %arg16[%c0_159, %c48_160] : memref<32x256xbf16, #tpu.memory_space<vmem>>, vector<32x16xbf16>
    tpu.vector_store %arg16[%c0_159, %c48_160], %233 {strides = array<i32>} : memref<32x256xbf16, #tpu.memory_space<vmem>>, vector<32x16xbf16>,
    %235 = vector.extract_strided_slice %222 {offsets = [0, 72], sizes = [32, 16], strides = [1, 1]} : vector<32x286xf32> to vector<32x16xf32>
    %236 = arith.truncf %235 : vector<32x16xf32> to vector<32x16xbf16>
    %c0_161 = arith.constant 0 : index
    %c64 = arith.constant 64 : index
    %237 = vector.load %arg16[%c0_161, %c64] : memref<32x256xbf16, #tpu.memory_space<vmem>>, vector<32x16xbf16>
    tpu.vector_store %arg16[%c0_161, %c64], %236 {strides = array<i32>} : memref<32x256xbf16, #tpu.memory_space<vmem>>, vector<32x16xbf16>,
    %238 = vector.extract_strided_slice %222 {offsets = [0, 90], sizes = [32, 16], strides = [1, 1]} : vector<32x286xf32> to vector<32x16xf32>
    %239 = arith.truncf %238 : vector<32x16xf32> to vector<32x16xbf16>
    %c0_162 = arith.constant 0 : index
    %c80 = arith.constant 80 : index
    %240 = vector.load %arg16[%c0_162, %c80] : memref<32x256xbf16, #tpu.memory_space<vmem>>, vector<32x16xbf16>
    tpu.vector_store %arg16[%c0_162, %c80], %239 {strides = array<i32>} : memref<32x256xbf16, #tpu.memory_space<vmem>>, vector<32x16xbf16>,
    %241 = vector.extract_strided_slice %222 {offsets = [0, 108], sizes = [32, 16], strides = [1, 1]} : vector<32x286xf32> to vector<32x16xf32>
    %242 = arith.truncf %241 : vector<32x16xf32> to vector<32x16xbf16>
    %c0_163 = arith.constant 0 : index
    %c96_164 = arith.constant 96 : index
    %243 = vector.load %arg16[%c0_163, %c96_164] : memref<32x256xbf16, #tpu.memory_space<vmem>>, vector<32x16xbf16>
    tpu.vector_store %arg16[%c0_163, %c96_164], %242 {strides = array<i32>} : memref<32x256xbf16, #tpu.memory_space<vmem>>, vector<32x16xbf16>,
    %244 = vector.extract_strided_slice %222 {offsets = [0, 126], sizes = [32, 16], strides = [1, 1]} : vector<32x286xf32> to vector<32x16xf32>
    %245 = arith.truncf %244 : vector<32x16xf32> to vector<32x16xbf16>
    %c0_165 = arith.constant 0 : index
    %c112 = arith.constant 112 : index
    %246 = vector.load %arg16[%c0_165, %c112] : memref<32x256xbf16, #tpu.memory_space<vmem>>, vector<32x16xbf16>
    tpu.vector_store %arg16[%c0_165, %c112], %245 {strides = array<i32>} : memref<32x256xbf16, #tpu.memory_space<vmem>>, vector<32x16xbf16>,
    %247 = vector.extract_strided_slice %222 {offsets = [0, 144], sizes = [32, 16], strides = [1, 1]} : vector<32x286xf32> to vector<32x16xf32>
    %248 = arith.truncf %247 : vector<32x16xf32> to vector<32x16xbf16>
    %c0_166 = arith.constant 0 : index
    %c128 = arith.constant 128 : index
    %249 = vector.load %arg16[%c0_166, %c128] : memref<32x256xbf16, #tpu.memory_space<vmem>>, vector<32x16xbf16>
    tpu.vector_store %arg16[%c0_166, %c128], %248 {strides = array<i32>} : memref<32x256xbf16, #tpu.memory_space<vmem>>, vector<32x16xbf16>,
    %250 = vector.extract_strided_slice %222 {offsets = [0, 162], sizes = [32, 16], strides = [1, 1]} : vector<32x286xf32> to vector<32x16xf32>
    %251 = arith.truncf %250 : vector<32x16xf32> to vector<32x16xbf16>
    %c0_167 = arith.constant 0 : index
    %c144_168 = arith.constant 144 : index
    %252 = vector.load %arg16[%c0_167, %c144_168] : memref<32x256xbf16, #tpu.memory_space<vmem>>, vector<32x16xbf16>
    tpu.vector_store %arg16[%c0_167, %c144_168], %251 {strides = array<i32>} : memref<32x256xbf16, #tpu.memory_space<vmem>>, vector<32x16xbf16>,
    %253 = vector.extract_strided_slice %222 {offsets = [0, 180], sizes = [32, 16], strides = [1, 1]} : vector<32x286xf32> to vector<32x16xf32>
    %254 = arith.truncf %253 : vector<32x16xf32> to vector<32x16xbf16>
    %c0_169 = arith.constant 0 : index
    %c160 = arith.constant 160 : index
    %255 = vector.load %arg16[%c0_169, %c160] : memref<32x256xbf16, #tpu.memory_space<vmem>>, vector<32x16xbf16>
    tpu.vector_store %arg16[%c0_169, %c160], %254 {strides = array<i32>} : memref<32x256xbf16, #tpu.memory_space<vmem>>, vector<32x16xbf16>,
    %256 = vector.extract_strided_slice %222 {offsets = [0, 198], sizes = [32, 16], strides = [1, 1]} : vector<32x286xf32> to vector<32x16xf32>
    %257 = arith.truncf %256 : vector<32x16xf32> to vector<32x16xbf16>
    %c0_170 = arith.constant 0 : index
    %c176 = arith.constant 176 : index
    %258 = vector.load %arg16[%c0_170, %c176] : memref<32x256xbf16, #tpu.memory_space<vmem>>, vector<32x16xbf16>
    tpu.vector_store %arg16[%c0_170, %c176], %257 {strides = array<i32>} : memref<32x256xbf16, #tpu.memory_space<vmem>>, vector<32x16xbf16>,
    %259 = vector.extract_strided_slice %222 {offsets = [0, 216], sizes = [32, 16], strides = [1, 1]} : vector<32x286xf32> to vector<32x16xf32>
    %260 = arith.truncf %259 : vector<32x16xf32> to vector<32x16xbf16>
    %c0_171 = arith.constant 0 : index
    %c192_172 = arith.constant 192 : index
    %261 = vector.load %arg16[%c0_171, %c192_172] : memref<32x256xbf16, #tpu.memory_space<vmem>>, vector<32x16xbf16>
    tpu.vector_store %arg16[%c0_171, %c192_172], %260 {strides = array<i32>} : memref<32x256xbf16, #tpu.memory_space<vmem>>, vector<32x16xbf16>,
    %262 = vector.extract_strided_slice %222 {offsets = [0, 234], sizes = [32, 16], strides = [1, 1]} : vector<32x286xf32> to vector<32x16xf32>
    %263 = arith.truncf %262 : vector<32x16xf32> to vector<32x16xbf16>
    %c0_173 = arith.constant 0 : index
    %c208 = arith.constant 208 : index
    %264 = vector.load %arg16[%c0_173, %c208] : memref<32x256xbf16, #tpu.memory_space<vmem>>, vector<32x16xbf16>
    tpu.vector_store %arg16[%c0_173, %c208], %263 {strides = array<i32>} : memref<32x256xbf16, #tpu.memory_space<vmem>>, vector<32x16xbf16>,
    %265 = vector.extract_strided_slice %222 {offsets = [0, 252], sizes = [32, 16], strides = [1, 1]} : vector<32x286xf32> to vector<32x16xf32>
    %266 = arith.truncf %265 : vector<32x16xf32> to vector<32x16xbf16>
    %c0_174 = arith.constant 0 : index
    %c224 = arith.constant 224 : index
    %267 = vector.load %arg16[%c0_174, %c224] : memref<32x256xbf16, #tpu.memory_space<vmem>>, vector<32x16xbf16>
    tpu.vector_store %arg16[%c0_174, %c224], %266 {strides = array<i32>} : memref<32x256xbf16, #tpu.memory_space<vmem>>, vector<32x16xbf16>,
    %268 = vector.extract_strided_slice %222 {offsets = [0, 270], sizes = [32, 16], strides = [1, 1]} : vector<32x286xf32> to vector<32x16xf32>
    %269 = arith.truncf %268 : vector<32x16xf32> to vector<32x16xbf16>
    %c0_175 = arith.constant 0 : index
    %c240 = arith.constant 240 : index
    %270 = vector.load %arg16[%c0_175, %c240] : memref<32x256xbf16, #tpu.memory_space<vmem>>, vector<32x16xbf16>
    tpu.vector_store %arg16[%c0_175, %c240], %269 {strides = array<i32>} : memref<32x256xbf16, #tpu.memory_space<vmem>>, vector<32x16xbf16>,
    %c0_176 = arith.constant 0 : index
    %c0_177 = arith.constant 0 : index
    %271 = vector.load %arg16[%c0_176, %c0_177] : memref<32x256xbf16, #tpu.memory_space<vmem>>, vector<32x256xbf16>
    %cst_178 = arith.constant dense<0.000000e+00> : vector<41x256xf32>
    %272 = tpu.matmul %2, %271, %cst_178 {dimension_numbers = #tpu.dot_dimension_numbers<[1], [0], [0], [1], [0, 0, 1, 1], [], []>} : vector<41x32xbf16>, vector<32x256xbf16>, vector<41x256xf32> -> vector<41x256xf32>
    %273 = vector.broadcast %8 : vector<41x1xf32> to vector<41x256xf32>
    %274 = arith.addf %272, %273 : vector<41x256xf32>
    %c0_179 = arith.constant 0 : index
    %c0_180 = arith.constant 0 : index
    %c0_181 = arith.constant 0 : index
    %275 = vector.load %arg11[%c0_179, %c0_180, %c0_181] : memref<1x41x256xf32, #tpu.memory_space<vmem>>, vector<1x41x256xf32>
    %276 = vector.shape_cast %275 : vector<1x41x256xf32> to vector<41x256xf32>
    %277 = vector.shape_cast %274 : vector<41x256xf32> to vector<1x41x256xf32>
    tpu.vector_store %arg11[%c0_179, %c0_180, %c0_181], %277 {strides = array<i32>} : memref<1x41x256xf32, #tpu.memory_space<vmem>>, vector<1x41x256xf32>,
    return
  }
  func.func @transform_0(%arg0: i32) -> (i32, i32, i32) {
    %c0_i32 = arith.constant 0 : i32
    %c0_i32_0 = arith.constant 0 : i32
    %c0_i32_1 = arith.constant 0 : i32
    return %arg0, %c0_i32, %c0_i32_0 : i32, i32, i32
  }
  func.func @transform_1(%arg0: i32) -> (i32, i32) {
    %c0_i32 = arith.constant 0 : i32
    %c0_i32_0 = arith.constant 0 : i32
    %c0_i32_1 = arith.constant 0 : i32
    return %c0_i32, %c0_i32_0 : i32, i32
  }
  func.func @transform_2(%arg0: i32) -> (i32, i32) {
    %c0_i32 = arith.constant 0 : i32
    %c0_i32_0 = arith.constant 0 : i32
    %c0_i32_1 = arith.constant 0 : i32
    return %c0_i32, %c0_i32_0 : i32, i32
  }
  func.func @transform_3(%arg0: i32) -> (i32, i32) {
    %c0_i32 = arith.constant 0 : i32
    %c0_i32_0 = arith.constant 0 : i32
    %c0_i32_1 = arith.constant 0 : i32
    return %c0_i32, %c0_i32_0 : i32, i32
  }
  func.func @transform_4(%arg0: i32) -> (i32, i32) {
    %c0_i32 = arith.constant 0 : i32
    %c0_i32_0 = arith.constant 0 : i32
    %c0_i32_1 = arith.constant 0 : i32
    return %c0_i32, %c0_i32_0 : i32, i32
  }
  func.func @transform_5(%arg0: i32) -> (i32, i32) {
    %c0_i32 = arith.constant 0 : i32
    %c0_i32_0 = arith.constant 0 : i32
    %c0_i32_1 = arith.constant 0 : i32
    return %c0_i32, %c0_i32_0 : i32, i32
  }
  func.func @transform_6(%arg0: i32) -> (i32, i32) {
    %c0_i32 = arith.constant 0 : i32
    %c0_i32_0 = arith.constant 0 : i32
    %c0_i32_1 = arith.constant 0 : i32
    return %c0_i32, %c0_i32_0 : i32, i32
  }
  func.func @transform_7(%arg0: i32) -> (i32, i32) {
    %c0_i32 = arith.constant 0 : i32
    %c0_i32_0 = arith.constant 0 : i32
    %c0_i32_1 = arith.constant 0 : i32
    return %c0_i32, %c0_i32_0 : i32, i32
  }
  func.func @transform_8(%arg0: i32) -> (i32, i32) {
    %c0_i32 = arith.constant 0 : i32
    %c0_i32_0 = arith.constant 0 : i32
    %c0_i32_1 = arith.constant 0 : i32
    return %c0_i32, %c0_i32_0 : i32, i32
  }
  func.func @transform_9(%arg0: i32) -> (i32, i32) {
    %c0_i32 = arith.constant 0 : i32
    %c0_i32_0 = arith.constant 0 : i32
    %c0_i32_1 = arith.constant 0 : i32
    return %c0_i32, %c0_i32_0 : i32, i32
  }
  func.func @transform_10(%arg0: i32) -> (i32, i32, i32) {
    %c0_i32 = arith.constant 0 : i32
    %c0_i32_0 = arith.constant 0 : i32
    %c0_i32_1 = arith.constant 0 : i32
    return %arg0, %c0_i32, %c0_i32_0 : i32, i32, i32
  }
}

</mosaic_0001>

<bundles_post_ra>
// kernel: tpu_custom_call.1
= control target key start
LH: loop header
LB: loop body
LE: loop exit
PB: predicated region body
PF: predicated region fallthrough
CT: control target
= control target key end

     0   :  { %s3314_s13 = smov 0   ;;  %s4062_s0 = inlined_call_operand.vmem [shape: bf16[2,24,100], index: 0, kind: input, shape index: {}]   ;;  %s4063_s1 = inlined_call_operand.vmem [shape: bf16[24,216], index: 1, kind: input, shape index: {}]   ;;  %s4064_s2 = inlined_call_operand.vmem [shape: f32[24,1], index: 2, kind: input, shape index: {}]   ;;  %s4065_s3 = inlined_call_operand.vmem [shape: f32[24,1], index: 3, kind: input, shape index: {}]   ;;  %s4066_s4 = inlined_call_operand.vmem [shape: bf16[32,216], index: 4, kind: input, shape index: {}]   ;;  %s4067_s5 = inlined_call_operand.vmem [shape: f32[32,1], index: 5, kind: input, shape index: {}]   ;;  %s4068_s6 = inlined_call_operand.vmem [shape: f32[32,1], index: 6, kind: input, shape index: {}]   ;;  %s4069_s7 = inlined_call_operand.vmem [shape: bf16[41,32], index: 7, kind: input, shape index: {}]   ;;  %s4070_s8 = inlined_call_operand.vmem [shape: f32[41,1], index: 8, kind: input, shape index: {}]   ;;  %s4071_s9 = inlined_call_operand.vmem [shape: f32[8,18], index: 9, kind: input, shape index: {}]   ;;  %s4072_s10 = inlined_call_operand.vmem [shape: f32[2,41,256], index: 10, kind: output, shape index: {}]  }
   0x1 LB: > { %s2854_s14 = sadd.s32 4294967295, %s3220_s13   ;;  %p2858_p0 = scmp.ge.s32.totalorder %s3220_s13, 1  ;;  %s3220_s13 = sphi %s3314_s13, %s20_s13  }
   0x2   : > { %p312_p1 = scmp.lt.s32.totalorder %s3220_s13, 3 }
   0x4   : > { %p313_p2 = pnand %p2858_p0, %p312_p1 }
   0x5   : > { %p350_p3 = scmp.lt.s32.totalorder (!%p313_p2), %s2854_s14, 1  ;;  %v3222_v0 = vmov (!%p313_p2), 0   ;;  %s3223_s19 = smov (!%p313_p2), 127   ;;  %vm398_vm0 = vcmask (!%p313_p2), 633856   ;;  %v3188_v29 = vld [vmem:[%s4063_s1 + $0x4] ss:$8 sps:$4 sm:$0xff] (!%p313_p2)  }
   0x6   : > { %316 = sbr.rel (%p313_p2) target bundleno = 1823 (0x71f), region = 60  ;;  %680 = vmatprep.subr.bf16.mxu0 (!%p313_p2), %v3222_v0  ;;  %3171 = vset.pattern.permute.xlu1 (!%p313_p2), %v3222_v0  ;;  %s3224_s20 = smov (!%p313_p2), 126   ;;  %vm669_vm1 = vcmask (!%p313_p2), 719872   ;;  %v378_v30 = vld [vmem:[%s4065_s3] sm:$0xff] (!%p313_p2)  ;;  %v376_v32 = vld [vmem:[%s4064_s2 + $0x8] sm:$0xff] (!%p313_p2)  ;;  %v377_v33 = vld [vmem:[%s4064_s2 + $0x10] sm:$0xff] (!%p313_p2) }
   0x7   : > { %3170 = vset.pattern.permute.xlu0 (!%p313_p2), %v3222_v0  ;;  %s3225_s21 = smov (!%p313_p2), 118   ;;  %s3226_s22 = smov (!%p313_p2), 117   ;;  %2879 = vmatprep.mubr.msk.bf16.mxu0 (!%p313_p2), %vm669_vm1, %v3188_v29  ;;  %v375_v31 = vld [vmem:[%s4064_s2] sm:$0xff] (!%p313_p2)  ;;  %v379_v34 = vld [vmem:[%s4065_s3 + $0x8] sm:$0xff] (!%p313_p2)  ;;  %v380_v35 = vld [vmem:[%s4065_s3 + $0x10] sm:$0xff] (!%p313_p2)  ;;  %vm676_vm2 = vcmask (!%p313_p2), 1043456  }
   0x8   : > { %s3227_s23 = smov (!%p313_p2), 116   ;;  %s3228_s24 = smov (!%p313_p2), 108   ;;  %vm767_vm3 = vcmask (!%p313_p2), 64512   ;;  %vm1139_vm4 = vcmask (!%p313_p2), 142336   ;;  %vm1166_vm5 = vcmask (!%p313_p2), 289936   ;;  %vm1143_vm6 = vcmask (!%p313_p2), 552336  }
   0x9   : > { %s3229_s25 = smov (!%p313_p2), 107   ;;  %s3230_s26 = smov (!%p313_p2), 106   ;;  %1141 = vst.msk [vmem:[#allocation4 + $0xc] sm:$0xf] (!%p313_p2), %vm1139_vm4, %v3222_v0  ;;  %1140 = vst.msk [vmem:[#allocation4] sm:$0xf] (!%p313_p2), %vm1139_vm4, %v3222_v0 }
   0xa   : > { %s3231_s17 = smov (!%p313_p2), 98   ;;  %s3235_s27 = smov (!%p313_p2), 58   ;;  %1142 = vst.msk [vmem:[#allocation4 + $0x18] sm:$0xf] (!%p313_p2), %vm1139_vm4, %v3222_v0  ;;  %vm1198_vm7 = vcmask (!%p313_p2), 437536   ;;  %vm1230_vm8 = vcmask (!%p313_p2), 585136  }
   0xb   : > { %s3236_s28 = smov (!%p313_p2), 18   ;;  %s3237_s29 = smov (!%p313_p2), 36   ;;  %1144 = vst.msk [vmem:[#allocation4 + $0x8] sm:$0xf] (!%p313_p2), %vm1143_vm6, %v3222_v0  ;;  %1145 = vst.msk [vmem:[#allocation4 + $0x14] sm:$0xf] (!%p313_p2), %vm1143_vm6, %v3222_v0 }
   0xc   : > { %s3238_s30 = smov (!%p313_p2), 54   ;;  %s3239_s11 = smov (!%p313_p2), 90   ;;  %1146 = vst.msk [vmem:[#allocation4 + $0x20] sm:$0xf] (!%p313_p2), %vm1143_vm6, %v3222_v0  ;;  %vm1259_vm9 = vcmask (!%p313_p2), 732736   ;;  %vm1288_vm10 = vcmask (!%p313_p2), 880336  }
   0xd   : > { %s4078_s14 = smov (!%p350_p3, %s2854_s14), 1  ;;  %s3240_s12 = smov 72   ;;  %vm1353_vm11 = vcmask 1044464   ;;  %vm1354_vm12 = vcmask 130052   ;;  %vm1346_vm13 = vcmask 1031168   ;;  %vm1317_vm14 = vcmask 1027936  }
   0xe   : > { %s3123_s15 = smul.u32 12, %s4078_s14  ;;  %s3242_s16 = smov 16   ;;  %vm3645_vm15 = vmor %vm1354_vm12, %vm1353_vm11  ;;  %vm1442_vm4 = vcmask 568736   ;;  %vm1500_vm6 = vcmask 863936   ;;  %vm1596_vm12 = vcmask 257136  }
  0x10   : > { %s3331_s18 = scalar_lea.vmem %s4062_s0, %s3123_s15  ;;  %s3241_s15 = smov 34  }
  0x11   : > { %v402_v1 = vld [vmem:[%s3331_s18] sm:$0xf]  ;;  %v404_v2 = vld [vmem:[%s3331_s18 + $0x8] sm:$0xf]  ;;  %v403_v3 = vld [vmem:[%s3331_s18 + $0x4] sm:$0xf] }
  0x12   : > { %408 = vrot.lane.b32.xlu0 %v402_v1, %s3223_s19  ;;  %412 = vrot.lane.b32.xlu1 %v404_v2, %s3223_s19  ;;  %v420_v4 = vld [vmem:[%s3331_s18] sm:$0xf]  ;;  %v421_v5 = vld [vmem:[%s3331_s18 + $0x4] sm:$0xf] }
  0x13   : > { %v422_v6 = vld [vmem:[%s3331_s18 + $0x8] sm:$0xf]  ;;  %v395_v7 = vld [vmem:[%s3331_s18] sm:$0xf]  ;;  %v396_v8 = vld [vmem:[%s3331_s18 + $0x4] sm:$0xf] }
  0x14   : > { %399 = vst.msk [vmem:[#allocation2] sm:$0xf] %vm398_vm0, %v395_v7  ;;  %v397_v9 = vld [vmem:[%s3331_s18 + $0x8] sm:$0xf]  ;;  %v438_v10 = vld [vmem:[%s3331_s18] sm:$0xf] }
  0x15   : > { %v439_v11 = vld [vmem:[%s3331_s18 + $0x4] sm:$0xf]  ;;  %400 = vst.msk [vmem:[#allocation2 + $0x4] sm:$0xf] %vm398_vm0, %v396_v8  ;;  %401 = vst.msk [vmem:[#allocation2 + $0x8] sm:$0xf] %vm398_vm0, %v397_v9 }
  0x16   : > { %410 = vrot.lane.b32.xlu0 %v403_v3, %s3223_s19  ;;  %426 = vrot.lane.b32.xlu1 %v420_v4, %s3224_s20  ;;  %v440_v12 = vld [vmem:[%s3331_s18 + $0x8] sm:$0xf]  ;;  %v456_v13 = vld [vmem:[%s3331_s18] sm:$0xf] }
  0x17   : > { %v457_v15 = vld [vmem:[%s3331_s18 + $0x4] sm:$0xf]  ;;  %v458_v16 = vld [vmem:[%s3331_s18 + $0x8] sm:$0xf]  ;;  %v474_v17 = vld [vmem:[%s3331_s18] sm:$0xf] }
  0x18   : > { %v475_v18 = vld [vmem:[%s3331_s18 + $0x4] sm:$0xf]  ;;  %v476_v19 = vld [vmem:[%s3331_s18 + $0x8] sm:$0xf]  ;;  %v492_v20 = vld [vmem:[%s3331_s18] sm:$0xf] }
  0x19   : > { %v493_v21 = vld [vmem:[%s3331_s18 + $0x4] sm:$0xf]  ;;  %v494_v22 = vld [vmem:[%s3331_s18 + $0x8] sm:$0xf]  ;;  %v510_v23 = vld [vmem:[%s3331_s18] sm:$0xf] }
  0x1a   : > { %428 = vrot.lane.b32.xlu0 %v421_v5, %s3224_s20  ;;  %430 = vrot.lane.b32.xlu1 %v422_v6, %s3224_s20  ;;  %v511_v24 = vld [vmem:[%s3331_s18 + $0x4] sm:$0xf]  ;;  %v512_v25 = vld [vmem:[%s3331_s18 + $0x8] sm:$0xf] }
  0x1b   : > { %v528_v26 = vld [vmem:[%s3331_s18] sm:$0xf]  ;;  %v529_v27 = vld [vmem:[%s3331_s18 + $0x4] sm:$0xf]  ;;  %v530_v28 = vld [vmem:[%s3331_s18 + $0x8] sm:$0xf] }
  0x1c   : > { %v3172_v14 = vld [vmem:[#allocation2] sm:$0xff]   ;;  %s3232_s18 = smov 88  }
  0x1d   : > { %681 = vmatpush1.bf16.msra.mxu0 %v3172_v14 }
  0x1e   : > { %444 = vrot.lane.b32.xlu0 %v438_v10, %s3225_s21  ;;  %446 = vrot.lane.b32.xlu1 %v439_v11, %s3225_s21  ;;  %v363_v11 = vld [vmem:[%s4063_s1 + $0x10] sm:$0xff] }
  0x1f   : > { %682 = vmatprep.subr.bf16.mxu0 %v3222_v0  ;;  %v2863_v14 = vcombine.low %v363_v11, %v363_v11 }
  0x22   : > { %448 = vrot.lane.b32.xlu0 %v440_v12, %s3225_s21  ;;  %462 = vrot.lane.b32.xlu1 %v456_v13, %s3226_s22  ;;  %v3186_v12 = vld [vmem:[%s4063_s1] ss:$8 sps:$4 sm:$0xff]   ;;  %v2864_v13 = vcombine.high %v363_v11, %v363_v11 }
  0x26   : > { %464 = vrot.lane.b32.xlu0 %v457_v15, %s3226_s22  ;;  %466 = vrot.lane.b32.xlu1 %v458_v16, %s3226_s22  ;;  %v374_v15 = vld [vmem:[%s4071_s9] sm:$0xff]  ;;  %s3233_s22 = smov 78  }
  0x27   : > { %3085 = vmatprep.subr.mxu1 %v374_v15 }
  0x28   : > { %3086 = vmatpush3.msra.mxu1 %v374_v15 }
  0x2a   : > { %480 = vrot.lane.b32.xlu0 %v474_v17, %s3227_s23  ;;  %482 = vrot.lane.b32.xlu1 %v475_v18, %s3227_s23 }
  0x2e   : > { %484 = vrot.lane.b32.xlu0 %v476_v19, %s3227_s23  ;;  %498 = vrot.lane.b32.xlu1 %v492_v20, %s3228_s24 }
  0x32   : > { %500 = vrot.lane.b32.xlu0 %v493_v21, %s3228_s24  ;;  %502 = vrot.lane.b32.xlu1 %v494_v22, %s3228_s24 }
  0x36   : > { %516 = vrot.lane.b32.xlu0 %v510_v23, %s3229_s25  ;;  %518 = vrot.lane.b32.xlu1 %v511_v24, %s3229_s25 }
  0x3a   : > { %520 = vrot.lane.b32.xlu0 %v512_v25, %s3229_s25  ;;  %534 = vrot.lane.b32.xlu1 %v528_v26, %s3230_s26  ;;  %s3234_s25 = smov 68  }
  0x3e   : > { %536 = vrot.lane.b32.xlu0 %v529_v27, %s3230_s26  ;;  %538 = vrot.lane.b32.xlu1 %v530_v28, %s3230_s26 }
  0x42   : > { %748 = vperm.xlu1 %3171, %v378_v30   ;;  %730 = vperm.xlu0 %3170, %v375_v31  }
  0x46   : > { %735 = vperm.xlu1 %3171, %v376_v32   ;;  %740 = vperm.xlu0 %3170, %v377_v33  }
  0x4a   : > { %753 = vperm.xlu1 %3171, %v379_v34   ;;  %758 = vperm.xlu0 %3170, %v380_v35  }
  0x84   : > { %v409_v36 = vpop.permute.xlu0 %408  ;;  %v413_v37 = vpop.permute.xlu1 %412 }
  0x85   : > { %417 = vst.msk [vmem:[#allocation2 + $0xc] sm:$0xf] %vm398_vm0, %v409_v36  ;;  %419 = vst.msk [vmem:[#allocation2 + $0x14] sm:$0xf] %vm398_vm0, %v413_v37 }
  0x88   : > { %v411_v38 = vpop.permute.xlu0 %410  ;;  %v427_v39 = vpop.permute.xlu1 %426 }
  0x89   : > { %418 = vst.msk [vmem:[#allocation2 + $0x10] sm:$0xf] %vm398_vm0, %v411_v38  ;;  %435 = vst.msk [vmem:[#allocation2 + $0x18] sm:$0xf] %vm398_vm0, %v427_v39 }
  0x8c   : > { %v429_v40 = vpop.permute.xlu0 %428  ;;  %v431_v41 = vpop.permute.xlu1 %430  ;;  %v3173_v42 = vld [vmem:[#allocation2 + $0x8] sm:$0xff]  }
  0x8d   : > { %436 = vst.msk [vmem:[#allocation2 + $0x1c] sm:$0xf] %vm398_vm0, %v429_v40  ;;  %437 = vst.msk [vmem:[#allocation2 + $0x20] sm:$0xf] %vm398_vm0, %v431_v41  ;;  %683 = vmatpush1.bf16.msra.mxu0 %v3173_v42 }
  0x8e   : > { %684 = vmatprep.subr.bf16.mxu0 %v3222_v0 }
  0x90   : > { %v445_v43 = vpop.permute.xlu0 %444  ;;  %v447_v44 = vpop.permute.xlu1 %446  ;;  %v3174_v45 = vld [vmem:[#allocation2 + $0x10] sm:$0xff]  }
  0x91   : > { %453 = vst.msk [vmem:[#allocation2 + $0x24] sm:$0xf] %vm398_vm0, %v445_v43  ;;  %454 = vst.msk [vmem:[#allocation2 + $0x28] sm:$0xf] %vm398_vm0, %v447_v44  ;;  %685 = vmatpush1.bf16.msra.mxu0 %v3174_v45 }
  0x92   : > { %686 = vmatprep.subr.bf16.mxu0 %v3222_v0 }
  0x94   : > { %v449_v46 = vpop.permute.xlu0 %448  ;;  %v463_v47 = vpop.permute.xlu1 %462  ;;  %v3175_v48 = vld [vmem:[#allocation2 + $0x18] sm:$0xff]  }
  0x95   : > { %455 = vst.msk [vmem:[#allocation2 + $0x2c] sm:$0xf] %vm398_vm0, %v449_v46  ;;  %471 = vst.msk [vmem:[#allocation2 + $0x30] sm:$0xf] %vm398_vm0, %v463_v47  ;;  %687 = vmatpush1.bf16.msra.mxu0 %v3175_v48 }
  0x96   : > { %688 = vmatprep.subr.bf16.mxu0 %v3222_v0 }
  0x98   : > { %v465_v49 = vpop.permute.xlu0 %464  ;;  %v467_v50 = vpop.permute.xlu1 %466  ;;  %v3176_v51 = vld [vmem:[#allocation2 + $0x20] sm:$0xff]  }
  0x99   : > { %472 = vst.msk [vmem:[#allocation2 + $0x34] sm:$0xf] %vm398_vm0, %v465_v49  ;;  %473 = vst.msk [vmem:[#allocation2 + $0x38] sm:$0xf] %vm398_vm0, %v467_v50  ;;  %689 = vmatpush1.bf16.msra.mxu0 %v3176_v51 }
  0x9a   : > { %690 = vmatprep.subr.bf16.mxu0 %v3222_v0 }
  0x9c   : > { %v481_v52 = vpop.permute.xlu0 %480  ;;  %v483_v53 = vpop.permute.xlu1 %482  ;;  %v3177_v54 = vld [vmem:[#allocation2 + $0x28] sm:$0xff]  }
  0x9d   : > { %489 = vst.msk [vmem:[#allocation2 + $0x3c] sm:$0xf] %vm398_vm0, %v481_v52  ;;  %490 = vst.msk [vmem:[#allocation2 + $0x40] sm:$0xf] %vm398_vm0, %v483_v53  ;;  %691 = vmatpush1.bf16.msra.mxu0 %v3177_v54 }
  0x9e   : > { %692 = vmatprep.subr.bf16.mxu0 %v3222_v0 }
  0xa0   : > { %v485_v55 = vpop.permute.xlu0 %484  ;;  %v499_v56 = vpop.permute.xlu1 %498  ;;  %v3178_v57 = vld [vmem:[#allocation2 + $0x30] sm:$0xff]  }
  0xa1   : > { %491 = vst.msk [vmem:[#allocation2 + $0x44] sm:$0xf] %vm398_vm0, %v485_v55  ;;  %507 = vst.msk [vmem:[#allocation2 + $0x48] sm:$0xf] %vm398_vm0, %v499_v56  ;;  %693 = vmatpush1.bf16.msra.mxu0 %v3178_v57 }
  0xa2   : > { %694 = vmatprep.subr.bf16.mxu0 %v3222_v0 }
  0xa4   : > { %v501_v58 = vpop.permute.xlu0 %500  ;;  %v503_v59 = vpop.permute.xlu1 %502  ;;  %v3179_v60 = vld [vmem:[#allocation2 + $0x38] sm:$0xff]  }
  0xa5   : > { %508 = vst.msk [vmem:[#allocation2 + $0x4c] sm:$0xf] %vm398_vm0, %v501_v58  ;;  %509 = vst.msk [vmem:[#allocation2 + $0x50] sm:$0xf] %vm398_vm0, %v503_v59  ;;  %695 = vmatpush1.bf16.msra.mxu0 %v3179_v60 }
  0xa6   : > { %696 = vmatprep.subr.bf16.mxu0 %v3222_v0 }
  0xa8   : > { %v517_v61 = vpop.permute.xlu0 %516  ;;  %v519_v62 = vpop.permute.xlu1 %518  ;;  %v3180_v63 = vld [vmem:[#allocation2 + $0x40] sm:$0xff]  }
  0xa9   : > { %525 = vst.msk [vmem:[#allocation2 + $0x54] sm:$0xf] %vm398_vm0, %v517_v61  ;;  %526 = vst.msk [vmem:[#allocation2 + $0x58] sm:$0xf] %vm398_vm0, %v519_v62  ;;  %697 = vmatpush1.bf16.msra.mxu0 %v3180_v63 }
  0xaa   : > { %698 = vmatprep.subr.bf16.mxu0 %v3222_v0 }
  0xac   : > { %v521_v1 = vpop.permute.xlu0 %520  ;;  %v535_v2 = vpop.permute.xlu1 %534  ;;  %v3181_v3 = vld [vmem:[#allocation2 + $0x48] sm:$0xff]  }
  0xad   : > { %527 = vst.msk [vmem:[#allocation2 + $0x5c] sm:$0xf] %vm398_vm0, %v521_v1  ;;  %543 = vst.msk [vmem:[#allocation2 + $0x60] sm:$0xf] %vm398_vm0, %v535_v2  ;;  %699 = vmatpush1.bf16.msra.mxu0 %v3181_v3 }
  0xae   : > { %700 = vmatprep.subr.bf16.mxu0 %v3222_v0 }
  0xb0   : > { %v537_v4 = vpop.permute.xlu0 %536  ;;  %v539_v5 = vpop.permute.xlu1 %538  ;;  %v3182_v6 = vld [vmem:[#allocation2 + $0x50] sm:$0xff]  }
  0xb1   : > { %544 = vst.msk [vmem:[#allocation2 + $0x64] sm:$0xf] %vm398_vm0, %v537_v4  ;;  %545 = vst.msk [vmem:[#allocation2 + $0x68] sm:$0xf] %vm398_vm0, %v539_v5  ;;  %701 = vmatpush1.bf16.msra.mxu0 %v3182_v6  ;;  %vm1384_vm0 = vcmask 273536  }
  0xb2   : > { %702 = vmatprep.subr.bf16.mxu0 %v3222_v0 }
  0xb4   : > { %v3183_v7 = vld [vmem:[#allocation2 + $0x58] sm:$0xff]  }
  0xb5   : > { %703 = vmatpush1.bf16.msra.mxu0 %v3183_v7 }
  0xb6   : > { %704 = vmatprep.subr.bf16.mxu0 %v3222_v0 }
  0xb8   : > { %v3184_v8 = vld [vmem:[#allocation2 + $0x60] sm:$0xff]   ;;  %v3185_v9 = vld [vmem:[#allocation2 + $0x68] ss:$0 sps:$4 sm:$0xff]  }
  0xb9   : > { %705 = vmatpush1.bf16.msra.mxu0 %v3184_v8  ;;  %v678_v10 = vsel %vm676_vm2, %v3185_v9, 0 }
  0xba   : > { %706 = vmatprep.subr.bf16.mxu0 %v3222_v0 }
  0xbd   : > { %707 = vmatpush1.bf16.msra.mxu0 %v678_v10 }
  0xbe   : > { %2384 = vmatprep.subr.bf16.mxu0 %v3222_v0 }
  0xc0   : > { %713 = vmatmul.mubr.bf16.vlgmr.msra.gmra.mrb[0].mxu0 %v3186_v12 }
  0xc1   : > { %2880 = vmatprep.mubr.msk.bf16.mxu0 %vm669_vm1, %v2864_v13  ;;  %v749_v16 = vpop.permute.xlu1 %748  ;;  %v731_v17 = vpop.permute.xlu0 %730 }
  0xc5   : > { %v736_v18 = vpop.permute.xlu1 %735  ;;  %v741_v26 = vpop.permute.xlu0 %740 }
  0xc8   : > { %721 = vmatmul.mubr.bf16.gmra.mrb[4].mxu0 %v2863_v14 }
  0xc9   : > { %v754_v27 = vpop.permute.xlu1 %753  ;;  %v759_v34 = vpop.permute.xlu0 %758 }
 0x193   : > { %v714_v19 = vpop.f32.mrb[0].mxu0 }
 0x194   : > { %v743_v20 = vmul.f32 %v731_v17, %v714_v19  ;;  %v716_v21 = vpop.f32.mrb[1].mxu0 }
 0x195   : > { %v717_v22 = vpop.f32.mrb[2].mxu0 }
 0x196   : > { %v761_v23 = vadd.f32 %v749_v16, %v743_v20  ;;  %v744_v24 = vmul.f32 %v736_v18, %v717_v22  ;;  %v719_v25 = vpop.f32.mrb[3].mxu0 }
 0x198   : > { %v764_v28 = vmax.f32 %v761_v23, 0.0  ;;  %v762_v29 = vadd.f32 %v754_v27, %v744_v24 }
 0x19a   : > { %v765_v30 = vmax.f32 %v762_v29, 0.0  ;;  %768 = vst.msk [vmem:[#allocation3] sm:$0xff] %vm767_vm3, %v764_v28  ;;  %774 = vrot.lane.b32.xlu1 %v764_v28, %s3225_s21 }
 0x19b   : > { %v722_v31 = vpop.f32.mrb[4].mxu0 }
 0x19c   : > { %769 = vst.msk [vmem:[#allocation3 + $0x8] sm:$0xff] %vm767_vm3, %v765_v30  ;;  %v745_v32 = vmul.f32 %v741_v26, %v722_v31  ;;  %776 = vrot.lane.b32.xlu0 %v765_v30, %s3225_s21  ;;  %v724_v33 = vpop.f32.mrb[5].mxu0 }
 0x19d   : > { %v725_v35 = vpop.f32.mrb[6].mxu0 }
 0x19e   : > { %v763_v36 = vadd.f32 %v759_v34, %v745_v32  ;;  %v726_v37 = vpop.f32.mrb[7].mxu0 }
 0x1a0   : > { %v766_v38 = vmax.f32 %v763_v36, 0.0  ;;  %786 = vrot.lane.b32.xlu0 %v764_v28, %s3228_s24 }
 0x1a1   : > { %v858_v39 = vld [vmem:[#allocation3] sm:$0xff] }
 0x1a2   : > { %770 = vst.msk [vmem:[#allocation3 + $0x10] sm:$0xff] %vm767_vm3, %v766_v38  ;;  %3087 = vmatprep.mubr.msk.f32.mxu1 %vm767_vm3, %v858_v39  ;;  %778 = vrot.lane.b32.xlu1 %v766_v38, %s3225_s21 }
 0x1a3   : > { %v859_v40 = vld [vmem:[#allocation3 + $0x8] sm:$0xff] }
 0x1a4   : > { %3088 = vmatmul.mubr.msk.f32.vlgmr.msra.gmra.mrb[0].mxu1 %vm767_vm3, %v859_v40  ;;  %790 = vrot.lane.b32.xlu0 %v766_v38, %s3228_s24 }
 0x1a6   : > { %788 = vrot.lane.b32.xlu1 %v765_v30, %s3228_s24 }
 0x1a8   : > { %800 = vrot.lane.b32.xlu0 %v765_v30, %s3231_s17 }
 0x1a9   : > { %v860_v41 = vld [vmem:[#allocation3 + $0x10] sm:$0xff] }
 0x1aa   : > { %798 = vrot.lane.b32.xlu1 %v764_v28, %s3231_s17  ;;  %3090 = vmatprep.mubr.msk.f32.mxu1 %vm767_vm3, %v860_v41 }
 0x1ac   : > { %810 = vrot.lane.b32.xlu0 %v764_v28, %s3232_s18 }
 0x1ae   : > { %802 = vrot.lane.b32.xlu1 %v766_v38, %s3231_s17 }
 0x1b0   : > { %814 = vrot.lane.b32.xlu0 %v766_v38, %s3232_s18 }
 0x1b2   : > { %812 = vrot.lane.b32.xlu1 %v765_v30, %s3232_s18 }
 0x1b4   : > { %824 = vrot.lane.b32.xlu0 %v765_v30, %s3233_s22 }
 0x1b6   : > { %822 = vrot.lane.b32.xlu1 %v764_v28, %s3233_s22 }
 0x1b8   : > { %834 = vrot.lane.b32.xlu0 %v764_v28, %s3234_s25 }
 0x1ba   : > { %826 = vrot.lane.b32.xlu1 %v766_v38, %s3233_s22  ;;  %s3243_s22 = smov 70  }
 0x1bc   : > { %838 = vrot.lane.b32.xlu0 %v766_v38, %s3234_s25 }
 0x1be   : > { %836 = vrot.lane.b32.xlu1 %v765_v30, %s3234_s25  ;;  %s3244_s25 = smov 52  }
 0x1c0   : > { %848 = vrot.lane.b32.xlu0 %v765_v30, %s3235_s27 }
 0x1c2   : > { %846 = vrot.lane.b32.xlu1 %v764_v28, %s3235_s27 }
 0x1c6   : > { %850 = vrot.lane.b32.xlu1 %v766_v38, %s3235_s27  ;;  %s3245_s27 = smov 32  }
 0x20c   : > { %v775_v42 = vpop.permute.xlu1 %774 }
 0x20d   : > { %783 = vst.msk [vmem:[#allocation3 + $0x18] sm:$0xff] %vm767_vm3, %v775_v42 }
 0x20e   : > { %v777_v43 = vpop.permute.xlu0 %776 }
 0x20f   : > { %784 = vst.msk [vmem:[#allocation3 + $0x20] sm:$0xff] %vm767_vm3, %v777_v43 }
 0x212   : > { %v787_v44 = vpop.permute.xlu0 %786 }
 0x213   : > { %795 = vst.msk [vmem:[#allocation3 + $0x30] sm:$0xff] %vm767_vm3, %v787_v44 }
 0x214   : > { %v779_v45 = vpop.permute.xlu1 %778  ;;  %v861_v46 = vld [vmem:[#allocation3 + $0x18] sm:$0xff] }
 0x215   : > { %785 = vst.msk [vmem:[#allocation3 + $0x28] sm:$0xff] %vm767_vm3, %v779_v45  ;;  %3091 = vmatmul.mubr.msk.f32.gmra.mrb[2].mxu1 %vm767_vm3, %v861_v46 }
 0x216   : > { %v791_v47 = vpop.permute.xlu0 %790  ;;  %v862_v48 = vld [vmem:[#allocation3 + $0x20] sm:$0xff] }
 0x217   : > { %797 = vst.msk [vmem:[#allocation3 + $0x40] sm:$0xff] %vm767_vm3, %v791_v47  ;;  %3093 = vmatprep.mubr.msk.f32.mxu1 %vm767_vm3, %v862_v48 }
 0x218   : > { %v789_v49 = vpop.permute.xlu1 %788 }
 0x219   : > { %796 = vst.msk [vmem:[#allocation3 + $0x38] sm:$0xff] %vm767_vm3, %v789_v49 }
 0x21a   : > { %v801_v50 = vpop.permute.xlu0 %800  ;;  %v864_v53 = vld [vmem:[#allocation3 + $0x30] sm:$0xff] }
 0x21b   : > { %808 = vst.msk [vmem:[#allocation3 + $0x50] sm:$0xff] %vm767_vm3, %v801_v50 }
 0x21c   : > { %v799_v51 = vpop.permute.xlu1 %798  ;;  %v863_v52 = vld [vmem:[#allocation3 + $0x28] sm:$0xff] }
 0x21d   : > { %807 = vst.msk [vmem:[#allocation3 + $0x48] sm:$0xff] %vm767_vm3, %v799_v51  ;;  %3094 = vmatmul.mubr.msk.f32.gmra.mrb[4].mxu1 %vm767_vm3, %v863_v52 }
 0x21e   : > { %v811_v54 = vpop.permute.xlu0 %810  ;;  %3096 = vmatprep.mubr.msk.f32.mxu1 %vm767_vm3, %v864_v53  ;;  %v866_v57 = vld [vmem:[#allocation3 + $0x40] sm:$0xff] }
 0x21f   : > { %819 = vst.msk [vmem:[#allocation3 + $0x60] sm:$0xff] %vm767_vm3, %v811_v54 }
 0x220   : > { %v803_v55 = vpop.permute.xlu1 %802  ;;  %v865_v56 = vld [vmem:[#allocation3 + $0x38] sm:$0xff] }
 0x221   : > { %809 = vst.msk [vmem:[#allocation3 + $0x58] sm:$0xff] %vm767_vm3, %v803_v55  ;;  %3097 = vmatmul.mubr.msk.f32.gmra.mrb[6].mxu1 %vm767_vm3, %v865_v56 }
 0x222   : > { %v815_v58 = vpop.permute.xlu0 %814  ;;  %3099 = vmatprep.mubr.msk.f32.mxu1 %vm767_vm3, %v866_v57  ;;  %v868_v61 = vld [vmem:[#allocation3 + $0x50] sm:$0xff] }
 0x223   : > { %821 = vst.msk [vmem:[#allocation3 + $0x70] sm:$0xff] %vm767_vm3, %v815_v58 }
 0x224   : > { %v813_v59 = vpop.permute.xlu1 %812  ;;  %v867_v60 = vld [vmem:[#allocation3 + $0x48] sm:$0xff] }
 0x225   : > { %820 = vst.msk [vmem:[#allocation3 + $0x68] sm:$0xff] %vm767_vm3, %v813_v59  ;;  %3100 = vmatmul.mubr.msk.f32.gmra.mrb[8].mxu1 %vm767_vm3, %v867_v60 }
 0x226   : > { %v825_v62 = vpop.permute.xlu0 %824  ;;  %3102 = vmatprep.mubr.msk.f32.mxu1 %vm767_vm3, %v868_v61  ;;  %v870_v2 = vld [vmem:[#allocation3 + $0x60] sm:$0xff] }
 0x227   : > { %832 = vst.msk [vmem:[#allocation3 + $0x80] sm:$0xff] %vm767_vm3, %v825_v62 }
 0x228   : > { %v823_v63 = vpop.permute.xlu1 %822  ;;  %v869_v1 = vld [vmem:[#allocation3 + $0x58] sm:$0xff] }
 0x229   : > { %831 = vst.msk [vmem:[#allocation3 + $0x78] sm:$0xff] %vm767_vm3, %v823_v63  ;;  %3103 = vmatmul.mubr.msk.f32.gmra.mrb[10].mxu1 %vm767_vm3, %v869_v1 }
 0x22a   : > { %v835_v3 = vpop.permute.xlu0 %834  ;;  %3105 = vmatprep.mubr.msk.f32.mxu1 %vm767_vm3, %v870_v2  ;;  %v872_v6 = vld [vmem:[#allocation3 + $0x70] sm:$0xff] }
 0x22b   : > { %843 = vst.msk [vmem:[#allocation3 + $0x90] sm:$0xff] %vm767_vm3, %v835_v3 }
 0x22c   : > { %v827_v4 = vpop.permute.xlu1 %826  ;;  %v871_v5 = vld [vmem:[#allocation3 + $0x68] sm:$0xff] }
 0x22d   : > { %833 = vst.msk [vmem:[#allocation3 + $0x88] sm:$0xff] %vm767_vm3, %v827_v4  ;;  %3106 = vmatmul.mubr.msk.f32.gmra.mrb[12].mxu1 %vm767_vm3, %v871_v5 }
 0x22e   : > { %v839_v7 = vpop.permute.xlu0 %838  ;;  %3108 = vmatprep.mubr.msk.f32.mxu1 %vm767_vm3, %v872_v6  ;;  %v874_v10 = vld [vmem:[#allocation3 + $0x80] sm:$0xff] }
 0x22f   : > { %845 = vst.msk [vmem:[#allocation3 + $0xa0] sm:$0xff] %vm767_vm3, %v839_v7 }
 0x230   : > { %v837_v8 = vpop.permute.xlu1 %836  ;;  %v873_v9 = vld [vmem:[#allocation3 + $0x78] sm:$0xff] }
 0x231   : > { %844 = vst.msk [vmem:[#allocation3 + $0x98] sm:$0xff] %vm767_vm3, %v837_v8  ;;  %3109 = vmatmul.mubr.msk.f32.gmra.mrb[14].mxu1 %vm767_vm3, %v873_v9 }
 0x232   : > { %v849_v11 = vpop.permute.xlu0 %848  ;;  %3111 = vmatprep.mubr.msk.f32.mxu1 %vm767_vm3, %v874_v10  ;;  %v876_v14 = vld [vmem:[#allocation3 + $0x90] sm:$0xff] }
 0x233   : > { %856 = vst.msk [vmem:[#allocation3 + $0xb0] sm:$0xff] %vm767_vm3, %v849_v11 }
 0x234   : > { %v847_v12 = vpop.permute.xlu1 %846  ;;  %v875_v13 = vld [vmem:[#allocation3 + $0x88] sm:$0xff] }
 0x235   : > { %855 = vst.msk [vmem:[#allocation3 + $0xa8] sm:$0xff] %vm767_vm3, %v847_v12  ;;  %3112 = vmatmul.mubr.msk.f32.gmra.mrb[16].mxu1 %vm767_vm3, %v875_v13 }
 0x236   : > { %3114 = vmatprep.mubr.msk.f32.mxu1 %vm767_vm3, %v876_v14  ;;  %v878_v17 = vld [vmem:[#allocation3 + $0xa0] sm:$0xff] }
 0x238   : > { %v851_v15 = vpop.permute.xlu1 %850  ;;  %v877_v16 = vld [vmem:[#allocation3 + $0x98] sm:$0xff] }
 0x239   : > { %857 = vst.msk [vmem:[#allocation3 + $0xb8] sm:$0xff] %vm767_vm3, %v851_v15  ;;  %3115 = vmatmul.mubr.msk.f32.gmra.mrb[18].mxu1 %vm767_vm3, %v877_v16 }
 0x23a   : > { %3117 = vmatprep.mubr.msk.f32.mxu1 %vm767_vm3, %v878_v17  ;;  %v880_v19 = vld [vmem:[#allocation3 + $0xb0] sm:$0xff] }
 0x23c   : > { %v879_v18 = vld [vmem:[#allocation3 + $0xa8] sm:$0xff] }
 0x23d   : > { %3118 = vmatmul.mubr.msk.f32.gmra.mrb[20].mxu1 %vm767_vm3, %v879_v18 }
 0x23e   : > { %3120 = vmatprep.mubr.msk.f32.mxu1 %vm767_vm3, %v880_v19 }
 0x240   : > { %v881_v20 = vld [vmem:[#allocation3 + $0xb8] sm:$0xff] }
 0x241   : > { %3121 = vmatmul.mubr.msk.f32.gmra.mrb[22].mxu1 %vm767_vm3, %v881_v20  ;;  %vm1413_vm3 = vcmask 421136  }
 0x277   : > { %v3089_v21 = vpop.f32.mrb[0].mxu1 }
 0x278   : > { %v3013_v22 = vpack.c.bf16 %v3089_v21, %v3089_v21  ;;  %v1020_v23 = vpop.f32.mrb[1].mxu1  ;;  %v1171_v44 = vmul.f32 0.75, %v3089_v21  ;;  %v1203_v45 = vmul.f32 0.25, %v3089_v21 }
 0x279   : > { %v3012_v24 = vpack.c.bf16 %v1020_v23, %v1020_v23  ;;  %v1170_v26 = vmul.f32 0.75, %v1020_v23  ;;  %v1202_v27 = vmul.f32 0.25, %v1020_v23 }
 0x27a   : > { %1159 = vrot.lane.b32.xlu1 %v3013_v22, %s3236_s28 }
 0x27b   : > { %1157 = vrot.lane.b32.xlu0 %v3012_v24, %s3236_s28 }
 0x2e8   : > { %v3092_v25 = vpop.f32.mrb[2].mxu1 }
 0x2e9   : > { %v1173_v28 = vmul.f32 0.25, %v3092_v25  ;;  %v1205_v29 = vmul.f32 0.75, %v3092_v25  ;;  %v1030_v30 = vpop.f32.mrb[3].mxu1 }
 0x2ea   : > { %v3014_v31 = vpack.c.bf16 %v1030_v30, %v1030_v30  ;;  %v1172_v39 = vmul.f32 0.75, %v1030_v30  ;;  %v1204_v40 = vmul.f32 0.25, %v1030_v30 }
 0x2eb   : > { %v1176_v32 = vadd.f32 %v1173_v28, %v1170_v26  ;;  %v1208_v33 = vadd.f32 %v1205_v29, %v1202_v27 }
 0x2ec   : > { %v1160_v34 = vpop.permute.xlu1 %1159  ;;  %1161 = vrot.lane.b32.xlu0 %v3014_v31, %s3236_s28  ;;  %s3246_s28 = smov 14  }
 0x2ed   : > { %1168 = vst.msk [vmem:[#allocation4 + $0xc] sm:$0xf] %vm1166_vm5, %v1160_v34  ;;  %v1158_v35 = vpop.permute.xlu0 %1157  ;;  %v3015_v36 = vpack.c.bf16 %v1176_v32, %v1176_v32  ;;  %v3018_v37 = vpack.c.bf16 %v1208_v33, %v1208_v33 }
 0x2ee   : > { %1167 = vst.msk [vmem:[#allocation4] sm:$0xf] %vm1166_vm5, %v1158_v35 }
 0x2ef   : > { %1189 = vrot.lane.b32.xlu1 %v3015_v36, %s3237_s29 }
 0x2f0   : > { %1221 = vrot.lane.b32.xlu0 %v3018_v37, %s3238_s30  ;;  %v3095_v38 = vpop.f32.mrb[4].mxu1 }
 0x2f1   : > { %v1175_v41 = vmul.f32 0.25, %v3095_v38  ;;  %v1207_v42 = vmul.f32 0.75, %v3095_v38  ;;  %v1040_v43 = vpop.f32.mrb[5].mxu1 }
 0x2f2   : > { %v1174_v46 = vmul.f32 0.25, %v1040_v43  ;;  %v1206_v47 = vmul.f32 0.75, %v1040_v43 }
 0x2f3   : > { %v1178_v48 = vadd.f32 %v1175_v41, %v1172_v39  ;;  %v1210_v49 = vadd.f32 %v1207_v42, %v1204_v40 }
 0x2f4   : > { %v1177_v50 = vadd.f32 %v1174_v46, %v1171_v44  ;;  %v1209_v51 = vadd.f32 %v1206_v47, %v1203_v45  ;;  %v3098_v52 = vpop.f32.mrb[6].mxu1 }
 0x2f5   : > { %v1235_v53 = vmul.f32 0.25, %v3098_v52  ;;  %v1264_v54 = vmul.f32 0.75, %v3098_v52  ;;  %v1050_v55 = vpop.f32.mrb[7].mxu1  ;;  %v3020_v56 = vpack.c.bf16 %v1210_v49, %v1210_v49  ;;  %v3017_v57 = vpack.c.bf16 %v1178_v48, %v1178_v48 }
 0x2f6   : > { %v1234_v58 = vmul.f32 0.25, %v1050_v55  ;;  %v1263_v59 = vmul.f32 0.75, %v1050_v55  ;;  %v3019_v5 = vpack.c.bf16 %v1209_v51, %v1209_v51  ;;  %v3016_v6 = vpack.c.bf16 %v1177_v50, %v1177_v50 }
 0x2f7   : > { %v1238_v60 = vadd.f32 %v1235_v53, %v1206_v47  ;;  %v1267_v61 = vadd.f32 %v1264_v54, %v1174_v46  ;;  %1225 = vrot.lane.b32.xlu0 %v3020_v56, %s3238_s30  ;;  %1193 = vrot.lane.b32.xlu1 %v3017_v57, %s3237_s29 }
 0x2f8   : > { %v1237_v62 = vadd.f32 %v1234_v58, %v1205_v29  ;;  %v1266_v63 = vadd.f32 %v1263_v59, %v1173_v28  ;;  %v3101_v1 = vpop.f32.mrb[8].mxu1 }
 0x2f9   : > { %v1292_v2 = vmul.f32 0.25, %v3101_v1  ;;  %v1321_v3 = vmul.f32 0.75, %v3101_v1  ;;  %v1060_v4 = vpop.f32.mrb[9].mxu1  ;;  %v3025_v17 = vpack.c.bf16 %v1267_v61, %v1267_v61  ;;  %v3022_v18 = vpack.c.bf16 %v1238_v60, %v1238_v60 }
 0x2fa   : > { %v1236_v7 = vmul.f32 0.25, %v1060_v4  ;;  %v1265_v8 = vmul.f32 0.75, %v1060_v4  ;;  %v3021_v29 = vpack.c.bf16 %v1237_v62, %v1237_v62 }
 0x2fb   : > { %v1295_v9 = vadd.f32 %v1292_v2, %v1263_v59  ;;  %v1324_v10 = vadd.f32 %v1321_v3, %v1234_v58  ;;  %1223 = vrot.lane.b32.xlu1 %v3019_v5, %s3238_s30  ;;  %1191 = vrot.lane.b32.xlu0 %v3016_v6, %s3237_s29  ;;  %s3247_s29 = smov 124   ;;  %s3249_s30 = smov 109  }
 0x2fc   : > { %v1239_v11 = vadd.f32 %v1236_v7, %v1207_v42  ;;  %v1268_v12 = vadd.f32 %v1265_v8, %v1175_v41  ;;  %v3104_v13 = vpop.f32.mrb[10].mxu1  ;;  %v3024_v41 = vpack.c.bf16 %v1266_v63, %v1266_v63 }
 0x2fd   : > { %v1294_v14 = vmul.f32 0.25, %v3104_v13  ;;  %v1323_v15 = vmul.f32 0.75, %v3104_v13  ;;  %v1070_v16 = vpop.f32.mrb[11].mxu1  ;;  %v3030_v30 = vpack.c.bf16 %v1324_v10, %v1324_v10  ;;  %v3027_v42 = vpack.c.bf16 %v1295_v9, %v1295_v9 }
 0x2fe   : > { %v1293_v19 = vmul.f32 0.25, %v1070_v16  ;;  %v1322_v20 = vmul.f32 0.75, %v1070_v16 }
 0x2ff   : > { %v3523_v21 = vadd.f32 %v1294_v14, %v1265_v8  ;;  %v1326_v22 = vadd.f32 %v1323_v15, %v1236_v7  ;;  %1281 = vrot.lane.b32.xlu0 %v3025_v17, %s3239_s11  ;;  %1252 = vrot.lane.b32.xlu1 %v3022_v18, %s3240_s12 }
 0x300   : > { %v3527_v23 = vadd.f32 %v1293_v19, %v1264_v54  ;;  %v1325_v24 = vadd.f32 %v1322_v20, %v1235_v53  ;;  %v3107_v25 = vpop.f32.mrb[12].mxu1  ;;  %v3026_v53 = vpack.c.bf16 %v1268_v12, %v1268_v12  ;;  %v3023_v54 = vpack.c.bf16 %v1239_v11, %v1239_v11 }
 0x301   : > { %v1360_v26 = vmul.f32 0.25, %v3107_v25  ;;  %v1389_v27 = vmul.f32 0.75, %v3107_v25  ;;  %v1080_v28 = vpop.f32.mrb[13].mxu1 }
 0x302   : > { %v1359_v31 = vmul.f32 0.25, %v1080_v28  ;;  %v1388_v32 = vmul.f32 0.75, %v1080_v28 }
 0x303   : > { %v3529_v33 = vadd.f32 %v1360_v26, %v1322_v20  ;;  %v3531_v34 = vadd.f32 %v1389_v27, %v1293_v19  ;;  %1250 = vrot.lane.b32.xlu1 %v3021_v29, %s3240_s12  ;;  %1337 = vrot.lane.b32.xlu0 %v3030_v30, %s3224_s20 }
 0x304   : > { %v3535_v35 = vadd.f32 %v1359_v31, %v1321_v3  ;;  %v3537_v36 = vadd.f32 %v1388_v32, %v1292_v2  ;;  %v3110_v37 = vpop.f32.mrb[14].mxu1  ;;  %v3032_v2 = vpack.c.bf16 %v1326_v22, %v1326_v22  ;;  %v3031_v3 = vpack.c.bf16 %v1325_v24, %v1325_v24 }
 0x305   : > { %v1417_v38 = vmul.f32 0.25, %v3110_v37  ;;  %v1446_v39 = vmul.f32 0.75, %v3110_v37  ;;  %v1090_v40 = vpop.f32.mrb[15].mxu1 }
 0x306   : > { %v1361_v43 = vmul.f32 0.25, %v1090_v40  ;;  %v1390_v44 = vmul.f32 0.75, %v1090_v40 }
 0x307   : > { %v3539_v45 = vadd.f32 %v1417_v38, %v1388_v32  ;;  %v3541_v46 = vadd.f32 %v1446_v39, %v1359_v31  ;;  %1279 = vrot.lane.b32.xlu1 %v3024_v41, %s3239_s11  ;;  %1308 = vrot.lane.b32.xlu0 %v3027_v42, %s3228_s24 }
 0x308   : > { %v3545_v47 = vadd.f32 %v1361_v43, %v1323_v15  ;;  %v3547_v48 = vadd.f32 %v1390_v44, %v1294_v14  ;;  %v3113_v49 = vpop.f32.mrb[16].mxu1  ;;  %v3029_v14 = vpack.c.bf16 %v3523_v21, %v3523_v21  ;;  %v3028_v15 = vpack.c.bf16 %v3527_v23, %v3527_v23 }
 0x309   : > { %v1419_v50 = vmul.f32 0.25, %v3113_v49  ;;  %v1448_v51 = vmul.f32 0.75, %v3113_v49  ;;  %v1100_v52 = vpop.f32.mrb[17].mxu1  ;;  %v3037_v23 = vpack.c.bf16 %v3531_v34, %v3531_v34  ;;  %v3033_v34 = vpack.c.bf16 %v3535_v35, %v3535_v35 }
 0x30a   : > { %v1418_v55 = vmul.f32 0.25, %v1100_v52  ;;  %v1447_v56 = vmul.f32 0.75, %v1100_v52  ;;  %v3038_v40 = vpack.c.bf16 %v3547_v48, %v3547_v48 }
 0x30b   : > { %v3549_v57 = vadd.f32 %v1419_v50, %v1390_v44  ;;  %v3551_v58 = vadd.f32 %v1448_v51, %v1361_v43  ;;  %1283 = vrot.lane.b32.xlu1 %v3026_v53, %s3239_s11  ;;  %1254 = vrot.lane.b32.xlu0 %v3023_v54, %s3240_s12  ;;  %s3250_s12 = smov 92  }
 0x30c   : > { %v3555_v59 = vadd.f32 %v1418_v55, %v1389_v27  ;;  %v3557_v60 = vadd.f32 %v1447_v56, %v1360_v26  ;;  %v3116_v61 = vpop.f32.mrb[18].mxu1  ;;  %v3034_v27 = vpack.c.bf16 %v3529_v33, %v3529_v33  ;;  %v3042_v33 = vpack.c.bf16 %v3541_v46, %v3541_v46 }
 0x30d   : > { %v1476_v62 = vmul.f32 0.25, %v3116_v61  ;;  %v1505_v63 = vmul.f32 0.75, %v3116_v61  ;;  %v1110_v1 = vpop.f32.mrb[19].mxu1  ;;  %v3041_v35 = vpack.c.bf16 %v3549_v57, %v3549_v57  ;;  %v3044_v42 = vpack.c.bf16 %v3551_v58, %v3551_v58 }
 0x30e   : > { %v1475_v4 = vmul.f32 0.25, %v1110_v1  ;;  %v1504_v5 = vmul.f32 0.75, %v1110_v1  ;;  %v3040_v41 = vpack.c.bf16 %v3555_v59, %v3555_v59  ;;  %v3043_v43 = vpack.c.bf16 %v3557_v60, %v3557_v60 }
 0x30f   : > { %v3559_v6 = vadd.f32 %v1476_v62, %v1447_v56  ;;  %v3561_v7 = vadd.f32 %v1505_v63, %v1418_v55  ;;  %1341 = vrot.lane.b32.xlu0 %v3032_v2, %s3224_s20  ;;  %1339 = vrot.lane.b32.xlu1 %v3031_v3, %s3224_s20 }
 0x310   : > { %v3565_v8 = vadd.f32 %v1475_v4, %v1446_v39  ;;  %v3567_v9 = vadd.f32 %v1504_v5, %v1417_v38  ;;  %v3569_v10 = vpop.f32.mrb[20].mxu1  ;;  %v3036_v38 = vpack.c.bf16 %v3537_v36, %v3537_v36  ;;  %v3039_v39 = vpack.c.bf16 %v3539_v45, %v3539_v45 }
 0x311   : > { %v1533_v11 = vmul.f32 0.25, %v3569_v10  ;;  %v1571_v12 = vmul.f32 0.75, %v3569_v10  ;;  %v1120_v13 = vpop.f32.mrb[21].mxu1  ;;  %v3035_v36 = vpack.c.bf16 %v3545_v47, %v3545_v47  ;;  %v3049_v44 = vpack.c.bf16 %v3561_v7, %v3561_v7 }
 0x312   : > { %v1477_v16 = vmul.f32 0.25, %v1120_v13  ;;  %v1506_v17 = vmul.f32 0.75, %v1120_v13  ;;  %v3046_v45 = vpack.c.bf16 %v3559_v6, %v3559_v6  ;;  %v3057_v46 = vpack.c.bf16 %v3569_v10, %v3569_v10 }
 0x313   : > { %1312 = vrot.lane.b32.xlu0 %v3029_v14, %s3228_s24  ;;  %1310 = vrot.lane.b32.xlu1 %v3028_v15, %s3228_s24  ;;  %v1574_v18 = vadd.f32 %v1571_v12, %v1475_v4  ;;  %v1536_v19 = vadd.f32 %v1533_v11, %v1504_v5  ;;  %v3045_v47 = vpack.c.bf16 %v3565_v8, %v3565_v8 }
 0x314   : > { %v1480_v20 = vadd.f32 %v1477_v16, %v1448_v51  ;;  %v3579_v22 = vadd.f32 %v1506_v17, %v1419_v50  ;;  %v3581_v24 = vpop.f32.mrb[22].mxu1  ;;  %v3048_v48 = vpack.c.bf16 %v3567_v9, %v3567_v9 }
 0x315   : > { %v1535_v25 = vmul.f32 0.25, %v3581_v24  ;;  %v1573_v21 = vmul.f32 0.75, %v3581_v24  ;;  %v3585_v26 = vpop.f32.mrb[23].mxu1  ;;  %v3054_v49 = vpack.c.bf16 %v1574_v18, %v1574_v18  ;;  %v3051_v50 = vpack.c.bf16 %v1536_v19, %v1536_v19 }
 0x316   : > { %v1534_v28 = vmul.f32 0.25, %v3585_v26  ;;  %v1572_v29 = vmul.f32 0.75, %v3585_v26  ;;  %v3047_v51 = vpack.c.bf16 %v1480_v20, %v1480_v20  ;;  %v3050_v52 = vpack.c.bf16 %v3579_v22, %v3579_v22 }
 0x317   : > { %1406 = vrot.lane.b32.xlu1 %v3037_v23, %s3241_s15  ;;  %1377 = vrot.lane.b32.xlu0 %v3034_v27, %s3242_s16  ;;  %v1538_v30 = vadd.f32 %v1535_v25, %v1506_v17  ;;  %v1576_v37 = vadd.f32 %v1573_v21, %v1477_v16  ;;  %v3058_v56 = vpack.c.bf16 %v3585_v26, %v3585_v26 }
 0x318   : > { %v1537_v31 = vadd.f32 %v1534_v28, %v1505_v63  ;;  %v1575_v32 = vadd.f32 %v1572_v29, %v1476_v62  ;;  %v3059_v58 = vpack.c.bf16 %v3581_v24, %v3581_v24 }
 0x319   : > { %v3053_v54 = vpack.c.bf16 %v1538_v30, %v1538_v30  ;;  %v3056_v57 = vpack.c.bf16 %v1576_v37, %v1576_v37 }
 0x31a   : > { %v3052_v53 = vpack.c.bf16 %v1537_v31, %v1537_v31  ;;  %v3055_v55 = vpack.c.bf16 %v1575_v32, %v1575_v32 }
 0x31b   : > { %1404 = vrot.lane.b32.xlu0 %v3036_v38, %s3241_s15  ;;  %1375 = vrot.lane.b32.xlu1 %v3033_v34, %s3242_s16 }
 0x31f   : > { %1462 = vrot.lane.b32.xlu0 %v3042_v33, %s3243_s22  ;;  %1433 = vrot.lane.b32.xlu1 %v3039_v39, %s3244_s25 }
 0x323   : > { %1408 = vrot.lane.b32.xlu0 %v3038_v40, %s3241_s15  ;;  %1379 = vrot.lane.b32.xlu1 %v3035_v36, %s3242_s16  ;;  %s3251_s15 = smov 91   ;;  %s3258_s16 = smov 102  }
 0x327   : > { %1437 = vrot.lane.b32.xlu1 %v3041_v35, %s3244_s25  ;;  %1435 = vrot.lane.b32.xlu0 %v3040_v41, %s3244_s25 }
 0x32b   : > { %1466 = vrot.lane.b32.xlu1 %v3044_v42, %s3243_s22  ;;  %1464 = vrot.lane.b32.xlu0 %v3043_v43, %s3243_s22 }
 0x32f   : > { %1522 = vrot.lane.b32.xlu0 %v3049_v44, %s3230_s26  ;;  %1493 = vrot.lane.b32.xlu1 %v3046_v45, %s3232_s18 }
 0x333   : > { %1491 = vrot.lane.b32.xlu0 %v3045_v47, %s3232_s18  ;;  %1610 = vrot.lane.b32.xlu1 %v3057_v46, %s3245_s27 }
 0x337   : > { %1520 = vrot.lane.b32.xlu1 %v3048_v48, %s3230_s26  ;;  %1587 = vrot.lane.b32.xlu0 %v3054_v49, %s3246_s28 }
 0x33b   : > { %1549 = vrot.lane.b32.xlu1 %v3051_v50, %s3247_s29  ;;  %1495 = vrot.lane.b32.xlu0 %v3047_v51, %s3232_s18  ;;  %s3248_s18 = smov 110  }
 0x33f   : > { %1524 = vrot.lane.b32.xlu1 %v3050_v52, %s3230_s26  ;;  %1551 = vrot.lane.b32.xlu0 %v3052_v53, %s3247_s29 }
 0x343   : > { %1553 = vrot.lane.b32.xlu1 %v3053_v54, %s3247_s29  ;;  %1589 = vrot.lane.b32.xlu0 %v3055_v55, %s3246_s28 }
 0x347   : > { %1591 = vrot.lane.b32.xlu1 %v3056_v57, %s3246_s28  ;;  %1612 = vrot.lane.b32.xlu0 %v3058_v56, %s3245_s27  ;;  %s3253_s28 = smov 120  }
 0x34b   : > { %1614 = vrot.lane.b32.xlu1 %v3059_v58, %s3245_s27  ;;  %s3252_s27 = smov 100  }
 0x35e   : > { %v1162_v59 = vpop.permute.xlu0 %1161 }
 0x35f   : > { %1169 = vst.msk [vmem:[#allocation4 + $0x18] sm:$0xf] %vm1166_vm5, %v1162_v59  ;;  %vm1471_vm5 = vcmask 716336  }
 0x361   : > { %v1190_v60 = vpop.permute.xlu1 %1189 }
 0x362   : > { %1199 = vst.msk [vmem:[#allocation4] sm:$0xf] %vm1198_vm7, %v1190_v60  ;;  %v1222_v61 = vpop.permute.xlu0 %1221 }
 0x363   : > { %1231 = vst.msk [vmem:[#allocation4] sm:$0xf] %vm1230_vm8, %v1222_v61 }
 0x369   : > { %v1226_v62 = vpop.permute.xlu0 %1225  ;;  %v1194_v63 = vpop.permute.xlu1 %1193 }
 0x36a   : > { %1201 = vst.msk [vmem:[#allocation4 + $0x18] sm:$0xf] %vm1198_vm7, %v1194_v63 }
 0x36b   : > { %1233 = vst.msk [vmem:[#allocation4 + $0x18] sm:$0xf] %vm1230_vm8, %v1226_v62 }
 0x36d   : > { %v1224_v1 = vpop.permute.xlu1 %1223  ;;  %v1192_v2 = vpop.permute.xlu0 %1191 }
 0x36e   : > { %1200 = vst.msk [vmem:[#allocation4 + $0xc] sm:$0xf] %vm1198_vm7, %v1192_v2  ;;  %vm1529_vm7 = vcmask 1011536  }
 0x36f   : > { %1232 = vst.msk [vmem:[#allocation4 + $0xc] sm:$0xf] %vm1230_vm8, %v1224_v1  ;;  %vm1565_vm8 = vcmask 1044448  }
 0x371   : > { %v1282_v3 = vpop.permute.xlu0 %1281  ;;  %v1253_v4 = vpop.permute.xlu1 %1252 }
 0x372   : > { %1261 = vst.msk [vmem:[#allocation4 + $0xc] sm:$0xf] %vm1259_vm9, %v1253_v4 }
 0x373   : > { %1290 = vst.msk [vmem:[#allocation4 + $0xc] sm:$0xf] %vm1288_vm10, %v1282_v3 }
 0x375   : > { %v1251_v5 = vpop.permute.xlu1 %1250  ;;  %v1338_v6 = vpop.permute.xlu0 %1337 }
 0x376   : > { %1260 = vst.msk [vmem:[#allocation4] sm:$0xf] %vm1259_vm9, %v1251_v5  ;;  %v1343_v7 = vrot.slane %v1338_v6, 4 }
 0x378   : > { %v1347_v11 = vsel %vm1346_vm13, %v1343_v7, %v1338_v6 }
 0x379   : > { %v1280_v8 = vpop.permute.xlu1 %1279  ;;  %v1309_v10 = vpop.permute.xlu0 %1308 }
 0x37a   : > { %1289 = vst.msk [vmem:[#allocation4] sm:$0xf] %vm1288_vm10, %v1280_v8 }
 0x37b   : > { %1318 = vst.msk [vmem:[#allocation4] sm:$0xf] %vm1317_vm14, %v1309_v10 }
 0x37c   : > { %1356 = vst.msk [vmem:[#allocation4] sm:$0xff] %vm3645_vm15, %v1347_v11 }
 0x37d   : > { %v1284_v12 = vpop.permute.xlu1 %1283  ;;  %v1255_v13 = vpop.permute.xlu0 %1254 }
 0x37e   : > { %1262 = vst.msk [vmem:[#allocation4 + $0x18] sm:$0xf] %vm1259_vm9, %v1255_v13  ;;  %vm1566_vm9 = vcmask 113668  }
 0x37f   : > { %1291 = vst.msk [vmem:[#allocation4 + $0x18] sm:$0xf] %vm1288_vm10, %v1284_v12  ;;  %vm1558_vm10 = vcmask 1014784   ;;  %vm3677_vm11 = vmor %vm1566_vm9, %vm1565_vm8  ;;  %vm2531_vm8 = vcmask 392448   ;;  %vm2540_vm9 = vcmask 523648  }
 0x381   : > { %v1342_v14 = vpop.permute.xlu0 %1341  ;;  %v1340_v15 = vpop.permute.xlu1 %1339 }
 0x382   : > { %v1345_v16 = vrot.slane %v1342_v14, 4  ;;  %v1344_v17 = vrot.slane %v1340_v15, 4 }
 0x384   : > { %v1349_v20 = vsel %vm1346_vm13, %v1345_v16, %v1342_v14  ;;  %v1348_v22 = vsel %vm1346_vm13, %v1344_v17, %v1340_v15 }
 0x385   : > { %v1313_v18 = vpop.permute.xlu0 %1312  ;;  %v1311_v19 = vpop.permute.xlu1 %1310 }
 0x386   : > { %1320 = vst.msk [vmem:[#allocation4 + $0x18] sm:$0xf] %vm1317_vm14, %v1313_v18  ;;  %1319 = vst.msk [vmem:[#allocation4 + $0xc] sm:$0xf] %vm1317_vm14, %v1311_v19  ;;  %vm1619_vm14 = vcmask 404736  }
 0x387   : > { %1358 = vst.msk [vmem:[#allocation4 + $0x18] sm:$0xff] %vm3645_vm15, %v1349_v20  ;;  %1357 = vst.msk [vmem:[#allocation4 + $0xc] sm:$0xff] %vm3645_vm15, %v1348_v22  ;;  %vm1630_vm15 = vcmask 240640  }
 0x389   : > { %v1407_v24 = vpop.permute.xlu1 %1406  ;;  %v1378_v25 = vpop.permute.xlu0 %1377 }
 0x38a   : > { %1386 = vst.msk [vmem:[#allocation4 + $0x10] sm:$0xf] %vm1384_vm0, %v1378_v25 }
 0x38b   : > { %1415 = vst.msk [vmem:[#allocation4 + $0x10] sm:$0xf] %vm1413_vm3, %v1407_v24 }
 0x38d   : > { %v1405_v21 = vpop.permute.xlu0 %1404  ;;  %v1376_v26 = vpop.permute.xlu1 %1375 }
 0x38e   : > { %1385 = vst.msk [vmem:[#allocation4 + $0x4] sm:$0xf] %vm1384_vm0, %v1376_v26  ;;  %v3207_v26 = vld [vmem:[%s4066_s4 + $0x4] ss:$8 sps:$4 sm:$0xff]  }
 0x38f   : > { %1414 = vst.msk [vmem:[#allocation4 + $0x4] sm:$0xf] %vm1413_vm3, %v1405_v21  ;;  %3002 = vmatprep.mubr.msk.bf16.mxu0 %vm669_vm1, %v3207_v26  ;;  %3000 = vmatprep.mubr.msk.bf16.mxu1 %vm669_vm1, %v3207_v26 }
 0x391   : > { %v1463_v23 = vpop.permute.xlu0 %1462  ;;  %v1434_v27 = vpop.permute.xlu1 %1433 }
 0x392   : > { %1443 = vst.msk [vmem:[#allocation4 + $0x4] sm:$0xf] %vm1442_vm4, %v1434_v27  ;;  %v381_v27 = vld [vmem:[%s4067_s5] sm:$0xff] }
 0x393   : > { %1472 = vst.msk [vmem:[#allocation4 + $0x4] sm:$0xf] %vm1471_vm5, %v1463_v23 }
 0x395   : > { %v1409_v28 = vpop.permute.xlu0 %1408  ;;  %v1380_v29 = vpop.permute.xlu1 %1379 }
 0x396   : > { %1387 = vst.msk [vmem:[#allocation4 + $0x1c] sm:$0xf] %vm1384_vm0, %v1380_v29  ;;  %v385_v29 = vld [vmem:[%s4068_s6] sm:$0xff]  ;;  %vm1668_vm0 = vcmask 1039360  }
 0x397   : > { %1416 = vst.msk [vmem:[#allocation4 + $0x1c] sm:$0xf] %vm1413_vm3, %v1409_v28  ;;  %v382_v28 = vld [vmem:[%s4067_s5 + $0x8] sm:$0xff]  ;;  %vm1765_vm3 = vcmask 900096  }
 0x399   : > { %v1438_v30 = vpop.permute.xlu1 %1437  ;;  %v1436_v31 = vpop.permute.xlu0 %1435 }
 0x39a   : > { %1445 = vst.msk [vmem:[#allocation4 + $0x1c] sm:$0xf] %vm1442_vm4, %v1438_v30  ;;  %1444 = vst.msk [vmem:[#allocation4 + $0x10] sm:$0xf] %vm1442_vm4, %v1436_v31  ;;  %v386_v30 = vld [vmem:[%s4068_s6 + $0x8] sm:$0xff]  ;;  %v383_v31 = vld [vmem:[%s4067_s5 + $0x10] sm:$0xff] }
 0x39b   : > { %vm1814_vm4 = vcmask 891904  }
 0x39d   : > { %v1467_v32 = vpop.permute.xlu1 %1466  ;;  %v1465_v37 = vpop.permute.xlu0 %1464 }
 0x39e   : > { %1474 = vst.msk [vmem:[#allocation4 + $0x1c] sm:$0xf] %vm1471_vm5, %v1467_v32  ;;  %1473 = vst.msk [vmem:[#allocation4 + $0x10] sm:$0xf] %vm1471_vm5, %v1465_v37  ;;  %v384_v32 = vld [vmem:[%s4067_s5 + $0x18] sm:$0xff]  ;;  %v387_v37 = vld [vmem:[%s4068_s6 + $0x10] sm:$0xff] }
 0x39f   : > { %vm1863_vm5 = vcmask 883712  }
 0x3a1   : > { %v1523_v38 = vpop.permute.xlu0 %1522  ;;  %v1494_v34 = vpop.permute.xlu1 %1493 }
 0x3a2   : > { %1502 = vst.msk [vmem:[#allocation4 + $0x10] sm:$0xf] %vm1500_vm6, %v1494_v34 }
 0x3a3   : > { %1531 = vst.msk [vmem:[#allocation4 + $0x10] sm:$0xf] %vm1529_vm7, %v1523_v38  ;;  %v388_v38 = vld [vmem:[%s4068_s6 + $0x18] sm:$0xff] }
 0x3a5   : > { %v1492_v33 = vpop.permute.xlu0 %1491  ;;  %v1611_v39 = vpop.permute.xlu1 %1610 }
 0x3a6   : > { %1501 = vst.msk [vmem:[#allocation4 + $0x4] sm:$0xf] %vm1500_vm6, %v1492_v33 }
 0x3a9   : > { %v1521_v40 = vpop.permute.xlu1 %1520  ;;  %v1588_v36 = vpop.permute.xlu0 %1587 }
 0x3aa   : > { %1530 = vst.msk [vmem:[#allocation4 + $0x4] sm:$0xf] %vm1529_vm7, %v1521_v40 }
 0x3ad   : > { %v1550_v35 = vpop.permute.xlu1 %1549  ;;  %v1496_v41 = vpop.permute.xlu0 %1495 }
 0x3ae   : > { %v1555_v43 = vrot.slane %v1550_v35, 4  ;;  %1503 = vst.msk [vmem:[#allocation4 + $0x1c] sm:$0xf] %vm1500_vm6, %v1496_v41  ;;  %vm1912_vm6 = vcmask 752640  }
 0x3b0   : > { %v1559_v44 = vsel %vm1558_vm10, %v1555_v43, %v1550_v35 }
 0x3b1   : > { %1568 = vst.msk [vmem:[#allocation4 + $0x4] sm:$0xff] %vm3677_vm11, %v1559_v44  ;;  %v1525_v45 = vpop.permute.xlu1 %1524  ;;  %v1552_v46 = vpop.permute.xlu0 %1551 }
 0x3b2   : > { %1532 = vst.msk [vmem:[#allocation4 + $0x1c] sm:$0xf] %vm1529_vm7, %v1525_v45  ;;  %v1556_v47 = vrot.slane %v1552_v46, 4  ;;  %vm1961_vm7 = vcmask 744448  }
 0x3b3   : > { %1597 = vst.msk [vmem:[#allocation4 + $0x8] sm:$0xf] %vm1596_vm12, %v1588_v36 }
 0x3b4   : > { %1620 = vst.msk [vmem:[#allocation4 + $0x8] sm:$0xf] %vm1619_vm14, %v1611_v39  ;;  %v1560_v48 = vsel %vm1558_vm10, %v1556_v47, %v1552_v46 }
 0x3b5   : > { %1569 = vst.msk [vmem:[#allocation4 + $0x10] sm:$0xff] %vm3677_vm11, %v1560_v48  ;;  %v1554_v49 = vpop.permute.xlu1 %1553  ;;  %v1590_v50 = vpop.permute.xlu0 %1589 }
 0x3b6   : > { %v1557_v51 = vrot.slane %v1554_v49, 4  ;;  %1598 = vst.msk [vmem:[#allocation4 + $0x14] sm:$0xf] %vm1596_vm12, %v1590_v50 }
 0x3b8   : > { %v1561_v52 = vsel %vm1558_vm10, %v1557_v51, %v1554_v49  ;;  %v3693_v53 = vld [vmem:[#allocation4] sm:$0xff]  ;;  %vm2549_vm10 = vcmask 654848  }
 0x3b9   : > { %1570 = vst.msk [vmem:[#allocation4 + $0x1c] sm:$0xff] %vm3677_vm11, %v1561_v52  ;;  %v1592_v54 = vpop.permute.xlu1 %1591  ;;  %1648 = vrot.lane.b32.xlu0 %v3693_v53, %s3223_s19  ;;  %v1613_v55 = vpop.permute.xlu0 %1612  ;;  %vm2558_vm11 = vcmask 786048  }
 0x3ba   : > { %1599 = vst.msk [vmem:[#allocation4 + $0x20] sm:$0xf] %vm1596_vm12, %v1592_v54  ;;  %vm2567_vm12 = vcmask 917248  }
 0x3bb   : > { %v1624_v56 = vld [vmem:[#allocation4 + $0x8] sm:$0xf]  ;;  %1621 = vst.msk [vmem:[#allocation4 + $0x14] sm:$0xf] %vm1619_vm14, %v1613_v55 }
 0x3bc   : > { %v1637_v57 = vld [vmem:[#allocation4 + $0x8] sm:$0xf]  ;;  %1631 = vst.msk [vmem:[#allocation5 + $0x8] sm:$0xf] %vm1630_vm15, %v1624_v56  ;;  %v3703_v58 = vld [vmem:[#allocation4 + $0xc] sm:$0xff] }
 0x3bd   : > { %1650 = vrot.lane.b32.xlu1 %v1637_v57, %s3223_s19  ;;  %v1615_v59 = vpop.permute.xlu1 %1614  ;;  %1698 = vrot.lane.b32.xlu0 %v3693_v53, %s3224_s20  ;;  %v2957_v60 = vcombine.low %v3693_v53, %v3703_v58  ;;  %v2958_v61 = vcombine.high %v3693_v53, %v3703_v58  ;;  %v1687_v62 = vld [vmem:[#allocation4 + $0x8] sm:$0xf] }
 0x3be   : > { %1622 = vst.msk [vmem:[#allocation4 + $0x20] sm:$0xf] %vm1619_vm14, %v1615_v59  ;;  %v1735_v2 = vld [vmem:[#allocation4 + $0x8] sm:$0xf]  ;;  %vm2650_vm14 = vcmask 818176  }
 0x3bf   : > { %2331 = vmatprep.subr.bf16.mxu1 %v2958_v61  ;;  %v1784_v4 = vld [vmem:[#allocation4 + $0x8] sm:$0xf] }
 0x3c0   : > { %2332 = vmatpush1.bf16.msra.mxu1 %v2957_v60  ;;  %v3713_v63 = vld [vmem:[#allocation4 + $0x18] sm:$0xff]  ;;  %v1833_v6 = vld [vmem:[#allocation4 + $0x8] sm:$0xf] }
 0x3c1   : > { %1700 = vrot.lane.b32.xlu1 %v1687_v62, %s3224_s20  ;;  %1746 = vrot.lane.b32.xlu0 %v3693_v53, %s3248_s18  ;;  %v1882_v7 = vld [vmem:[#allocation4 + $0x8] sm:$0xf] }
 0x3c2   : > { %v1626_v1 = vld [vmem:[#allocation4 + $0x14] sm:$0xf]  ;;  %v1931_v16 = vld [vmem:[#allocation4 + $0x8] sm:$0xf] }
 0x3c3   : > { %1633 = vst.msk [vmem:[#allocation5 + $0x14] sm:$0xf] %vm1630_vm15, %v1626_v1  ;;  %v1639_v14 = vld [vmem:[#allocation4 + $0x14] sm:$0xf]  ;;  %v1980_v24 = vld [vmem:[#allocation4 + $0x8] sm:$0xf] }
 0x3c4   : > { %v1689_v15 = vld [vmem:[#allocation4 + $0x14] sm:$0xf] }
 0x3c5   : > { %1748 = vrot.lane.b32.xlu1 %v1735_v2, %s3248_s18  ;;  %v1628_v3 = vld [vmem:[#allocation4 + $0x20] sm:$0xf]  ;;  %1795 = vrot.lane.b32.xlu0 %v3693_v53, %s3249_s30  ;;  %v1737_v17 = vld [vmem:[#allocation4 + $0x14] sm:$0xf] }
 0x3c6   : > { %1635 = vst.msk [vmem:[#allocation5 + $0x20] sm:$0xf] %vm1630_vm15, %v1628_v3  ;;  %v1641_v8 = vld [vmem:[#allocation4 + $0x20] sm:$0xf]  ;;  %v1786_v18 = vld [vmem:[#allocation4 + $0x14] sm:$0xf] }
 0x3c7   : > { %v1691_v9 = vld [vmem:[#allocation4 + $0x20] sm:$0xf]  ;;  %v1835_v20 = vld [vmem:[#allocation4 + $0x14] sm:$0xf] }
 0x3c8   : > { %v1739_v10 = vld [vmem:[#allocation4 + $0x20] sm:$0xf]  ;;  %v1884_v22 = vld [vmem:[#allocation4 + $0x14] sm:$0xf] }
 0x3c9   : > { %1797 = vrot.lane.b32.xlu1 %v1784_v4, %s3249_s30  ;;  %1844 = vrot.lane.b32.xlu0 %v3693_v53, %s3228_s24  ;;  %v1788_v11 = vld [vmem:[#allocation4 + $0x20] sm:$0xf]  ;;  %v1933_v25 = vld [vmem:[#allocation4 + $0x14] sm:$0xf] }
 0x3ca   : > { %v3191_v5 = vld [vmem:[#allocation5 + $0x8] ss:$12 sps:$4 sm:$0xff]   ;;  %v1837_v12 = vld [vmem:[#allocation4 + $0x20] sm:$0xf]  ;;  %v1982_v21 = vld [vmem:[#allocation4 + $0x14] sm:$0xf] }
 0x3cb   : > { %2385 = vmatpush1.bf16.msra.mxu0 %v3191_v5  ;;  %v1886_v13 = vld [vmem:[#allocation4 + $0x20] sm:$0xf] }
 0x3cc   : > { %2386 = vmatprep.subr.bf16.mxu0 %v3222_v0  ;;  %v1935_v19 = vld [vmem:[#allocation4 + $0x20] sm:$0xf] }
 0x3cd   : > { %1846 = vrot.lane.b32.xlu1 %v1833_v6, %s3228_s24  ;;  %1893 = vrot.lane.b32.xlu0 %v3693_v53, %s3250_s12  ;;  %v1984_v23 = vld [vmem:[#allocation4 + $0x20] sm:$0xf] }
 0x3d1   : > { %1895 = vrot.lane.b32.xlu1 %v1882_v7, %s3250_s12  ;;  %1656 = vrot.lane.b32.xlu0 %v3713_v63, %s3223_s19 }
 0x3d5   : > { %1658 = vrot.lane.b32.xlu1 %v1641_v8, %s3223_s19  ;;  %1706 = vrot.lane.b32.xlu0 %v3713_v63, %s3224_s20 }
 0x3d9   : > { %1708 = vrot.lane.b32.xlu1 %v1691_v9, %s3224_s20  ;;  %1754 = vrot.lane.b32.xlu0 %v3713_v63, %s3248_s18 }
 0x3dd   : > { %1756 = vrot.lane.b32.xlu1 %v1739_v10, %s3248_s18  ;;  %1803 = vrot.lane.b32.xlu0 %v3713_v63, %s3249_s30 }
 0x3e1   : > { %1805 = vrot.lane.b32.xlu1 %v1788_v11, %s3249_s30  ;;  %1852 = vrot.lane.b32.xlu0 %v3713_v63, %s3228_s24 }
 0x3e5   : > { %1854 = vrot.lane.b32.xlu1 %v1837_v12, %s3228_s24  ;;  %1901 = vrot.lane.b32.xlu0 %v3713_v63, %s3250_s12 }
 0x3e9   : > { %1903 = vrot.lane.b32.xlu1 %v1886_v13, %s3250_s12  ;;  %1652 = vrot.lane.b32.xlu0 %v3703_v58, %s3223_s19 }
 0x3ed   : > { %1654 = vrot.lane.b32.xlu1 %v1639_v14, %s3223_s19  ;;  %1702 = vrot.lane.b32.xlu0 %v3703_v58, %s3224_s20  ;;  %s3257_s19 = smov 104  }
 0x3f1   : > { %1704 = vrot.lane.b32.xlu1 %v1689_v15, %s3224_s20  ;;  %1942 = vrot.lane.b32.xlu0 %v3693_v53, %s3251_s15 }
 0x3f5   : > { %1944 = vrot.lane.b32.xlu1 %v1931_v16, %s3251_s15  ;;  %1750 = vrot.lane.b32.xlu0 %v3703_v58, %s3248_s18 }
 0x3f9   : > { %1752 = vrot.lane.b32.xlu1 %v1737_v17, %s3248_s18  ;;  %1799 = vrot.lane.b32.xlu0 %v3703_v58, %s3249_s30 }
 0x3fd   : > { %1801 = vrot.lane.b32.xlu1 %v1786_v18, %s3249_s30  ;;  %1848 = vrot.lane.b32.xlu0 %v3703_v58, %s3228_s24  ;;  %s3254_s30 = smov 122  }
 0x401   : > { %1952 = vrot.lane.b32.xlu1 %v1935_v19, %s3251_s15  ;;  %1897 = vrot.lane.b32.xlu0 %v3703_v58, %s3250_s12 }
 0x405   : > { %1850 = vrot.lane.b32.xlu1 %v1835_v20, %s3228_s24  ;;  %1946 = vrot.lane.b32.xlu0 %v3703_v58, %s3251_s15 }
 0x409   : > { %1899 = vrot.lane.b32.xlu1 %v1884_v22, %s3250_s12  ;;  %1950 = vrot.lane.b32.xlu0 %v3713_v63, %s3251_s15  ;;  %s3255_s12 = smov 114  }
 0x40d   : > { %1993 = vrot.lane.b32.xlu1 %v1980_v24, %s3239_s11  ;;  %1991 = vrot.lane.b32.xlu0 %v3693_v53, %s3239_s11 }
 0x411   : > { %1948 = vrot.lane.b32.xlu1 %v1933_v25, %s3251_s15  ;;  %1995 = vrot.lane.b32.xlu0 %v3703_v58, %s3239_s11  ;;  %s3256_s15 = smov 112  }
 0x415   : > { %1997 = vrot.lane.b32.xlu1 %v1982_v21, %s3239_s11  ;;  %1999 = vrot.lane.b32.xlu0 %v3713_v63, %s3239_s11 }
 0x419   : > { %2001 = vrot.lane.b32.xlu1 %v1984_v23, %s3239_s11  ;;  %2435 = vperm.xlu0 %3170, %v381_v27  }
 0x41d   : > { %2440 = vperm.xlu1 %3171, %v382_v28   ;;  %2467 = vperm.xlu0 %3170, %v385_v29  }
 0x421   : > { %2472 = vperm.xlu1 %3171, %v386_v30   ;;  %2445 = vperm.xlu0 %3170, %v383_v31  }
 0x425   : > { %2450 = vperm.xlu1 %3171, %v384_v32   ;;  %2477 = vperm.xlu0 %3170, %v387_v37  }
 0x429   : > { %2482 = vperm.xlu1 %3171, %v388_v38  }
 0x42b   : > { %v1649_v34 = vpop.permute.xlu0 %1648 }
 0x42c   : > { %v1660_v39 = vrot.slane %v1649_v34, 4 }
 0x42f   : > { %v1651_v33 = vpop.permute.xlu1 %1650  ;;  %v1699_v36 = vpop.permute.xlu0 %1698 }
 0x430   : > { %v1661_v40 = vrot.slane %v1651_v33, 4  ;;  %1681 = vst.msk [vmem:[#allocation5 + $0x2c] sm:$0xf] %vm1630_vm15, %v1651_v33  ;;  %v1710_v43 = vrot.slane %v1699_v36, 4 }
 0x432   : > { %v1667_v35 = vsel %vm676_vm2, %v1660_v39, %v1661_v40 }
 0x433   : > { %v1669_v41 = vsel %vm1668_vm0, %v1649_v34, %v1667_v35  ;;  %v1701_v42 = vpop.permute.xlu1 %1700  ;;  %v1747_v47 = vpop.permute.xlu0 %1746 }
 0x434   : > { %v1711_v44 = vrot.slane %v1701_v42, 4  ;;  %1729 = vst.msk [vmem:[#allocation5 + $0x50] sm:$0xf] %vm1630_vm15, %v1701_v42  ;;  %v2960_v45 = vcombine.low %v3713_v63, %v1669_v41  ;;  %v2961_v46 = vcombine.high %v3713_v63, %v1669_v41  ;;  %v1758_v52 = vrot.slane %v1747_v47, 4 }
 0x436   : > { %v1716_v48 = vsel %vm676_vm2, %v1710_v43, %v1711_v44  ;;  %2333 = vmatprep.subr.bf16.mxu1 %v2961_v46 }
 0x437   : > { %v3815_v49 = vsel %vm1346_vm13, %v1699_v36, %v1716_v48  ;;  %v1749_v50 = vpop.permute.xlu1 %1748  ;;  %v3192_v51 = vld [vmem:[#allocation5 + $0x20] ss:$12 sps:$4 sm:$0xff]   ;;  %2334 = vmatpush1.bf16.msra.mxu1 %v2960_v45  ;;  %v1796_v54 = vpop.permute.xlu0 %1795 }
 0x438   : > { %v1759_v53 = vrot.slane %v1749_v50, 4  ;;  %1778 = vst.msk [vmem:[#allocation5 + $0x74] sm:$0xf] %vm1630_vm15, %v1749_v50  ;;  %2387 = vmatpush1.bf16.msra.mxu0 %v3192_v51  ;;  %v1807_v58 = vrot.slane %v1796_v54, 4 }
 0x439   : > { %2388 = vmatprep.subr.bf16.mxu0 %v3222_v0 }
 0x43a   : > { %v1764_v55 = vsel %vm676_vm2, %v1758_v52, %v1759_v53 }
 0x43b   : > { %v3821_v56 = vsel %vm1765_vm3, %v1747_v47, %v1764_v55  ;;  %v1798_v57 = vpop.permute.xlu1 %1797  ;;  %v1845_v60 = vpop.permute.xlu0 %1844 }
 0x43c   : > { %v1808_v59 = vrot.slane %v1798_v57, 4  ;;  %1827 = vst.msk [vmem:[#allocation5 + $0x98] sm:$0xf] %vm1630_vm15, %v1798_v57  ;;  %v1856_v1 = vrot.slane %v1845_v60, 4 }
 0x43e   : > { %v1813_v61 = vsel %vm676_vm2, %v1807_v58, %v1808_v59 }
 0x43f   : > { %v3826_v62 = vsel %vm1814_vm4, %v1796_v54, %v1813_v61  ;;  %v1847_v63 = vpop.permute.xlu1 %1846  ;;  %v1894_v3 = vpop.permute.xlu0 %1893 }
 0x440   : > { %v1857_v2 = vrot.slane %v1847_v63, 4  ;;  %1876 = vst.msk [vmem:[#allocation5 + $0xbc] sm:$0xf] %vm1630_vm15, %v1847_v63  ;;  %v1905_v7 = vrot.slane %v1894_v3, 4 }
 0x442   : > { %v1862_v4 = vsel %vm676_vm2, %v1856_v1, %v1857_v2 }
 0x443   : > { %v3831_v5 = vsel %vm1863_vm5, %v1845_v60, %v1862_v4  ;;  %v1896_v6 = vpop.permute.xlu1 %1895  ;;  %v1657_v9 = vpop.permute.xlu0 %1656 }
 0x444   : > { %v1906_v8 = vrot.slane %v1896_v6, 4  ;;  %1925 = vst.msk [vmem:[#allocation5 + $0xe0] sm:$0xf] %vm1630_vm15, %v1896_v6  ;;  %v1664_v13 = vrot.slane %v1657_v9, 4 }
 0x446   : > { %v1911_v10 = vsel %vm676_vm2, %v1905_v7, %v1906_v8 }
 0x447   : > { %v3836_v11 = vsel %vm1912_vm6, %v1894_v3, %v1911_v10  ;;  %v1659_v12 = vpop.permute.xlu1 %1658  ;;  %v1707_v15 = vpop.permute.xlu0 %1706 }
 0x448   : > { %v1665_v14 = vrot.slane %v1659_v12, 4  ;;  %1685 = vst.msk [vmem:[#allocation5 + $0x44] sm:$0xf] %vm1630_vm15, %v1659_v12  ;;  %v1714_v19 = vrot.slane %v1707_v15, 4 }
 0x44a   : > { %v1672_v16 = vsel %vm676_vm2, %v1664_v13, %v1665_v14 }
 0x44b   : > { %v1673_v17 = vsel %vm1668_vm0, %v1657_v9, %v1672_v16  ;;  %v1709_v18 = vpop.permute.xlu1 %1708  ;;  %v1755_v22 = vpop.permute.xlu0 %1754 }
 0x44c   : > { %v1715_v20 = vrot.slane %v1709_v18, 4  ;;  %1733 = vst.msk [vmem:[#allocation5 + $0x68] sm:$0xf] %vm1630_vm15, %v1709_v18  ;;  %v1762_v26 = vrot.slane %v1755_v22, 4 }
 0x44e   : > { %v1720_v24 = vsel %vm676_vm2, %v1714_v19, %v1715_v20 }
 0x44f   : > { %v3844_v25 = vsel %vm1346_vm13, %v1707_v15, %v1720_v24  ;;  %v1757_v21 = vpop.permute.xlu1 %1756  ;;  %v1804_v27 = vpop.permute.xlu0 %1803 }
 0x450   : > { %v1763_v23 = vrot.slane %v1757_v21, 4  ;;  %1782 = vst.msk [vmem:[#allocation5 + $0x8c] sm:$0xf] %vm1630_vm15, %v1757_v21  ;;  %v1811_v31 = vrot.slane %v1804_v27, 4  ;;  %v2970_v12 = vcombine.high %v3844_v25, %v3821_v56  ;;  %v2969_v18 = vcombine.low %v3844_v25, %v3821_v56 }
 0x452   : > { %v1769_v28 = vsel %vm676_vm2, %v1762_v26, %v1763_v23 }
 0x453   : > { %v3849_v29 = vsel %vm1765_vm3, %v1755_v22, %v1769_v28  ;;  %v1806_v30 = vpop.permute.xlu1 %1805  ;;  %v1853_v37 = vpop.permute.xlu0 %1852  ;;  %v3195_v24 = vld [vmem:[#allocation5 + $0x68] ss:$12 sps:$4 sm:$0xff]  }
 0x454   : > { %v1812_v32 = vrot.slane %v1806_v30, 4  ;;  %1831 = vst.msk [vmem:[#allocation5 + $0xb0] sm:$0xf] %vm1630_vm15, %v1806_v30  ;;  %v1860_v39 = vrot.slane %v1853_v37, 4 }
 0x456   : > { %v1818_v38 = vsel %vm676_vm2, %v1811_v31, %v1812_v32 }
 0x457   : > { %v3854_v34 = vsel %vm1814_vm4, %v1804_v27, %v1818_v38  ;;  %v1855_v33 = vpop.permute.xlu1 %1854  ;;  %v1902_v36 = vpop.permute.xlu0 %1901 }
 0x458   : > { %v1861_v40 = vrot.slane %v1855_v33, 4  ;;  %1880 = vst.msk [vmem:[#allocation5 + $0xd4] sm:$0xf] %vm1630_vm15, %v1855_v33  ;;  %v1909_v43 = vrot.slane %v1902_v36, 4 }
 0x45a   : > { %v1867_v35 = vsel %vm676_vm2, %v1860_v39, %v1861_v40 }
 0x45b   : > { %v3859_v41 = vsel %vm1863_vm5, %v1853_v37, %v1867_v35  ;;  %v1904_v42 = vpop.permute.xlu1 %1903  ;;  %v1653_v45 = vpop.permute.xlu0 %1652 }
 0x45c   : > { %v1910_v44 = vrot.slane %v1904_v42, 4  ;;  %1929 = vst.msk [vmem:[#allocation5 + $0xf8] sm:$0xf] %vm1630_vm15, %v1904_v42  ;;  %v1662_v50 = vrot.slane %v1653_v45, 4 }
 0x45e   : > { %v1916_v46 = vsel %vm676_vm2, %v1909_v43, %v1910_v44 }
 0x45f   : > { %v3864_v47 = vsel %vm1912_vm6, %v1902_v36, %v1916_v46  ;;  %v1655_v48 = vpop.permute.xlu1 %1654  ;;  %v1703_v52 = vpop.permute.xlu0 %1702 }
 0x460   : > { %v1663_v51 = vrot.slane %v1655_v48, 4  ;;  %1683 = vst.msk [vmem:[#allocation5 + $0x38] sm:$0xf] %vm1630_vm15, %v1655_v48  ;;  %v1712_v57 = vrot.slane %v1703_v52, 4 }
 0x462   : > { %v1670_v53 = vsel %vm676_vm2, %v1662_v50, %v1663_v51 }
 0x463   : > { %v1671_v54 = vsel %vm1668_vm0, %v1653_v45, %v1670_v53  ;;  %v1705_v55 = vpop.permute.xlu1 %1704  ;;  %v1943_v61 = vpop.permute.xlu0 %1942  ;;  %v3198_v45 = vld [vmem:[#allocation5 + $0xb0] ss:$12 sps:$4 sm:$0xff]   ;;  %vm2582_vm0 = vcmask 932864  }
 0x464   : > { %v1713_v58 = vrot.slane %v1705_v55, 4  ;;  %1731 = vst.msk [vmem:[#allocation5 + $0x5c] sm:$0xf] %vm1630_vm15, %v1705_v55  ;;  %v2963_v59 = vcombine.low %v1671_v54, %v1673_v17  ;;  %v2964_v60 = vcombine.high %v1671_v54, %v1673_v17  ;;  %v1954_v4 = vrot.slane %v1943_v61, 4 }
 0x466   : > { %v1718_v63 = vsel %vm676_vm2, %v1712_v57, %v1713_v58  ;;  %2335 = vmatprep.subr.bf16.mxu1 %v2964_v60 }
 0x467   : > { %v1719_v1 = vsel %vm1346_vm13, %v1703_v52, %v1718_v63  ;;  %v1945_v2 = vpop.permute.xlu1 %1944  ;;  %v3193_v3 = vld [vmem:[#allocation5 + $0x38] ss:$12 sps:$4 sm:$0xff]   ;;  %2336 = vmatpush1.bf16.msra.mxu1 %v2963_v59  ;;  %v1751_v9 = vpop.permute.xlu0 %1750  ;;  %vm2010_vm13 = vcmask 736256  }
 0x468   : > { %v1955_v6 = vrot.slane %v1945_v2, 4  ;;  %1974 = vst.msk [vmem:[#allocation5 + $0x104] sm:$0xf] %vm1630_vm15, %v1945_v2  ;;  %v2966_v7 = vcombine.low %v3815_v49, %v1719_v1  ;;  %v2967_v8 = vcombine.high %v3815_v49, %v1719_v1  ;;  %2389 = vmatpush1.bf16.msra.mxu0 %v3193_v3  ;;  %v1760_v16 = vrot.slane %v1751_v9, 4 }
 0x469   : > { %2390 = vmatprep.subr.bf16.mxu0 %v3222_v0 }
 0x46a   : > { %v1960_v10 = vsel %vm676_vm2, %v1954_v4, %v1955_v6  ;;  %2337 = vmatprep.subr.bf16.mxu1 %v2967_v8 }
 0x46b   : > { %v1753_v13 = vpop.permute.xlu1 %1752  ;;  %v3194_v14 = vld [vmem:[#allocation5 + $0x50] ss:$12 sps:$4 sm:$0xff]   ;;  %2338 = vmatpush1.bf16.msra.mxu1 %v2966_v7  ;;  %v3880_v15 = vsel %vm1961_vm7, %v1943_v61, %v1960_v10  ;;  %v1800_v49 = vpop.permute.xlu0 %1799 }
 0x46c   : > { %v1761_v17 = vrot.slane %v1753_v13, 4  ;;  %1780 = vst.msk [vmem:[#allocation5 + $0x80] sm:$0xf] %vm1630_vm15, %v1753_v13  ;;  %2339 = vmatprep.subr.bf16.mxu1 %v2970_v12  ;;  %2391 = vmatpush1.bf16.msra.mxu0 %v3194_v14  ;;  %v1809_v21 = vrot.slane %v1800_v49, 4  ;;  %v2988_v2 = vcombine.high %v3864_v47, %v3880_v15  ;;  %v2987_v10 = vcombine.low %v3864_v47, %v3880_v15 }
 0x46d   : > { %2392 = vmatprep.subr.bf16.mxu0 %v3222_v0 }
 0x46e   : > { %v1767_v19 = vsel %vm676_vm2, %v1760_v16, %v1761_v17 }
 0x46f   : > { %v1768_v20 = vsel %vm1765_vm3, %v1751_v9, %v1767_v19  ;;  %v1802_v22 = vpop.permute.xlu1 %1801  ;;  %2340 = vmatpush1.bf16.msra.mxu1 %v2969_v18  ;;  %v1849_v28 = vpop.permute.xlu0 %1848  ;;  %v3201_v16 = vld [vmem:[#allocation5 + $0xf8] ss:$12 sps:$4 sm:$0xff]   ;;  %vm2714_vm3 = vcmask 261120  }
 0x470   : > { %v1810_v26 = vrot.slane %v1802_v22, 4  ;;  %1829 = vst.msk [vmem:[#allocation5 + $0xa4] sm:$0xf] %vm1630_vm15, %v1802_v22  ;;  %v2972_v23 = vcombine.low %v1768_v20, %v3849_v29  ;;  %v2973_v27 = vcombine.high %v1768_v20, %v3849_v29  ;;  %2393 = vmatpush1.bf16.msra.mxu0 %v3195_v24  ;;  %v2979_v29 = vcombine.high %v3854_v34, %v3831_v5 }
 0x471   : > { %2394 = vmatprep.subr.bf16.mxu0 %v3222_v0  ;;  %v1858_v40 = vrot.slane %v1849_v28, 4 }
 0x472   : > { %v1816_v56 = vsel %vm676_vm2, %v1809_v21, %v1810_v26  ;;  %2341 = vmatprep.subr.bf16.mxu1 %v2973_v27 }
 0x473   : > { %v1817_v25 = vsel %vm1814_vm4, %v1800_v49, %v1816_v56  ;;  %v1953_v30 = vpop.permute.xlu1 %1952  ;;  %v3196_v31 = vld [vmem:[#allocation5 + $0x80] ss:$12 sps:$4 sm:$0xff]   ;;  %2342 = vmatpush1.bf16.msra.mxu1 %v2972_v23  ;;  %v1898_v38 = vpop.permute.xlu0 %1897 }
 0x474   : > { %1978 = vst.msk [vmem:[#allocation5 + $0x11c] sm:$0xf] %vm1630_vm15, %v1953_v30  ;;  %v2975_v32 = vcombine.low %v3826_v62, %v1817_v25  ;;  %v2976_v37 = vcombine.high %v3826_v62, %v1817_v25  ;;  %2395 = vmatpush1.bf16.msra.mxu0 %v3196_v31  ;;  %v2978_v62 = vcombine.low %v3854_v34, %v3831_v5  ;;  %v1907_v46 = vrot.slane %v1898_v38, 4 }
 0x475   : > { %2396 = vmatprep.subr.bf16.mxu0 %v3222_v0  ;;  %v1959_v5 = vrot.slane %v1953_v30, 4 }
 0x476   : > { %2343 = vmatprep.subr.bf16.mxu1 %v2976_v37 }
 0x477   : > { %v1851_v33 = vpop.permute.xlu1 %1850  ;;  %v3197_v39 = vld [vmem:[#allocation5 + $0x98] ss:$12 sps:$4 sm:$0xff]   ;;  %2344 = vmatpush1.bf16.msra.mxu1 %v2975_v32  ;;  %v1947_v35 = vpop.permute.xlu0 %1946 }
 0x478   : > { %v1859_v36 = vrot.slane %v1851_v33, 4  ;;  %1878 = vst.msk [vmem:[#allocation5 + $0xc8] sm:$0xf] %vm1630_vm15, %v1851_v33  ;;  %2345 = vmatprep.subr.bf16.mxu1 %v2979_v29  ;;  %2397 = vmatpush1.bf16.msra.mxu0 %v3197_v39  ;;  %v1956_v6 = vrot.slane %v1947_v35, 4  ;;  %v3205_v32 = vld [vmem:[%s4066_s4] ss:$8 sps:$4 sm:$0xff]  }
 0x479   : > { %2398 = vmatprep.subr.bf16.mxu0 %v3222_v0  ;;  %v3208_v29 = vld [vmem:[%s4066_s4 + $0x14] ss:$8 sps:$4 sm:$0xff]   ;;  %v3210_v39 = vld [vmem:[%s4066_s4 + $0x10] ss:$8 sps:$4 sm:$0xff]  }
 0x47a   : > { %v1865_v42 = vsel %vm676_vm2, %v1858_v40, %v1859_v36 }
 0x47b   : > { %v1866_v43 = vsel %vm1863_vm5, %v1849_v28, %v1865_v42  ;;  %v1900_v44 = vpop.permute.xlu1 %1899  ;;  %2346 = vmatpush1.bf16.msra.mxu1 %v2978_v62  ;;  %v1951_v52 = vpop.permute.xlu0 %1950 }
 0x47c   : > { %v1908_v48 = vrot.slane %v1900_v44, 4  ;;  %1927 = vst.msk [vmem:[#allocation5 + $0xec] sm:$0xf] %vm1630_vm15, %v1900_v44  ;;  %v2981_v50 = vcombine.low %v1866_v43, %v3859_v41  ;;  %v2982_v51 = vcombine.high %v1866_v43, %v3859_v41  ;;  %2399 = vmatpush1.bf16.msra.mxu0 %v3198_v45  ;;  %v1958_v53 = vrot.slane %v1951_v52, 4 }
 0x47d   : > { %2400 = vmatprep.subr.bf16.mxu0 %v3222_v0 }
 0x47e   : > { %v1914_v34 = vsel %vm676_vm2, %v1907_v46, %v1908_v48  ;;  %2347 = vmatprep.subr.bf16.mxu1 %v2982_v51  ;;  %v1965_v58 = vsel %vm676_vm2, %v1958_v53, %v1959_v5 }
 0x47f   : > { %v1915_v54 = vsel %vm1912_vm6, %v1898_v38, %v1914_v34  ;;  %v1994_v55 = vpop.permute.xlu1 %1993  ;;  %v3199_v57 = vld [vmem:[#allocation5 + $0xc8] ss:$12 sps:$4 sm:$0xff]   ;;  %2348 = vmatpush1.bf16.msra.mxu1 %v2981_v50  ;;  %v1966_v60 = vsel %vm1961_vm7, %v1951_v52, %v1965_v58  ;;  %v1992_v61 = vpop.permute.xlu0 %1991 }
 0x480   : > { %2023 = vst.msk [vmem:[#allocation5 + $0x128] sm:$0xf] %vm1630_vm15, %v1994_v55  ;;  %v2984_v41 = vcombine.low %v3836_v11, %v1915_v54  ;;  %v2985_v59 = vcombine.high %v3836_v11, %v1915_v54  ;;  %2401 = vmatpush1.bf16.msra.mxu0 %v3199_v57  ;;  %v2004_v63 = vrot.slane %v1994_v55, 4  ;;  %v2003_v1 = vrot.slane %v1992_v61, 4 }
 0x481   : > { %2402 = vmatprep.subr.bf16.mxu0 %v3222_v0 }
 0x482   : > { %2349 = vmatprep.subr.bf16.mxu1 %v2985_v59  ;;  %v2009_v7 = vsel %vm676_vm2, %v2003_v1, %v2004_v63 }
 0x483   : > { %v1949_v3 = vpop.permute.xlu1 %1948  ;;  %v3200_v4 = vld [vmem:[#allocation5 + $0xe0] ss:$12 sps:$4 sm:$0xff]   ;;  %2350 = vmatpush1.bf16.msra.mxu1 %v2984_v41  ;;  %v2011_v8 = vsel %vm2010_vm13, %v1992_v61, %v2009_v7  ;;  %v1996_v9 = vpop.permute.xlu0 %1995 }
 0x484   : > { %v1957_v11 = vrot.slane %v1949_v3, 4  ;;  %1976 = vst.msk [vmem:[#allocation5 + $0x110] sm:$0xf] %vm1630_vm15, %v1949_v3  ;;  %2351 = vmatprep.subr.bf16.mxu1 %v2988_v2  ;;  %2403 = vmatpush1.bf16.msra.mxu0 %v3200_v4  ;;  %v2005_v17 = vrot.slane %v1996_v9, 4 }
 0x485   : > { %2404 = vmatprep.subr.bf16.mxu0 %v3222_v0 }
 0x486   : > { %v1963_v12 = vsel %vm676_vm2, %v1956_v6, %v1957_v11 }
 0x487   : > { %v1964_v13 = vsel %vm1961_vm7, %v1947_v35, %v1963_v12  ;;  %v1998_v14 = vpop.permute.xlu1 %1997  ;;  %2352 = vmatpush1.bf16.msra.mxu1 %v2987_v10  ;;  %v2000_v20 = vpop.permute.xlu0 %1999 }
 0x488   : > { %v2006_v49 = vrot.slane %v1998_v14, 4  ;;  %2025 = vst.msk [vmem:[#allocation5 + $0x134] sm:$0xf] %vm1630_vm15, %v1998_v14  ;;  %v2990_v18 = vcombine.low %v1964_v13, %v1966_v60  ;;  %v2991_v19 = vcombine.high %v1964_v13, %v1966_v60  ;;  %2405 = vmatpush1.bf16.msra.mxu0 %v3201_v16  ;;  %v2007_v21 = vrot.slane %v2000_v20, 4 }
 0x489   : > { %2406 = vmatprep.subr.bf16.mxu0 %v3222_v0 }
 0x48a   : > { %v2012_v22 = vsel %vm676_vm2, %v2005_v17, %v2006_v49  ;;  %2353 = vmatprep.subr.bf16.mxu1 %v2991_v19 }
 0x48b   : > { %v2013_v47 = vsel %vm2010_vm13, %v1996_v9, %v2012_v22  ;;  %v2002_v15 = vpop.permute.xlu1 %2001  ;;  %v3202_v24 = vld [vmem:[#allocation5 + $0x110] ss:$12 sps:$4 sm:$0xff]   ;;  %2354 = vmatpush1.bf16.msra.mxu1 %v2990_v18 }
 0x48c   : > { %v2008_v26 = vrot.slane %v2002_v15, 4  ;;  %2027 = vst.msk [vmem:[#allocation5 + $0x140] sm:$0xf] %vm1630_vm15, %v2002_v15  ;;  %v2993_v23 = vcombine.low %v2011_v8, %v2013_v47  ;;  %v2994_v27 = vcombine.high %v2011_v8, %v2013_v47  ;;  %2407 = vmatpush1.bf16.msra.mxu0 %v3202_v24  ;;  %vm2587_vm15 = vcmask 1048448  }
 0x48d   : > { %2408 = vmatprep.subr.bf16.mxu0 %v3222_v0 }
 0x48e   : > { %v2014_v28 = vsel %vm676_vm2, %v2007_v21, %v2008_v26  ;;  %2355 = vmatprep.subr.bf16.mxu1 %v2994_v27 }
 0x48f   : > { %v2015_v56 = vsel %vm2010_vm13, %v2000_v20, %v2014_v28  ;;  %v3203_v25 = vld [vmem:[#allocation5 + $0x128] ss:$12 sps:$4 sm:$0xff]   ;;  %2356 = vmatpush1.bf16.msra.mxu1 %v2993_v23 }
 0x490   : > { %v2997_v30 = vcombine.high %v2015_v56, %v2015_v56  ;;  %v2996_v31 = vcombine.low %v2015_v56, %v2015_v56  ;;  %2409 = vmatpush1.bf16.msra.mxu0 %v3203_v25 }
 0x491   : > { %2410 = vmatprep.subr.bf16.mxu0 %v3222_v0 }
 0x492   : > { %2999 = vmatprep.subr.msk.bf16.mxu1 %vm676_vm2, %v2997_v30  ;;  %v2323_v37 = vsel %vm676_vm2, %v2996_v31, 0 }
 0x493   : > { %v3204_v38 = vld [vmem:[#allocation5 + $0x140] ss:$0 sps:$4 sm:$0xff]   ;;  %2358 = vmatpush1.bf16.msra.mxu1 %v2323_v37 }
 0x494   : > { %v2329_v33 = vsel %vm676_vm2, %v3204_v38, 0  ;;  %vm2522_vm2 = vcmask 261248  }
 0x495   : > { %2411 = vmatpush1.bf16.msra.mxu0 %v2329_v33 }
 0x496   : > { %2364 = vmatmul.mubr.bf16.vlgmr.msra.gmra.mrb[24].mxu1 %v3205_v32 }
 0x497   : > { %3001 = vmatprep.mubr.msk.bf16.mxu1 %vm669_vm1, %v3208_v29 }
 0x498   : > { %2417 = vmatmul.mubr.bf16.vlgmr.msra.gmra.mrb[8].mxu0 %v3205_v32  ;;  %v2436_v40 = vpop.permute.xlu0 %2435 }
 0x499   : > { %3003 = vmatprep.mubr.msk.bf16.mxu0 %vm669_vm1, %v3208_v29  ;;  %vm2511_vm1 = vcmask 130048  }
 0x49c   : > { %v2441_v36 = vpop.permute.xlu1 %2440  ;;  %v2468_v35 = vpop.permute.xlu0 %2467 }
 0x49e   : > { %2374 = vmatmul.mubr.bf16.gmra.mrb[28].mxu1 %v3210_v39 }
 0x49f   : > { %2756 = vmatprep.mubr.bf16.mxu1 %v3222_v0 }
 0x4a0   : > { %2425 = vmatmul.mubr.bf16.gmra.mrb[12].mxu0 %v3210_v39  ;;  %v2473_v62 = vpop.permute.xlu1 %2472  ;;  %v2446_v5 = vpop.permute.xlu0 %2445 }
 0x4a4   : > { %v2451_v41 = vpop.permute.xlu1 %2450  ;;  %v2478_v10 = vpop.permute.xlu0 %2477 }
 0x4a8   : > { %v2483_v22 = vpop.permute.xlu1 %2482 }
 0x569   : > { %v2365_v42 = vpop.f32.mrb[24].mxu1 }
 0x56a   : > { %v2453_v43 = vmul.f32 %v2436_v40, %v2365_v42  ;;  %v2367_v44 = vpop.f32.mrb[25].mxu1  ;;  %v389_v42 = vld [vmem:[%s4070_s8] sm:$0xff] }
 0x56b   : > { %v2454_v45 = vmul.f32 %v2436_v40, %v2367_v44  ;;  %v2369_v46 = vpop.f32.mrb[26].mxu1  ;;  %v2418_v48 = vpop.f32.mrb[8].mxu0  ;;  %v391_v44 = vld [vmem:[%s4070_s8 + $0x10] sm:$0xff] }
 0x56c   : > { %v2485_v50 = vadd.f32 %v2468_v35, %v2453_v43  ;;  %v2456_v51 = vmul.f32 %v2441_v36, %v2369_v46  ;;  %v2371_v52 = vpop.f32.mrb[27].mxu1  ;;  %v2455_v34 = vmul.f32 %v2436_v40, %v2418_v48  ;;  %v2420_v53 = vpop.f32.mrb[9].mxu0  ;;  %v392_v43 = vld [vmem:[%s4070_s8 + $0x18] sm:$0xff]  ;;  %v393_v46 = vld [vmem:[%s4070_s8 + $0x20] sm:$0xff] }
 0x56d   : > { %v2486_v54 = vadd.f32 %v2468_v35, %v2454_v45  ;;  %v2457_v55 = vmul.f32 %v2441_v36, %v2371_v52  ;;  %v2421_v57 = vpop.f32.mrb[10].mxu0  ;;  %v394_v45 = vld [vmem:[%s4070_s8 + $0x28] sm:$0x1] }
 0x56e   : > { %v2488_v58 = vadd.f32 %v2473_v62, %v2456_v51  ;;  %v2487_v59 = vadd.f32 %v2468_v35, %v2455_v34  ;;  %v2458_v60 = vmul.f32 %v2441_v36, %v2421_v57  ;;  %v2423_v61 = vpop.f32.mrb[11].mxu0  ;;  %v2497_v1 = vmax.f32 %v2485_v50, 0.0 }
 0x56f   : > { %v2489_v63 = vadd.f32 %v2473_v62, %v2457_v55  ;;  %v2498_v4 = vmax.f32 %v2486_v54, 0.0 }
 0x570   : > { %v2500_v2 = vmax.f32 %v2488_v58, 0.0  ;;  %v2490_v3 = vadd.f32 %v2473_v62, %v2458_v60  ;;  %v2499_v12 = vmax.f32 %v2487_v59, 0.0  ;;  %v390_v62 = vld [vmem:[%s4070_s8 + $0x8] sm:$0xff] }
 0x571   : > { %v2501_v6 = vmax.f32 %v2489_v63, 0.0  ;;  %v2375_v7 = vpop.f32.mrb[28].mxu1 }
 0x572   : > { %v2509_v11 = vpack.c.bf16 %v2500_v2, %v2497_v1  ;;  %v2459_v8 = vmul.f32 %v2446_v5, %v2375_v7  ;;  %v2377_v9 = vpop.f32.mrb[29].mxu1  ;;  %v2502_v13 = vmax.f32 %v2490_v3, 0.0 }
 0x573   : > { %v2570_v14 = vpack.c.bf16 %v2501_v6, %v2498_v4  ;;  %v2460_v16 = vmul.f32 %v2446_v5, %v2377_v9  ;;  %v2379_v17 = vpop.f32.mrb[30].mxu1  ;;  %v2426_v49 = vpop.f32.mrb[12].mxu0 }
 0x574   : > { %v2491_v18 = vadd.f32 %v2478_v10, %v2459_v8  ;;  %v2462_v19 = vmul.f32 %v2451_v41, %v2379_v17  ;;  %v2381_v20 = vpop.f32.mrb[31].mxu1  ;;  %2512 = vst.msk [vmem:[#allocation6] sm:$0xff] %vm2511_vm1, %v2509_v11  ;;  %v2638_v47 = vpack.c.bf16 %v2502_v13, %v2499_v12  ;;  %v2461_v15 = vmul.f32 %v2446_v5, %v2426_v49  ;;  %v2428_v24 = vpop.f32.mrb[13].mxu0 }
 0x575   : > { %v2492_v21 = vadd.f32 %v2478_v10, %v2460_v16  ;;  %v2463_v26 = vmul.f32 %v2451_v41, %v2381_v20  ;;  %v2429_v23 = vpop.f32.mrb[14].mxu0 }
 0x576   : > { %v2494_v27 = vadd.f32 %v2483_v22, %v2462_v19  ;;  %v2493_v28 = vadd.f32 %v2478_v10, %v2461_v15  ;;  %v2464_v56 = vmul.f32 %v2451_v41, %v2429_v23  ;;  %2657 = vrot.lane.b32.xlu0 %v2638_v47, %s3231_s17  ;;  %2644 = vrot.lane.b32.xlu1 %v2638_v47, %s3252_s27  ;;  %v2431_v30 = vpop.f32.mrb[15].mxu0  ;;  %v2503_v31 = vmax.f32 %v2491_v18, 0.0 }
 0x577   : > { %v2495_v25 = vadd.f32 %v2483_v22, %v2463_v26  ;;  %v2504_v38 = vmax.f32 %v2492_v21, 0.0 }
 0x578   : > { %v2506_v32 = vmax.f32 %v2494_v27, 0.0  ;;  %v2496_v37 = vadd.f32 %v2483_v22, %v2464_v56  ;;  %v2505_v39 = vmax.f32 %v2493_v28, 0.0  ;;  %v3211_v27 = vld [vmem:[%s4069_s7] sm:$0xff]   ;;  %v3212_v28 = vld [vmem:[%s4069_s7 + $0x8] sm:$0xff]   ;;  %v3213_v56 = vld [vmem:[%s4069_s7 + $0x10] sm:$0x1f]  }
 0x579   : > { %v2507_v29 = vmax.f32 %v2495_v25, 0.0 }
 0x57a   : > { %v2510_v33 = vpack.c.bf16 %v2506_v32, %v2503_v31  ;;  %v2508_v40 = vmax.f32 %v2496_v37, 0.0  ;;  %2516 = vrot.lane.b32.xlu0 %v2509_v11, %s3224_s20  ;;  %2543 = vrot.lane.b32.xlu1 %v2509_v11, %s3253_s28 }
 0x57b   : > { %v2571_v36 = vpack.c.bf16 %v2507_v29, %v2504_v38 }
 0x57c   : > { %2513 = vst.msk [vmem:[#allocation6 + $0x10] sm:$0xff] %vm2511_vm1, %v2510_v33  ;;  %v2639_v35 = vpack.c.bf16 %v2508_v40, %v2505_v39 }
 0x57e   : > { %2525 = vrot.lane.b32.xlu0 %v2509_v11, %s3247_s29  ;;  %2552 = vrot.lane.b32.xlu1 %v2509_v11, %s3225_s21 }
 0x582   : > { %2534 = vrot.lane.b32.xlu0 %v2509_v11, %s3254_s30  ;;  %2574 = vrot.lane.b32.xlu1 %v2509_v11, %s3255_s12 }
 0x586   : > { %2561 = vrot.lane.b32.xlu0 %v2509_v11, %s3227_s23  ;;  %2598 = vrot.lane.b32.xlu1 %v2570_v14, %s3248_s18 }
 0x58a   : > { %2590 = vrot.lane.b32.xlu0 %v2570_v14, %s3256_s15  ;;  %2606 = vrot.lane.b32.xlu1 %v2570_v14, %s3228_s24 }
 0x58e   : > { %2622 = vrot.lane.b32.xlu0 %v2570_v14, %s3257_s19  ;;  %2614 = vrot.lane.b32.xlu1 %v2570_v14, %s3230_s26 }
 0x592   : > { %2642 = vrot.lane.b32.xlu0 %v2570_v14, %s3252_s27  ;;  %2630 = vrot.lane.b32.xlu1 %v2570_v14, %s3258_s16 }
 0x596   : > { %2576 = vrot.lane.b32.xlu0 %v2570_v14, %s3255_s12  ;;  %2527 = vrot.lane.b32.xlu1 %v2510_v33, %s3247_s29 }
 0x59a   : > { %2536 = vrot.lane.b32.xlu1 %v2510_v33, %s3254_s30  ;;  %2648 = vrot.lane.b32.xlu0 %v2639_v35, %s3252_s27 }
 0x59e   : > { %2545 = vrot.lane.b32.xlu1 %v2510_v33, %s3253_s28  ;;  %2518 = vrot.lane.b32.xlu0 %v2510_v33, %s3224_s20  ;;  %s3124_s20 = smul.u32 96, %s4078_s14 }
 0x5a0   : > { %s4045_s29 = scalar_lea.vmem %s4072_s10, %s3124_s20 }
 0x5a2   : > { %2554 = vrot.lane.b32.xlu1 %v2510_v33, %s3225_s21  ;;  %2563 = vrot.lane.b32.xlu0 %v2510_v33, %s3227_s23 }
 0x5a6   : > { %2578 = vrot.lane.b32.xlu1 %v2510_v33, %s3255_s12  ;;  %2600 = vrot.lane.b32.xlu0 %v2571_v36, %s3248_s18 }
 0x5aa   : > { %2592 = vrot.lane.b32.xlu1 %v2571_v36, %s3256_s15  ;;  %2608 = vrot.lane.b32.xlu0 %v2571_v36, %s3228_s24 }
 0x5ae   : > { %2616 = vrot.lane.b32.xlu1 %v2571_v36, %s3230_s26  ;;  %2624 = vrot.lane.b32.xlu0 %v2571_v36, %s3257_s19 }
 0x5b2   : > { %2646 = vrot.lane.b32.xlu1 %v2571_v36, %s3252_s27  ;;  %2632 = vrot.lane.b32.xlu0 %v2571_v36, %s3258_s16 }
 0x5b6   : > { %2659 = vrot.lane.b32.xlu1 %v2639_v35, %s3231_s17  ;;  %2580 = vrot.lane.b32.xlu0 %v2571_v36, %s3255_s12 }
 0x5ba   : > { %2676 = vperm.xlu1 %3171, %v390_v62   ;;  %2671 = vperm.xlu0 %3170, %v389_v42  }
 0x5be   : > { %2686 = vperm.xlu1 %3171, %v392_v43   ;;  %2681 = vperm.xlu0 %3170, %v391_v44  }
 0x5c2   : > { %2696 = vperm.xlu1 %3171, %v394_v45   ;;  %2691 = vperm.xlu0 %3170, %v393_v46  }
 0x5e8   : > { %v2658_v48 = vpop.permute.xlu0 %2657  ;;  %v2645_v50 = vpop.permute.xlu1 %2644 }
 0x5ec   : > { %v2517_v51 = vpop.permute.xlu0 %2516  ;;  %v2544_v52 = vpop.permute.xlu1 %2543 }
 0x5ed   : > { %2523 = vst.msk [vmem:[#allocation6] sm:$0xff] %vm2522_vm2, %v2517_v51 }
 0x5f0   : > { %v2526_v5 = vpop.permute.xlu0 %2525  ;;  %v2553_v34 = vpop.permute.xlu1 %2552 }
 0x5f1   : > { %2532 = vst.msk [vmem:[#allocation6] sm:$0xff] %vm2531_vm8, %v2526_v5 }
 0x5f4   : > { %v2535_v53 = vpop.permute.xlu0 %2534  ;;  %v2575_v54 = vpop.permute.xlu1 %2574 }
 0x5f5   : > { %2541 = vst.msk [vmem:[#allocation6] sm:$0xff] %vm2540_vm9, %v2535_v53 }
 0x5f6   : > { %2550 = vst.msk [vmem:[#allocation6] sm:$0xff] %vm2549_vm10, %v2544_v52 }
 0x5f7   : > { %2559 = vst.msk [vmem:[#allocation6] sm:$0xff] %vm2558_vm11, %v2553_v34 }
 0x5f8   : > { %v2562_v55 = vpop.permute.xlu0 %2561  ;;  %v2599_v57 = vpop.permute.xlu1 %2598 }
 0x5f9   : > { %2568 = vst.msk [vmem:[#allocation6] sm:$0xff] %vm2567_vm12, %v2562_v55 }
 0x5fc   : > { %v2591_v58 = vpop.permute.xlu0 %2590  ;;  %v2607_v41 = vpop.permute.xlu1 %2606 }
 0x5fd   : > { %2596 = vst.msk [vmem:[#allocation6 + $0x8] sm:$0xff] %vm2511_vm1, %v2591_v58 }
 0x5fe   : > { %2604 = vst.msk [vmem:[#allocation6 + $0x8] sm:$0xff] %vm2522_vm2, %v2599_v57 }
 0x5ff   : > { %2612 = vst.msk [vmem:[#allocation6 + $0x8] sm:$0xff] %vm2531_vm8, %v2607_v41 }
 0x600   : > { %v2623_v59 = vpop.permute.xlu0 %2622  ;;  %v2615_v60 = vpop.permute.xlu1 %2614 }
 0x601   : > { %2620 = vst.msk [vmem:[#allocation6 + $0x8] sm:$0xff] %vm2540_vm9, %v2615_v60 }
 0x602   : > { %2628 = vst.msk [vmem:[#allocation6 + $0x8] sm:$0xff] %vm2549_vm10, %v2623_v59 }
 0x604   : > { %v2643_v61 = vpop.permute.xlu0 %2642  ;;  %v2631_v63 = vpop.permute.xlu1 %2630 }
 0x605   : > { %v2651_v1 = vsel %vm2650_vm14, %v2643_v61, %v2645_v50  ;;  %2636 = vst.msk [vmem:[#allocation6 + $0x8] sm:$0xff] %vm2558_vm11, %v2631_v63 }
 0x606   : > { %2655 = vst.msk [vmem:[#allocation6 + $0x8] sm:$0xff] %vm2567_vm12, %v2651_v1 }
 0x607   : > { %2663 = vst.msk [vmem:[#allocation6 + $0x8] sm:$0xff] %vm2587_vm15, %v2658_v48 }
 0x608   : > { %v2577_v2 = vpop.permute.xlu0 %2576  ;;  %v2528_v3 = vpop.permute.xlu1 %2527 }
 0x609   : > { %v2583_v4 = vsel %vm2582_vm0, %v2575_v54, %v2577_v2 }
 0x60a   : > { %2588 = vst.msk [vmem:[#allocation6] sm:$0xff] %vm2587_vm15, %v2583_v4 }
 0x60c   : > { %v2537_v6 = vpop.permute.xlu1 %2536  ;;  %v2649_v7 = vpop.permute.xlu0 %2648 }
 0x60e   : > { %v2666_v11 = vld [vmem:[#allocation6 + $0x8] sm:$0xff] }
 0x60f   : > { %2724 = vmatprep.subr.bf16.mxu1 %v2666_v11 }
 0x610   : > { %v2546_v8 = vpop.permute.xlu1 %2545  ;;  %v2519_v9 = vpop.permute.xlu0 %2518 }
 0x611   : > { %2524 = vst.msk [vmem:[#allocation6 + $0x10] sm:$0xff] %vm2522_vm2, %v2519_v9  ;;  %v2665_v10 = vld [vmem:[#allocation6] sm:$0xff] }
 0x612   : > { %2533 = vst.msk [vmem:[#allocation6 + $0x10] sm:$0xff] %vm2531_vm8, %v2528_v3  ;;  %2725 = vmatpush1.bf16.msra.mxu1 %v2665_v10 }
 0x613   : > { %2542 = vst.msk [vmem:[#allocation6 + $0x10] sm:$0xff] %vm2540_vm9, %v2537_v6 }
 0x614   : > { %2551 = vst.msk [vmem:[#allocation6 + $0x10] sm:$0xff] %vm2549_vm10, %v2546_v8  ;;  %v2555_v12 = vpop.permute.xlu1 %2554  ;;  %v2564_v13 = vpop.permute.xlu0 %2563 }
 0x615   : > { %2560 = vst.msk [vmem:[#allocation6 + $0x10] sm:$0xff] %vm2558_vm11, %v2555_v12 }
 0x616   : > { %2569 = vst.msk [vmem:[#allocation6 + $0x10] sm:$0xff] %vm2567_vm12, %v2564_v13 }
 0x618   : > { %v2579_v14 = vpop.permute.xlu1 %2578  ;;  %v2601_v16 = vpop.permute.xlu0 %2600 }
 0x61c   : > { %v2593_v17 = vpop.permute.xlu1 %2592  ;;  %v2609_v49 = vpop.permute.xlu0 %2608 }
 0x61d   : > { %2597 = vst.msk [vmem:[#allocation6 + $0x18] sm:$0xff] %vm2511_vm1, %v2593_v17 }
 0x61e   : > { %2605 = vst.msk [vmem:[#allocation6 + $0x18] sm:$0xff] %vm2522_vm2, %v2601_v16 }
 0x61f   : > { %2613 = vst.msk [vmem:[#allocation6 + $0x18] sm:$0xff] %vm2531_vm8, %v2609_v49 }
 0x620   : > { %v2617_v18 = vpop.permute.xlu1 %2616  ;;  %v2625_v19 = vpop.permute.xlu0 %2624 }
 0x621   : > { %2621 = vst.msk [vmem:[#allocation6 + $0x18] sm:$0xff] %vm2540_vm9, %v2617_v18 }
 0x622   : > { %2629 = vst.msk [vmem:[#allocation6 + $0x18] sm:$0xff] %vm2549_vm10, %v2625_v19 }
 0x624   : > { %v2647_v20 = vpop.permute.xlu1 %2646  ;;  %v2633_v22 = vpop.permute.xlu0 %2632 }
 0x625   : > { %v2652_v47 = vsel %vm2650_vm14, %v2647_v20, %v2649_v7  ;;  %2637 = vst.msk [vmem:[#allocation6 + $0x18] sm:$0xff] %vm2558_vm11, %v2633_v22 }
 0x626   : > { %2656 = vst.msk [vmem:[#allocation6 + $0x18] sm:$0xff] %vm2567_vm12, %v2652_v47 }
 0x628   : > { %v2660_v15 = vpop.permute.xlu1 %2659  ;;  %v2581_v24 = vpop.permute.xlu0 %2580 }
 0x629   : > { %2664 = vst.msk [vmem:[#allocation6 + $0x18] sm:$0xff] %vm2587_vm15, %v2660_v15  ;;  %v2584_v21 = vsel %vm2582_vm0, %v2579_v14, %v2581_v24 }
 0x62a   : > { %2589 = vst.msk [vmem:[#allocation6 + $0x10] sm:$0xff] %vm2587_vm15, %v2584_v21 }
 0x630   : > { %v2668_v26 = vld [vmem:[#allocation6 + $0x18] sm:$0xff] }
 0x631   : > { %2726 = vmatprep.subr.bf16.mxu1 %v2668_v26  ;;  %v2667_v23 = vld [vmem:[#allocation6 + $0x10] sm:$0xff] }
 0x632   : > { %2727 = vmatpush1.bf16.msra.mxu1 %v2667_v23 }
 0x635   : > { %3007 = vmatmul.mubr.msk.bf16.vlgmr.msra.gmra.mrb[32].mxu1 %vm2714_vm3, %v3211_v27 }
 0x636   : > { %2766 = vmatprep.mubr.bf16.mxu1 %v3222_v0 }
 0x639   : > { %v2672_v25 = vpop.permute.xlu0 %2671 }
 0x63d   : > { %3008 = vmatmul.mubr.msk.bf16.gmra.mrb[36].mxu1 %vm2714_vm3, %v3212_v28  ;;  %v2682_v40 = vpop.permute.xlu0 %2681 }
 0x63e   : > { %2776 = vmatprep.mubr.bf16.mxu1 %v3222_v0  ;;  %v2677_v0 = vpop.permute.xlu1 %2676 }
 0x641   : > { %v2692_v50 = vpop.permute.xlu0 %2691 }
 0x642   : > { %v2687_v42 = vpop.permute.xlu1 %2686 }
 0x645   : > { %3009 = vmatmul.mubr.msk.bf16.gmra.mrb[40].mxu1 %vm2714_vm3, %v3213_v56 }
 0x646   : > { %v2697_v34 = vpop.permute.xlu1 %2696 }
 0x708   : > { %v2758_v30 = vpop.f32.mrb[32].mxu1 }
 0x709   : > { %v2759_v31 = vadd.f32 %v2758_v30, %v2672_v25  ;;  %v2760_v32 = vpop.f32.mrb[33].mxu1 }
 0x70a   : > { %v2761_v37 = vadd.f32 %v2760_v32, %v2672_v25  ;;  %v2762_v38 = vpop.f32.mrb[34].mxu1 }
 0x70b   : > { %2787 = vst [vmem:[%s4045_s29] sm:$0xff] %v2759_v31  ;;  %v2763_v29 = vadd.f32 %v2762_v38, %v2677_v0  ;;  %v2764_v33 = vpop.f32.mrb[35].mxu1 }
 0x70c   : > { %2788 = vst [vmem:[%s4045_s29 + $0x8] sm:$0xff] %v2761_v37  ;;  %v2765_v39 = vadd.f32 %v2764_v33, %v2677_v0 }
 0x70d   : > { %2789 = vst [vmem:[%s4045_s29 + $0x10] sm:$0xff] %v2763_v29 }
 0x70e   : > { %2790 = vst [vmem:[%s4045_s29 + $0x18] sm:$0xff] %v2765_v39 }
 0x710   : > { %v2768_v36 = vpop.f32.mrb[36].mxu1 }
 0x711   : > { %v2769_v35 = vadd.f32 %v2768_v36, %v2682_v40  ;;  %v2770_v62 = vpop.f32.mrb[37].mxu1 }
 0x712   : > { %v2771_v43 = vadd.f32 %v2770_v62, %v2682_v40  ;;  %v2772_v44 = vpop.f32.mrb[38].mxu1 }
 0x713   : > { %2791 = vst [vmem:[%s4045_s29 + $0x20] sm:$0xff] %v2769_v35  ;;  %v2773_v45 = vadd.f32 %v2772_v44, %v2687_v42  ;;  %v2774_v46 = vpop.f32.mrb[39].mxu1 }
 0x714   : > { %2792 = vst [vmem:[%s4045_s29 + $0x28] sm:$0xff] %v2771_v43  ;;  %v2775_v48 = vadd.f32 %v2774_v46, %v2687_v42 }
 0x715   : > { %2793 = vst [vmem:[%s4045_s29 + $0x30] sm:$0xff] %v2773_v45 }
 0x716   : > { %2794 = vst [vmem:[%s4045_s29 + $0x38] sm:$0xff] %v2775_v48 }
 0x718   : > { %v2778_v51 = vpop.f32.mrb[40].mxu1 }
 0x719   : > { %v2779_v52 = vadd.f32 %v2778_v51, %v2692_v50  ;;  %v2780_v5 = vpop.f32.mrb[41].mxu1 }
 0x71a   : > { %v2781_v53 = vadd.f32 %v2780_v5, %v2692_v50  ;;  %v2782_v54 = vpop.f32.mrb[42].mxu1 }
 0x71b   : > { %2795 = vst [vmem:[%s4045_s29 + $0x40] sm:$0xff] %v2779_v52  ;;  %v2783_v55 = vadd.f32 %v2782_v54, %v2697_v34  ;;  %v2784_v57 = vpop.f32.mrb[43].mxu1 }
 0x71c   : > { %2796 = vst [vmem:[%s4045_s29 + $0x48] sm:$0xff] %v2781_v53  ;;  %v2785_v58 = vadd.f32 %v2784_v57, %v2697_v34 }
 0x71d   : > { %2797 = vst [vmem:[%s4045_s29 + $0x50] sm:$0x1] %v2783_v55 }
 0x71e   : > { %2798 = vst [vmem:[%s4045_s29 + $0x58] sm:$0x1] %v2785_v58 }
 0x71f PF: > { %s20_s13 = sadd.s32 1, %s3220_s13  }
 0x720   : > { %p17_p4 = scmp.ge.s32.totalorder %s20_s13, 4  }
 0x722   :  { %19 = sbr.rel (!%p17_p4) target bundleno = 1 (0x1), region = 90 }

</bundles_post_ra>
